<compile_context>
chip_gen: v5e
topology: v5e:2x2
jax: 0.10.0
libtpu: 0.0.40
codegen_flags: <defaults>
</compile_context>

<pallas_src>
import functools

import jax
import jax.numpy as jnp
from jax import lax
from jax.experimental import pallas as pl
from jax.experimental.pallas import tpu as pltpu


def _round_up(x, m):
    return (x + m - 1) // m * m


def _pick_row_tile(H, cap=32):
    """Largest divisor of H (<= cap) leaving >= 2 tiles; else the full H."""
    best = 0
    for d in range(1, min(H, cap) + 1):
        if H % d == 0 and H // d >= 2:
            best = d
    return best if best >= 8 else H


def _basic_block_kernel(x_ref, w1_ref, b1_ref, w2_ref, b2_ref, o_ref, *,
                        H, W, TH, Wo8, Wpad, Cp):
    """One (batch, row-tile) step.

    x_ref  : (1, H+6, Wpad, Cp) bf16  zero-padded input (rows pad (2,4),
                                      cols pad (2, Wpad-W-2), channels padded)
    w1_ref : (3, 3, Cp, Cp)     bf16  conv1 weight, HWIO, bn1 scale folded in
    b1_ref : (1, Cp)            f32   bn1 folded bias
    w2_ref : (3, 3, Cp, Cp)     bf16  conv2 weight, bn2 scale folded in
    b2_ref : (1, Cp)            f32   bn2 folded bias
    o_ref  : (1, TH, Wo8, Cp)   bf16  output row tile (lane dense)
    """
    t = pl.program_id(1)
    r0 = t * TH                              # first output row of this tile

    rows1 = TH + 3                           # conv1 output rows (incl. halo+slack)
    n1 = rows1 * Wpad
    n2 = TH * Wpad

    # relu(x): padding is zero and relu(0)=0, so relu the padded slab directly.
    slab = x_ref[0, pl.ds(r0, TH + 6), :, :]            # (TH+6, Wpad, Cp) bf16
    xr = jnp.maximum(slab, 0).reshape((TH + 6) * Wpad, Cp)   # flat, free reshape

    # ---- conv1 (3x3, pad=1): 9 flat-offset MXU matmuls, f32 accumulation ----
    # Flat output index m = j*Wpad + k reads input flat index m + dy*Wpad + dx.
    acc1 = jnp.zeros((n1, Cp), jnp.float32)
    for dy in range(3):
        for dx in range(3):
            off = dy * Wpad + dx
            acc1 = acc1 + jnp.dot(xr[off:off + n1], w1_ref[dy, dx],
                                  preferred_element_type=jnp.float32)

    # bn1 bias (scale already folded into w1) + relu, then zero everything
    # outside the valid conv1 output region (this realizes conv2's zero
    # padding; it also kills the wrap-around junk of the flat taps).
    h = jnp.maximum(acc1 + b1_ref[0], 0.0).reshape(rows1, Wpad, Cp)
    jj = lax.broadcasted_iota(jnp.int32, (rows1, Wpad, 1), 0)
    kk = lax.broadcasted_iota(jnp.int32, (rows1, Wpad, 1), 1)
    grow = r0 - 1 + jj                                   # global conv1 row
    valid = (grow >= 0) & (grow < H) & (kk >= 1) & (kk <= W)
    hb = jnp.where(valid, h, 0.0).astype(jnp.bfloat16).reshape(n1, Cp)

    # ---- conv2 (3x3, pad=1): same flat-offset tap scheme ----
    acc2 = jnp.zeros((n2, Cp), jnp.float32)
    for dy in range(3):
        for dx in range(3):
            off = dy * Wpad + dx
            acc2 = acc2 + jnp.dot(hb[off:off + n2], w2_ref[dy, dx],
                                  preferred_element_type=jnp.float32)

    # bn2 bias + residual (se = Identity, downsample = None).
    ident = xr[2 * Wpad + 2: 2 * Wpad + 2 + n2].astype(jnp.float32)
    out = (acc2 + b2_ref[0] + ident).reshape(TH, Wpad, Cp)
    o_ref[0] = out[:, :Wo8, :].astype(o_ref.dtype)


def basic_block_pallas_nhwc(x_nhwc, w1_hwio, scale1, bias1,
                            w2_hwio, scale2, bias2, strip_padding=True):
    """NHWC entry point. With strip_padding=False the (Wo8, Cp)-padded bf16
    output is returned so chained blocks can avoid re-padding (note: columns
    [W, Wo8) / channels [C, Cp) then contain junk / zeros respectively)."""
    B, H, W, C = x_nhwc.shape
    assert w1_hwio.shape[-1] == C, "stride=1, downsample=None requires inplanes == planes"

    Cp = _round_up(C, 128)                       # MXU lane width
    Wo8 = _round_up(W, 8)                        # output width, sublane aligned
    Wpad = _round_up(max(W + 4, Wo8 + 2), 8)     # tight padded input width
    TH = _pick_row_tile(H)                       # row tile (divides H)
    NT = H // TH

    # One fused pad (bf16): row halo (2 top, 4 bottom slack for flat taps),
    # column halo + alignment, channel padding.
    xp = jnp.pad(x_nhwc.astype(jnp.bfloat16),
                 ((0, 0), (2, 4), (2, Wpad - W - 2), (0, Cp - C)))

    def fold_w(w, s):                            # fold BN scale into weights
        w = w.astype(jnp.float32) * s.astype(jnp.float32)[None, None, None, :]
        w = jnp.pad(w, ((0, 0), (0, 0), (0, Cp - C), (0, Cp - C)))
        return w.astype(jnp.bfloat16)

    def pad_b(b):
        return jnp.pad(b.astype(jnp.float32), (0, Cp - C)).reshape(1, Cp)

    w1p, w2p = fold_w(w1_hwio, scale1), fold_w(w2_hwio, scale2)
    b1, b2 = pad_b(bias1), pad_b(bias2)

    kernel = functools.partial(_basic_block_kernel, H=H, W=W, TH=TH,
                               Wo8=Wo8, Wpad=Wpad, Cp=Cp)

    # Generation-aware VMEM budget from the actual footprint.
    bytes_x = (H + 6) * Wpad * Cp * 2
    bytes_w = 2 * 9 * Cp * Cp * 2
    bytes_o = TH * Wo8 * Cp * 2
    bytes_tmp = ((TH + 6) * Wpad * Cp * 2            # relu'd slab (bf16)
                 + 2 * (TH + 3) * Wpad * Cp * 4      # acc1 / h (f32)
                 + (TH + 3) * Wpad * Cp * 2          # hb (bf16)
                 + 2 * TH * Wpad * Cp * 4)           # acc2 / out (f32)
    need = 2 * bytes_x + bytes_w + 2 * bytes_o + bytes_tmp + (2 << 20)
    vmem_limit = int(min(100 * 2 ** 20, max(32 * 2 ** 20, int(1.25 * need))))

    const = dict(pipeline_mode=pl.Buffered(1))       # never re-fetched operands

    out = pl.pallas_call(
        kernel,
        out_shape=jax.ShapeDtypeStruct((B, H, Wo8, Cp), jnp.bfloat16),
        grid_spec=pltpu.PrefetchScalarGridSpec(
            num_scalar_prefetch=0,
            grid=(B, NT),
            in_specs=[
                # Full padded image per batch element; block index is constant
                # across row tiles so it is DMA'd once per batch.
                pl.BlockSpec((1, H + 6, Wpad, Cp), lambda b, t: (b, 0, 0, 0)),
                pl.BlockSpec((3, 3, Cp, Cp), lambda b, t: (0, 0, 0, 0), **const),
                pl.BlockSpec((1, Cp), lambda b, t: (0, 0), **const),
                pl.BlockSpec((3, 3, Cp, Cp), lambda b, t: (0, 0, 0, 0), **const),
                pl.BlockSpec((1, Cp), lambda b, t: (0, 0), **const),
            ],
            out_specs=pl.BlockSpec((1, TH, Wo8, Cp), lambda b, t: (b, t, 0, 0)),
        ),
        compiler_params=pltpu.CompilerParams(
            # Row-tile axis "arbitrary": megacore shards on batch, so the two
            # v7x TensorCores do not both hold/DMA the same per-batch x block.
            dimension_semantics=("parallel", "arbitrary"),
            vmem_limit_bytes=vmem_limit,
        ),
    )(xp, w1p, b1, w2p, b2)

    if strip_padding:
        out = out[:, :, :W, :C]
    return out


def basic_block_pallas(x_nchw, w1_hwio, scale1, bias1, w2_hwio, scale2, bias2):
    """NCHW wrapper matching the PyTorch module interface (f32 out)."""
    x_nhwc = jnp.transpose(x_nchw, (0, 2, 3, 1))
    out_nhwc = basic_block_pallas_nhwc(x_nhwc, w1_hwio, scale1, bias1,
                                       w2_hwio, scale2, bias2)
    return jnp.transpose(out_nhwc, (0, 3, 1, 2)).astype(jnp.float32)


def _reference_forward(x_nchw, w1_hwio, scale1, bias1, w2_hwio, scale2, bias2):
    """Pure-JAX reference mirroring the kernel's mixed precision (bf16 MXU
    inputs with BN scale folded into the weights, f32 accumulation, f32 bias /
    relu / residual, bf16 output)."""
    xr = jnp.maximum(x_nchw.astype(jnp.bfloat16), 0).astype(jnp.float32)
    identity = xr
    w1f = (w1_hwio.astype(jnp.float32)
           * scale1[None, None, None, :]).astype(jnp.bfloat16)
    w2f = (w2_hwio.astype(jnp.float32)
           * scale2[None, None, None, :]).astype(jnp.bfloat16)
    dn = ("NCHW", "HWIO", "NCHW")
    out = lax.conv_general_dilated(xr.astype(jnp.bfloat16), w1f, (1, 1),
                                   [(1, 1), (1, 1)], dimension_numbers=dn,
                                   preferred_element_type=jnp.float32)
    out = jnp.maximum(out + bias1[None, :, None, None], 0.0)
    out = lax.conv_general_dilated(out.astype(jnp.bfloat16), w2f, (1, 1),
                                   [(1, 1), (1, 1)], dimension_numbers=dn,
                                   preferred_element_type=jnp.float32)
    out = out + bias2[None, :, None, None] + identity
    return out.astype(jnp.bfloat16).astype(jnp.float32)


if __name__ == "__main__":
    # Small shapes: inplanes = planes = 4, stride = 1, with_ibn/with_se = False.
    B, C, H, W = 2, 4, 16, 16
    planes = C

    key = jax.random.PRNGKey(0)
    ks = jax.random.split(key, 9)

    x = jax.random.normal(ks[0], (B, C, H, W), jnp.float32)

    fan_in = 3 * 3 * C
    w1 = jax.random.normal(ks[1], (3, 3, C, planes), jnp.float32) * (2.0 / fan_in) ** 0.5
    w2 = jax.random.normal(ks[2], (3, 3, planes, planes), jnp.float32) * (2.0 / (3 * 3 * planes)) ** 0.5

    # BatchNorm (eval-mode) params folded to scale/bias.
    eps = 1e-5
    gamma1 = 1.0 + 0.1 * jax.random.normal(ks[3], (planes,), jnp.float32)
    beta1 = 0.1 * jax.random.normal(ks[4], (planes,), jnp.float32)
    rmean1 = 0.1 * jax.random.normal(ks[5], (planes,), jnp.float32)
    rvar1 = jnp.abs(jax.random.normal(ks[6], (planes,), jnp.float32)) + 0.5
    gamma2 = 1.0 + 0.1 * jax.random.normal(ks[7], (planes,), jnp.float32)
    beta2 = 0.1 * jax.random.normal(ks[8], (planes,), jnp.float32)
    rmean2 = jnp.zeros((planes,), jnp.float32)
    rvar2 = jnp.ones((planes,), jnp.float32)

    scale1 = gamma1 / jnp.sqrt(rvar1 + eps)
    bias1 = beta1 - rmean1 * scale1
    scale2 = gamma2 / jnp.sqrt(rvar2 + eps)
    bias2 = beta2 - rmean2 * scale2

    out = basic_block_pallas(x, w1, scale1, bias1, w2, scale2, bias2)
    out = jax.block_until_ready(out)

    ref = _reference_forward(x, w1, scale1, bias1, w2, scale2, bias2)
    assert out.shape == (B, C, H, W)
    assert jnp.allclose(out, ref, atol=3e-2, rtol=3e-2), "mismatch vs reference"

    print("KERNEL_OK")
</pallas_src>

<mosaic_0001>
module attributes {stable_mosaic.version = 11 : i64} {
  func.func @_basic_block_kernel(%arg0: i32, %arg1: i32, %arg2: memref<1x22x24x128xbf16, #tpu.memory_space<vmem>>, %arg3: memref<3x3x128x128xbf16, #tpu.memory_space<vmem>>, %arg4: memref<1x128xf32, #tpu.memory_space<vmem>>, %arg5: memref<3x3x128x128xbf16, #tpu.memory_space<vmem>>, %arg6: memref<1x128xf32, #tpu.memory_space<vmem>>, %arg7: memref<1x8x16x128xbf16, #tpu.memory_space<vmem>>) attributes {dimension_semantics = [#tpu.dimension_semantics<parallel>, #tpu.dimension_semantics<arbitrary>], iteration_bounds = array<i64: 2, 2>, scalar_prefetch = 0 : i64, scratch_operands = 0 : i64, tpu.core_type = #tpu.core_type<tc>, window_params = [{transform_indices = @transform_0, window_bounds = array<i64: 1, 22, 24, 128>}, {pipeline_mode = #tpu.pipeline_mode<synchronous>, transform_indices = @transform_1, window_bounds = array<i64: 3, 3, 128, 128>}, {pipeline_mode = #tpu.pipeline_mode<synchronous>, transform_indices = @transform_2, window_bounds = array<i64: 1, 128>}, {pipeline_mode = #tpu.pipeline_mode<synchronous>, transform_indices = @transform_3, window_bounds = array<i64: 3, 3, 128, 128>}, {pipeline_mode = #tpu.pipeline_mode<synchronous>, transform_indices = @transform_4, window_bounds = array<i64: 1, 128>}, {transform_indices = @transform_5, window_bounds = array<i64: 1, 8, 16, 128>}]} {
    %c8_i32 = arith.constant 8 : i32
    %0 = arith.muli %arg1, %c8_i32 : i32
    %c0 = arith.constant 0 : index
    %1 = arith.index_cast %0 : i32 to index
    %c0_0 = arith.constant 0 : index
    %c0_1 = arith.constant 0 : index
    %2 = vector.load %arg2[%c0, %1, %c0_0, %c0_1] : memref<1x22x24x128xbf16, #tpu.memory_space<vmem>>, vector<1x14x24x128xbf16>
    %3 = vector.shape_cast %2 : vector<1x14x24x128xbf16> to vector<14x24x128xbf16>
    %cst = arith.constant 0.000000e+00 : bf16
    %4 = vector.broadcast %cst : bf16 to vector<14x24x128xbf16>
    %5 = arith.maximumf %3, %4 : vector<14x24x128xbf16>
    %6 = vector.shape_cast %5 : vector<14x24x128xbf16> to vector<336x128xbf16>
    %cst_2 = arith.constant 0.000000e+00 : f32
    %7 = vector.broadcast %cst_2 : f32 to vector<264x128xf32>
    %8 = vector.extract_strided_slice %6 {offsets = [0, 0], sizes = [264, 128], strides = [1, 1]} : vector<336x128xbf16> to vector<264x128xbf16>
    %c0_3 = arith.constant 0 : index
    %c0_4 = arith.constant 0 : index
    %c0_5 = arith.constant 0 : index
    %c0_6 = arith.constant 0 : index
    %9 = vector.load %arg3[%c0_3, %c0_4, %c0_5, %c0_6] : memref<3x3x128x128xbf16, #tpu.memory_space<vmem>>, vector<1x1x128x128xbf16>
    %10 = vector.shape_cast %9 : vector<1x1x128x128xbf16> to vector<128x128xbf16>
    %cst_7 = arith.constant dense<0.000000e+00> : vector<264x128xf32>
    %11 = tpu.matmul %8, %10, %cst_7 {dimension_numbers = #tpu.dot_dimension_numbers<[1], [0], [0], [1], [0, 0, 1, 1], [], []>} : vector<264x128xbf16>, vector<128x128xbf16>, vector<264x128xf32> -> vector<264x128xf32>
    %12 = arith.addf %7, %11 : vector<264x128xf32>
    %13 = vector.extract_strided_slice %6 {offsets = [1, 0], sizes = [264, 128], strides = [1, 1]} : vector<336x128xbf16> to vector<264x128xbf16>
    %c0_8 = arith.constant 0 : index
    %c1 = arith.constant 1 : index
    %c0_9 = arith.constant 0 : index
    %c0_10 = arith.constant 0 : index
    %14 = vector.load %arg3[%c0_8, %c1, %c0_9, %c0_10] : memref<3x3x128x128xbf16, #tpu.memory_space<vmem>>, vector<1x1x128x128xbf16>
    %15 = vector.shape_cast %14 : vector<1x1x128x128xbf16> to vector<128x128xbf16>
    %cst_11 = arith.constant dense<0.000000e+00> : vector<264x128xf32>
    %16 = tpu.matmul %13, %15, %cst_11 {dimension_numbers = #tpu.dot_dimension_numbers<[1], [0], [0], [1], [0, 0, 1, 1], [], []>} : vector<264x128xbf16>, vector<128x128xbf16>, vector<264x128xf32> -> vector<264x128xf32>
    %17 = arith.addf %12, %16 : vector<264x128xf32>
    %18 = vector.extract_strided_slice %6 {offsets = [2, 0], sizes = [264, 128], strides = [1, 1]} : vector<336x128xbf16> to vector<264x128xbf16>
    %c0_12 = arith.constant 0 : index
    %c2 = arith.constant 2 : index
    %c0_13 = arith.constant 0 : index
    %c0_14 = arith.constant 0 : index
    %19 = vector.load %arg3[%c0_12, %c2, %c0_13, %c0_14] : memref<3x3x128x128xbf16, #tpu.memory_space<vmem>>, vector<1x1x128x128xbf16>
    %20 = vector.shape_cast %19 : vector<1x1x128x128xbf16> to vector<128x128xbf16>
    %cst_15 = arith.constant dense<0.000000e+00> : vector<264x128xf32>
    %21 = tpu.matmul %18, %20, %cst_15 {dimension_numbers = #tpu.dot_dimension_numbers<[1], [0], [0], [1], [0, 0, 1, 1], [], []>} : vector<264x128xbf16>, vector<128x128xbf16>, vector<264x128xf32> -> vector<264x128xf32>
    %22 = arith.addf %17, %21 : vector<264x128xf32>
    %23 = vector.extract_strided_slice %6 {offsets = [24, 0], sizes = [264, 128], strides = [1, 1]} : vector<336x128xbf16> to vector<264x128xbf16>
    %c1_16 = arith.constant 1 : index
    %c0_17 = arith.constant 0 : index
    %c0_18 = arith.constant 0 : index
    %c0_19 = arith.constant 0 : index
    %24 = vector.load %arg3[%c1_16, %c0_17, %c0_18, %c0_19] : memref<3x3x128x128xbf16, #tpu.memory_space<vmem>>, vector<1x1x128x128xbf16>
    %25 = vector.shape_cast %24 : vector<1x1x128x128xbf16> to vector<128x128xbf16>
    %cst_20 = arith.constant dense<0.000000e+00> : vector<264x128xf32>
    %26 = tpu.matmul %23, %25, %cst_20 {dimension_numbers = #tpu.dot_dimension_numbers<[1], [0], [0], [1], [0, 0, 1, 1], [], []>} : vector<264x128xbf16>, vector<128x128xbf16>, vector<264x128xf32> -> vector<264x128xf32>
    %27 = arith.addf %22, %26 : vector<264x128xf32>
    %28 = vector.extract_strided_slice %6 {offsets = [25, 0], sizes = [264, 128], strides = [1, 1]} : vector<336x128xbf16> to vector<264x128xbf16>
    %c1_21 = arith.constant 1 : index
    %c1_22 = arith.constant 1 : index
    %c0_23 = arith.constant 0 : index
    %c0_24 = arith.constant 0 : index
    %29 = vector.load %arg3[%c1_21, %c1_22, %c0_23, %c0_24] : memref<3x3x128x128xbf16, #tpu.memory_space<vmem>>, vector<1x1x128x128xbf16>
    %30 = vector.shape_cast %29 : vector<1x1x128x128xbf16> to vector<128x128xbf16>
    %cst_25 = arith.constant dense<0.000000e+00> : vector<264x128xf32>
    %31 = tpu.matmul %28, %30, %cst_25 {dimension_numbers = #tpu.dot_dimension_numbers<[1], [0], [0], [1], [0, 0, 1, 1], [], []>} : vector<264x128xbf16>, vector<128x128xbf16>, vector<264x128xf32> -> vector<264x128xf32>
    %32 = arith.addf %27, %31 : vector<264x128xf32>
    %33 = vector.extract_strided_slice %6 {offsets = [26, 0], sizes = [264, 128], strides = [1, 1]} : vector<336x128xbf16> to vector<264x128xbf16>
    %c1_26 = arith.constant 1 : index
    %c2_27 = arith.constant 2 : index
    %c0_28 = arith.constant 0 : index
    %c0_29 = arith.constant 0 : index
    %34 = vector.load %arg3[%c1_26, %c2_27, %c0_28, %c0_29] : memref<3x3x128x128xbf16, #tpu.memory_space<vmem>>, vector<1x1x128x128xbf16>
    %35 = vector.shape_cast %34 : vector<1x1x128x128xbf16> to vector<128x128xbf16>
    %cst_30 = arith.constant dense<0.000000e+00> : vector<264x128xf32>
    %36 = tpu.matmul %33, %35, %cst_30 {dimension_numbers = #tpu.dot_dimension_numbers<[1], [0], [0], [1], [0, 0, 1, 1], [], []>} : vector<264x128xbf16>, vector<128x128xbf16>, vector<264x128xf32> -> vector<264x128xf32>
    %37 = arith.addf %32, %36 : vector<264x128xf32>
    %38 = vector.extract_strided_slice %6 {offsets = [48, 0], sizes = [264, 128], strides = [1, 1]} : vector<336x128xbf16> to vector<264x128xbf16>
    %c2_31 = arith.constant 2 : index
    %c0_32 = arith.constant 0 : index
    %c0_33 = arith.constant 0 : index
    %c0_34 = arith.constant 0 : index
    %39 = vector.load %arg3[%c2_31, %c0_32, %c0_33, %c0_34] : memref<3x3x128x128xbf16, #tpu.memory_space<vmem>>, vector<1x1x128x128xbf16>
    %40 = vector.shape_cast %39 : vector<1x1x128x128xbf16> to vector<128x128xbf16>
    %cst_35 = arith.constant dense<0.000000e+00> : vector<264x128xf32>
    %41 = tpu.matmul %38, %40, %cst_35 {dimension_numbers = #tpu.dot_dimension_numbers<[1], [0], [0], [1], [0, 0, 1, 1], [], []>} : vector<264x128xbf16>, vector<128x128xbf16>, vector<264x128xf32> -> vector<264x128xf32>
    %42 = arith.addf %37, %41 : vector<264x128xf32>
    %43 = vector.extract_strided_slice %6 {offsets = [49, 0], sizes = [264, 128], strides = [1, 1]} : vector<336x128xbf16> to vector<264x128xbf16>
    %c2_36 = arith.constant 2 : index
    %c1_37 = arith.constant 1 : index
    %c0_38 = arith.constant 0 : index
    %c0_39 = arith.constant 0 : index
    %44 = vector.load %arg3[%c2_36, %c1_37, %c0_38, %c0_39] : memref<3x3x128x128xbf16, #tpu.memory_space<vmem>>, vector<1x1x128x128xbf16>
    %45 = vector.shape_cast %44 : vector<1x1x128x128xbf16> to vector<128x128xbf16>
    %cst_40 = arith.constant dense<0.000000e+00> : vector<264x128xf32>
    %46 = tpu.matmul %43, %45, %cst_40 {dimension_numbers = #tpu.dot_dimension_numbers<[1], [0], [0], [1], [0, 0, 1, 1], [], []>} : vector<264x128xbf16>, vector<128x128xbf16>, vector<264x128xf32> -> vector<264x128xf32>
    %47 = arith.addf %42, %46 : vector<264x128xf32>
    %48 = vector.extract_strided_slice %6 {offsets = [50, 0], sizes = [264, 128], strides = [1, 1]} : vector<336x128xbf16> to vector<264x128xbf16>
    %c2_41 = arith.constant 2 : index
    %c2_42 = arith.constant 2 : index
    %c0_43 = arith.constant 0 : index
    %c0_44 = arith.constant 0 : index
    %49 = vector.load %arg3[%c2_41, %c2_42, %c0_43, %c0_44] : memref<3x3x128x128xbf16, #tpu.memory_space<vmem>>, vector<1x1x128x128xbf16>
    %50 = vector.shape_cast %49 : vector<1x1x128x128xbf16> to vector<128x128xbf16>
    %cst_45 = arith.constant dense<0.000000e+00> : vector<264x128xf32>
    %51 = tpu.matmul %48, %50, %cst_45 {dimension_numbers = #tpu.dot_dimension_numbers<[1], [0], [0], [1], [0, 0, 1, 1], [], []>} : vector<264x128xbf16>, vector<128x128xbf16>, vector<264x128xf32> -> vector<264x128xf32>
    %52 = arith.addf %47, %51 : vector<264x128xf32>
    %c0_46 = arith.constant 0 : index
    %c0_47 = arith.constant 0 : index
    %53 = vector.load %arg4[%c0_46, %c0_47] : memref<1x128xf32, #tpu.memory_space<vmem>>, vector<1x128xf32>
    %54 = vector.shape_cast %53 : vector<1x128xf32> to vector<128xf32>
    %55 = vector.shape_cast %54 : vector<128xf32> to vector<1x128xf32>
    %56 = vector.broadcast %55 : vector<1x128xf32> to vector<264x128xf32>
    %57 = arith.addf %52, %56 : vector<264x128xf32>
    %cst_48 = arith.constant 0.000000e+00 : f32
    %58 = vector.broadcast %cst_48 : f32 to vector<264x128xf32>
    %59 = arith.maximumf %57, %58 : vector<264x128xf32>
    %60 = vector.shape_cast %59 : vector<264x128xf32> to vector<11x24x128xf32>
    %61 = tpu.iota {dimensions = array<i32: 0>} : vector<11x24x1xi32>
    %62 = tpu.iota {dimensions = array<i32: 1>} : vector<11x24x1xi32>
    %c1_i32 = arith.constant 1 : i32
    %63 = arith.subi %0, %c1_i32 : i32
    %64 = vector.broadcast %63 : i32 to vector<11x24x1xi32>
    %65 = arith.addi %64, %61 : vector<11x24x1xi32>
    %c0_i32 = arith.constant 0 : i32
    %66 = vector.broadcast %c0_i32 : i32 to vector<11x24x1xi32>
    %67 = arith.cmpi sge, %65, %66 : vector<11x24x1xi32>
    %c16_i32 = arith.constant 16 : i32
    %68 = vector.broadcast %c16_i32 : i32 to vector<11x24x1xi32>
    %69 = arith.cmpi slt, %65, %68 : vector<11x24x1xi32>
    %70 = arith.andi %67, %69 : vector<11x24x1xi1>
    %c1_i32_49 = arith.constant 1 : i32
    %71 = vector.broadcast %c1_i32_49 : i32 to vector<11x24x1xi32>
    %72 = arith.cmpi sge, %62, %71 : vector<11x24x1xi32>
    %73 = arith.andi %70, %72 : vector<11x24x1xi1>
    %c16_i32_50 = arith.constant 16 : i32
    %74 = vector.broadcast %c16_i32_50 : i32 to vector<11x24x1xi32>
    %75 = arith.cmpi sle, %62, %74 : vector<11x24x1xi32>
    %76 = arith.andi %73, %75 : vector<11x24x1xi1>
    %cst_51 = arith.constant 0.000000e+00 : f32
    %77 = vector.shape_cast %76 : vector<11x24x1xi1> to vector<11x24x1xi1>
    %78 = vector.broadcast %77 : vector<11x24x1xi1> to vector<11x24x128xi1>
    %79 = vector.broadcast %cst_51 : f32 to vector<11x24x128xf32>
    %80 = arith.select %78, %60, %79 : vector<11x24x128xi1>, vector<11x24x128xf32>
    %81 = arith.truncf %80 : vector<11x24x128xf32> to vector<11x24x128xbf16>
    %82 = vector.shape_cast %81 : vector<11x24x128xbf16> to vector<264x128xbf16>
    %cst_52 = arith.constant 0.000000e+00 : f32
    %83 = vector.broadcast %cst_52 : f32 to vector<192x128xf32>
    %84 = vector.extract_strided_slice %82 {offsets = [0, 0], sizes = [192, 128], strides = [1, 1]} : vector<264x128xbf16> to vector<192x128xbf16>
    %c0_53 = arith.constant 0 : index
    %c0_54 = arith.constant 0 : index
    %c0_55 = arith.constant 0 : index
    %c0_56 = arith.constant 0 : index
    %85 = vector.load %arg5[%c0_53, %c0_54, %c0_55, %c0_56] : memref<3x3x128x128xbf16, #tpu.memory_space<vmem>>, vector<1x1x128x128xbf16>
    %86 = vector.shape_cast %85 : vector<1x1x128x128xbf16> to vector<128x128xbf16>
    %cst_57 = arith.constant dense<0.000000e+00> : vector<192x128xf32>
    %87 = tpu.matmul %84, %86, %cst_57 {dimension_numbers = #tpu.dot_dimension_numbers<[1], [0], [0], [1], [0, 0, 1, 1], [], []>} : vector<192x128xbf16>, vector<128x128xbf16>, vector<192x128xf32> -> vector<192x128xf32>
    %88 = arith.addf %83, %87 : vector<192x128xf32>
    %89 = vector.extract_strided_slice %82 {offsets = [1, 0], sizes = [192, 128], strides = [1, 1]} : vector<264x128xbf16> to vector<192x128xbf16>
    %c0_58 = arith.constant 0 : index
    %c1_59 = arith.constant 1 : index
    %c0_60 = arith.constant 0 : index
    %c0_61 = arith.constant 0 : index
    %90 = vector.load %arg5[%c0_58, %c1_59, %c0_60, %c0_61] : memref<3x3x128x128xbf16, #tpu.memory_space<vmem>>, vector<1x1x128x128xbf16>
    %91 = vector.shape_cast %90 : vector<1x1x128x128xbf16> to vector<128x128xbf16>
    %cst_62 = arith.constant dense<0.000000e+00> : vector<192x128xf32>
    %92 = tpu.matmul %89, %91, %cst_62 {dimension_numbers = #tpu.dot_dimension_numbers<[1], [0], [0], [1], [0, 0, 1, 1], [], []>} : vector<192x128xbf16>, vector<128x128xbf16>, vector<192x128xf32> -> vector<192x128xf32>
    %93 = arith.addf %88, %92 : vector<192x128xf32>
    %94 = vector.extract_strided_slice %82 {offsets = [2, 0], sizes = [192, 128], strides = [1, 1]} : vector<264x128xbf16> to vector<192x128xbf16>
    %c0_63 = arith.constant 0 : index
    %c2_64 = arith.constant 2 : index
    %c0_65 = arith.constant 0 : index
    %c0_66 = arith.constant 0 : index
    %95 = vector.load %arg5[%c0_63, %c2_64, %c0_65, %c0_66] : memref<3x3x128x128xbf16, #tpu.memory_space<vmem>>, vector<1x1x128x128xbf16>
    %96 = vector.shape_cast %95 : vector<1x1x128x128xbf16> to vector<128x128xbf16>
    %cst_67 = arith.constant dense<0.000000e+00> : vector<192x128xf32>
    %97 = tpu.matmul %94, %96, %cst_67 {dimension_numbers = #tpu.dot_dimension_numbers<[1], [0], [0], [1], [0, 0, 1, 1], [], []>} : vector<192x128xbf16>, vector<128x128xbf16>, vector<192x128xf32> -> vector<192x128xf32>
    %98 = arith.addf %93, %97 : vector<192x128xf32>
    %99 = vector.extract_strided_slice %82 {offsets = [24, 0], sizes = [192, 128], strides = [1, 1]} : vector<264x128xbf16> to vector<192x128xbf16>
    %c1_68 = arith.constant 1 : index
    %c0_69 = arith.constant 0 : index
    %c0_70 = arith.constant 0 : index
    %c0_71 = arith.constant 0 : index
    %100 = vector.load %arg5[%c1_68, %c0_69, %c0_70, %c0_71] : memref<3x3x128x128xbf16, #tpu.memory_space<vmem>>, vector<1x1x128x128xbf16>
    %101 = vector.shape_cast %100 : vector<1x1x128x128xbf16> to vector<128x128xbf16>
    %cst_72 = arith.constant dense<0.000000e+00> : vector<192x128xf32>
    %102 = tpu.matmul %99, %101, %cst_72 {dimension_numbers = #tpu.dot_dimension_numbers<[1], [0], [0], [1], [0, 0, 1, 1], [], []>} : vector<192x128xbf16>, vector<128x128xbf16>, vector<192x128xf32> -> vector<192x128xf32>
    %103 = arith.addf %98, %102 : vector<192x128xf32>
    %104 = vector.extract_strided_slice %82 {offsets = [25, 0], sizes = [192, 128], strides = [1, 1]} : vector<264x128xbf16> to vector<192x128xbf16>
    %c1_73 = arith.constant 1 : index
    %c1_74 = arith.constant 1 : index
    %c0_75 = arith.constant 0 : index
    %c0_76 = arith.constant 0 : index
    %105 = vector.load %arg5[%c1_73, %c1_74, %c0_75, %c0_76] : memref<3x3x128x128xbf16, #tpu.memory_space<vmem>>, vector<1x1x128x128xbf16>
    %106 = vector.shape_cast %105 : vector<1x1x128x128xbf16> to vector<128x128xbf16>
    %cst_77 = arith.constant dense<0.000000e+00> : vector<192x128xf32>
    %107 = tpu.matmul %104, %106, %cst_77 {dimension_numbers = #tpu.dot_dimension_numbers<[1], [0], [0], [1], [0, 0, 1, 1], [], []>} : vector<192x128xbf16>, vector<128x128xbf16>, vector<192x128xf32> -> vector<192x128xf32>
    %108 = arith.addf %103, %107 : vector<192x128xf32>
    %109 = vector.extract_strided_slice %82 {offsets = [26, 0], sizes = [192, 128], strides = [1, 1]} : vector<264x128xbf16> to vector<192x128xbf16>
    %c1_78 = arith.constant 1 : index
    %c2_79 = arith.constant 2 : index
    %c0_80 = arith.constant 0 : index
    %c0_81 = arith.constant 0 : index
    %110 = vector.load %arg5[%c1_78, %c2_79, %c0_80, %c0_81] : memref<3x3x128x128xbf16, #tpu.memory_space<vmem>>, vector<1x1x128x128xbf16>
    %111 = vector.shape_cast %110 : vector<1x1x128x128xbf16> to vector<128x128xbf16>
    %cst_82 = arith.constant dense<0.000000e+00> : vector<192x128xf32>
    %112 = tpu.matmul %109, %111, %cst_82 {dimension_numbers = #tpu.dot_dimension_numbers<[1], [0], [0], [1], [0, 0, 1, 1], [], []>} : vector<192x128xbf16>, vector<128x128xbf16>, vector<192x128xf32> -> vector<192x128xf32>
    %113 = arith.addf %108, %112 : vector<192x128xf32>
    %114 = vector.extract_strided_slice %82 {offsets = [48, 0], sizes = [192, 128], strides = [1, 1]} : vector<264x128xbf16> to vector<192x128xbf16>
    %c2_83 = arith.constant 2 : index
    %c0_84 = arith.constant 0 : index
    %c0_85 = arith.constant 0 : index
    %c0_86 = arith.constant 0 : index
    %115 = vector.load %arg5[%c2_83, %c0_84, %c0_85, %c0_86] : memref<3x3x128x128xbf16, #tpu.memory_space<vmem>>, vector<1x1x128x128xbf16>
    %116 = vector.shape_cast %115 : vector<1x1x128x128xbf16> to vector<128x128xbf16>
    %cst_87 = arith.constant dense<0.000000e+00> : vector<192x128xf32>
    %117 = tpu.matmul %114, %116, %cst_87 {dimension_numbers = #tpu.dot_dimension_numbers<[1], [0], [0], [1], [0, 0, 1, 1], [], []>} : vector<192x128xbf16>, vector<128x128xbf16>, vector<192x128xf32> -> vector<192x128xf32>
    %118 = arith.addf %113, %117 : vector<192x128xf32>
    %119 = vector.extract_strided_slice %82 {offsets = [49, 0], sizes = [192, 128], strides = [1, 1]} : vector<264x128xbf16> to vector<192x128xbf16>
    %c2_88 = arith.constant 2 : index
    %c1_89 = arith.constant 1 : index
    %c0_90 = arith.constant 0 : index
    %c0_91 = arith.constant 0 : index
    %120 = vector.load %arg5[%c2_88, %c1_89, %c0_90, %c0_91] : memref<3x3x128x128xbf16, #tpu.memory_space<vmem>>, vector<1x1x128x128xbf16>
    %121 = vector.shape_cast %120 : vector<1x1x128x128xbf16> to vector<128x128xbf16>
    %cst_92 = arith.constant dense<0.000000e+00> : vector<192x128xf32>
    %122 = tpu.matmul %119, %121, %cst_92 {dimension_numbers = #tpu.dot_dimension_numbers<[1], [0], [0], [1], [0, 0, 1, 1], [], []>} : vector<192x128xbf16>, vector<128x128xbf16>, vector<192x128xf32> -> vector<192x128xf32>
    %123 = arith.addf %118, %122 : vector<192x128xf32>
    %124 = vector.extract_strided_slice %82 {offsets = [50, 0], sizes = [192, 128], strides = [1, 1]} : vector<264x128xbf16> to vector<192x128xbf16>
    %c2_93 = arith.constant 2 : index
    %c2_94 = arith.constant 2 : index
    %c0_95 = arith.constant 0 : index
    %c0_96 = arith.constant 0 : index
    %125 = vector.load %arg5[%c2_93, %c2_94, %c0_95, %c0_96] : memref<3x3x128x128xbf16, #tpu.memory_space<vmem>>, vector<1x1x128x128xbf16>
    %126 = vector.shape_cast %125 : vector<1x1x128x128xbf16> to vector<128x128xbf16>
    %cst_97 = arith.constant dense<0.000000e+00> : vector<192x128xf32>
    %127 = tpu.matmul %124, %126, %cst_97 {dimension_numbers = #tpu.dot_dimension_numbers<[1], [0], [0], [1], [0, 0, 1, 1], [], []>} : vector<192x128xbf16>, vector<128x128xbf16>, vector<192x128xf32> -> vector<192x128xf32>
    %128 = arith.addf %123, %127 : vector<192x128xf32>
    %129 = vector.extract_strided_slice %6 {offsets = [50, 0], sizes = [192, 128], strides = [1, 1]} : vector<336x128xbf16> to vector<192x128xbf16>
    %130 = arith.extf %129 : vector<192x128xbf16> to vector<192x128xf32>
    %c0_98 = arith.constant 0 : index
    %c0_99 = arith.constant 0 : index
    %131 = vector.load %arg6[%c0_98, %c0_99] : memref<1x128xf32, #tpu.memory_space<vmem>>, vector<1x128xf32>
    %132 = vector.shape_cast %131 : vector<1x128xf32> to vector<128xf32>
    %133 = vector.shape_cast %132 : vector<128xf32> to vector<1x128xf32>
    %134 = vector.broadcast %133 : vector<1x128xf32> to vector<192x128xf32>
    %135 = arith.addf %128, %134 : vector<192x128xf32>
    %136 = arith.addf %135, %130 : vector<192x128xf32>
    %137 = vector.shape_cast %136 : vector<192x128xf32> to vector<8x24x128xf32>
    %138 = vector.extract_strided_slice %137 {offsets = [0, 0, 0], sizes = [8, 16, 128], strides = [1, 1, 1]} : vector<8x24x128xf32> to vector<8x16x128xf32>
    %139 = arith.truncf %138 : vector<8x16x128xf32> to vector<8x16x128xbf16>
    %c0_100 = arith.constant 0 : index
    %c0_101 = arith.constant 0 : index
    %c0_102 = arith.constant 0 : index
    %c0_103 = arith.constant 0 : index
    %140 = vector.load %arg7[%c0_100, %c0_101, %c0_102, %c0_103] : memref<1x8x16x128xbf16, #tpu.memory_space<vmem>>, vector<1x8x16x128xbf16>
    %141 = vector.shape_cast %140 : vector<1x8x16x128xbf16> to vector<8x16x128xbf16>
    %142 = vector.shape_cast %139 : vector<8x16x128xbf16> to vector<1x8x16x128xbf16>
    tpu.vector_store %arg7[%c0_100, %c0_101, %c0_102, %c0_103], %142 {strides = array<i32>} : memref<1x8x16x128xbf16, #tpu.memory_space<vmem>>, vector<1x8x16x128xbf16>,
    return
  }
  func.func @transform_0(%arg0: i32, %arg1: i32) -> (i32, i32, i32, i32) {
    %c0_i32 = arith.constant 0 : i32
    %c0_i32_0 = arith.constant 0 : i32
    %c0_i32_1 = arith.constant 0 : i32
    %c0_i32_2 = arith.constant 0 : i32
    return %arg0, %c0_i32, %c0_i32_0, %c0_i32_1 : i32, i32, i32, i32
  }
  func.func @transform_1(%arg0: i32, %arg1: i32) -> (i32, i32, i32, i32) {
    %c0_i32 = arith.constant 0 : i32
    %c0_i32_0 = arith.constant 0 : i32
    %c0_i32_1 = arith.constant 0 : i32
    %c0_i32_2 = arith.constant 0 : i32
    %c0_i32_3 = arith.constant 0 : i32
    return %c0_i32, %c0_i32_0, %c0_i32_1, %c0_i32_2 : i32, i32, i32, i32
  }
  func.func @transform_2(%arg0: i32, %arg1: i32) -> (i32, i32) {
    %c0_i32 = arith.constant 0 : i32
    %c0_i32_0 = arith.constant 0 : i32
    %c0_i32_1 = arith.constant 0 : i32
    return %c0_i32, %c0_i32_0 : i32, i32
  }
  func.func @transform_3(%arg0: i32, %arg1: i32) -> (i32, i32, i32, i32) {
    %c0_i32 = arith.constant 0 : i32
    %c0_i32_0 = arith.constant 0 : i32
    %c0_i32_1 = arith.constant 0 : i32
    %c0_i32_2 = arith.constant 0 : i32
    %c0_i32_3 = arith.constant 0 : i32
    return %c0_i32, %c0_i32_0, %c0_i32_1, %c0_i32_2 : i32, i32, i32, i32
  }
  func.func @transform_4(%arg0: i32, %arg1: i32) -> (i32, i32) {
    %c0_i32 = arith.constant 0 : i32
    %c0_i32_0 = arith.constant 0 : i32
    %c0_i32_1 = arith.constant 0 : i32
    return %c0_i32, %c0_i32_0 : i32, i32
  }
  func.func @transform_5(%arg0: i32, %arg1: i32) -> (i32, i32, i32, i32) {
    %c0_i32 = arith.constant 0 : i32
    %c0_i32_0 = arith.constant 0 : i32
    %c0_i32_1 = arith.constant 0 : i32
    return %arg0, %arg1, %c0_i32, %c0_i32_0 : i32, i32, i32, i32
  }
}

</mosaic_0001>

<bundles_post_ra>
// kernel: tpu_custom_call.1
= control target key start
LH: loop header
LB: loop body
LE: loop exit
PB: predicated region body
PF: predicated region fallthrough
CT: control target
= control target key end

     0   :  { %s8561_s0 = inlined_call_operand.hbm [shape: bf16[2,22,24,128], index: 0, kind: input, shape index: {}]   ;;  %s8562_s1 = inlined_call_operand.hbm [shape: bf16[3,3,128,128], index: 1, kind: input, shape index: {}]   ;;  %s8563_s2 = inlined_call_operand.vmem [shape: f32[1,128], index: 2, kind: input, shape index: {}]   ;;  %s8564_s3 = inlined_call_operand.hbm [shape: bf16[3,3,128,128], index: 3, kind: input, shape index: {}]   ;;  %s8565_s4 = inlined_call_operand.vmem [shape: f32[1,128], index: 4, kind: input, shape index: {}]   ;;  %s8566_s5 = inlined_call_operand.hbm [shape: bf16[2,16,16,128], index: 5, kind: output, shape index: {}]  }
   0x1   :  { %8697 = sst [smem:[#allocation101_spill]] %s8562_s1 }
   0x2   :  { %8698 = sst [smem:[#allocation102_spill]] %s8564_s3 }
   0x3   :  { %8699 = sst [smem:[#allocation103_spill]] %s8566_s5 }
   0x4   :  { %10 = vsyncpa [#allocation3], 0 }
   0x5   :  { %12 = vsyncpa [#allocation3 + $0x1], 0 }
   0x6   :  { %13 = vsyncpa [#allocation6], 0 }
   0x7   :  { %14 = vsyncpa [#allocation4], 0 }
   0x8   :  { %16 = vsyncpa [#allocation4 + $0x1], 0  ;;  %s6286_s18 = smov 0   ;;  %s6288_s19 = smov 0  }
   0x9   :  { %s6290_s20 = smov 0   ;;  %s6292_s21 = smov 0  }
   0xa   :  { %s6294_s22 = smov 0   ;;  %s6296_s23 = smov 0  }
   0xb   :  { %s6298_s24 = smov 0   ;;  %s6300_s25 = smov 0  }
   0xc   :  { %s6302_s26 = smov 0   ;;  %s6304_s27 = smov 0  }
   0xd   :  { %s6306_s28 = smov 0  }
   0xe LB: > { %8700 = sst [smem:[#allocation12_spill]] %s6208_s18  ;;  %s4993_s29 = sadd.s32 4294967295, %s6248_s28   ;;  %s6248_s28 = sphi %s6306_s28, %s22_s28   ;;  %s6244_s27 = sphi %s6304_s27, %s9059_s27   ;;  %s6240_s26 = sphi %s6302_s26, %s9050_s26   ;;  %s6236_s25 = sphi %s6300_s25, %s9058_s25   ;;  %s6232_s24 = sphi %s6298_s24, %s9049_s24   ;;  %s6228_s23 = sphi %s6296_s23, %s9057_s23   ;;  %s6224_s22 = sphi %s6294_s22, %s9056_s22   ;;  %s6220_s21 = sphi %s6292_s21, %s9055_s21   ;;  %s6216_s20 = sphi %s6290_s20, %s9054_s20   ;;  %s6212_s19 = sphi %s6288_s19, %s9053_s19   ;;  %s6208_s18 = sphi %s6286_s18, %s9052_s18  }
   0xf   : > { %8701 = sst [smem:[#allocation13_spill]] %s6236_s25  ;;  %s4994_s30 = sadd.s32 4294967294, %s6248_s28  }
  0x10   : > { %8702 = sst [smem:[#allocation14_spill]] %s6240_s26  ;;  %p54_p0 = scmp.ne.s32.totalorder %s6224_s22, %s6220_s21 }
  0x11   : > { %p6342_p1 = scmp.eq.s32.totalorder %s4993_s29, 0  ;;  %p163_p2 = scmp.ne.s32.totalorder %s6216_s20, %s6212_s19 }
  0x12   : > { %p164_p3 = scmp.eq.s32.totalorder %s4993_s29, 3  ;;  %p169_p5 = scmp.ne.s32.totalorder %s6212_s19, %s6208_s18 }
  0x13   : > { %p6350_p4 = por %p6342_p1, %p54_p0  ;;  %p170_p7 = scmp.eq.s32.totalorder %s4994_s30, 3 }
  0x14   : > { %p6356_p6 = por %p164_p3, %p163_p2  ;;  %p4995_p8 = scmp.ge.s32.totalorder %s6248_s28, 1 }
  0x15   : > { %p177_p9 = scmp.lt.s32.totalorder %s6248_s28, 5  ;;  %p6362_p10 = por %p170_p7, %p169_p5 }
  0x16   : > { %s8705_s8 = scalar_select %p6356_p6, 1, 0 }
  0x17   : > { %s8707_s9 = scalar_select %p6362_p10, 1, 0 }
  0x18   : > { %8706 = sst [smem:[#allocation15_spill]] %s8705_s8  ;;  %p6366_p11 = pnand %p4995_p8, %p177_p9 }
  0x19   : > { %8708 = sst [smem:[#allocation16_spill]] %s8707_s9  ;;  %s6250_s14 = smov [#allocation5]  }
  0x1a   : > { %s8710_s1 = sld [smem:[#allocation101_spill]]  ;;  %p5914_p12 = pneg %p6366_p11 }
  0x1b   : > { %s190_s15 = sshll.u32 %s6250_s14, 4  ;;  %s8711_s3 = sld [smem:[#allocation102_spill]]  ;;  %s191_s15 = int_to_ptr.vmem [resolvable:$true] %s190_s15 }
  0x1c   : > { %p5915_p13 = pnand %p5914_p12, %p6342_p1  ;;  %s8567_s29 = smov 64  }
  0x1d   : > { %s8568_s30 = smov 4   ;;  %s6253_s11 = smov [#allocation7]  }
  0x1e   : > { %s207_s12 = sshll.u32 %s6253_s11, 4  ;;  %s31_s14 = sadd.s32 1, %s6240_s26  ;;  %s208_s12 = int_to_ptr.vmem [resolvable:$true] %s207_s12 }
  0x1f   : > { %p32_p0 = scmp.ge.s32.totalorder %s31_s14, 2  ;;  %s34_s16 = sadd.s32 1, %s6244_s27 }
  0x20   : > { %s188_s13 = sshll.u32 %s8710_s1, 4  ;;  %p48_p2 = scmp.ne.s32.totalorder %s6228_s23, %s6224_s22  ;;  %s189_s13 = int_to_ptr.hbm [resolvable:$true] %s188_s13 }
  0x21   : > { %s205_s21 = sshll.u32 %s8711_s3, 4  ;;  %s9061_s14 = smov (%p32_p0, %s31_s14), 0  ;;  %s206_s21 = int_to_ptr.hbm [resolvable:$true] %s205_s21 }
  0x22   : > { %5917 = dma.hbm_to_vmem [thread:$0]  (!%p5915_p13), %s189_s13, 9216, %s191_s15, [#allocation6], %s8567_s29, %s8567_s29, %s8568_s30  }
  0x23   : > { %5920 = dma.hbm_to_vmem [thread:$0]  (!%p5915_p13), %s206_s21, 9216, %s208_s12, [#allocation6], %s8567_s29, %s8567_s29, %s8568_s30  }
  0x24   : > { %8712 = sst [smem:[#allocation17_spill]] %s9061_s14  ;;  %s9063_s16 = smov (!%p32_p0, %s34_s16), %s6244_s27 }
  0x25   : > { %s41_s13 = sadd.s32 1, %s6228_s23  ;;  %p49_p3 = scmp.eq.s32.totalorder %s6248_s28, 0 }
  0x26   : > { %p36_p5 = scmp.ge.s32.totalorder %s9063_s16, 2  ;;  %s149_s15 = ssub.s32 %s6240_s26, %s9061_s14 }
  0x27   : > { %p6397_p7 = por %p49_p3, %p48_p2  ;;  %s153_s21 = sadd.s32 1, %s6216_s20 }
  0x28   : > { %s9065_s16 = smov (%p36_p5, %s9063_s16), 0  ;;  %p5931_p8 = scmp.lt.s32.totalorder %s6248_s28, 4 }
  0x29   : > { %8714 = sst [smem:[#allocation18_spill]] %s9065_s16  ;;  %s224_s11 = sand.u32 1, %s6228_s23  }
  0x2a   : > { %s38_s12 = ssub.s32 %s6244_s27, %s9065_s16  ;;  %s5900_s29 = smul.u32 264, %s6244_s27 }
  0x2b   : > { %p39_p9 = scmp.eq.s32.totalorder %s38_s12, 0  ;;  %s150_s30 = sor.u32 %s149_s15, %s38_s12 }
  0x2c   : > { %p151_p12 = scmp.eq.s32.totalorder %s150_s30, 0  ;;  %s5899_s1 = smul.u32 264, %s224_s11 }
  0x2d   : > { %s6410_s3 = scalar_select %p39_p9, %s6228_s23, %s41_s13  }
  0x2e   : > { %s6413_s14 = scalar_select %p151_p12, %s6216_s20, %s153_s21  }
  0x2f   : > { %s233_s18 = scalar_lea.hbm %s8561_s0, %s5900_s29  ;;  %s228_s5 = scalar_lea.vmem [#allocation2], %s5899_s1 }
  0x30   : > { %s234_s8 = sshll.u32 %s233_s18, 4  ;;  %s236_s25 = sshll.u32 %s228_s5, 4  ;;  %s235_s8 = int_to_ptr.hbm [resolvable:$true] %s234_s8  ;;  %s237_s25 = int_to_ptr.vmem [resolvable:$true] %s236_s25 }
  0x31   : > { %p5922_p13 = pnand %p5931_p8, %p6397_p7  ;;  %s225_s16 = scalar_lea.sflag [#allocation3], %s224_s11 }
  0x32   : > { %s8715_s15 = smov 4   ;;  %s8716_s30 = smov 64  }
  0x33   : > { %5924 = dma.hbm_to_vmem [thread:$0]  (!%p5922_p13), %s235_s8, 4224, %s237_s25, %s225_s16, %s8716_s30, %s8716_s30, %s8715_s15  }
  0x34   : > { %248 = sbr.rel (%p6366_p11) target bundleno = 1508 (0x5e4), region = 40 }
  0x39   : > { %s250_s26 = sand.u32 1, %s6224_s22  }
  0x3a   : > { %s5901_s9 = smul.u32 264, %s250_s26  ;;  %s251_s18 = scalar_lea.sflag [#allocation3], %s250_s26 }
  0x3c   : > { %s254_s1 = scalar_lea.vmem [#allocation2], %s5901_s9 }
  0x3d   : > { %6195 = dma.done.wait (%p6350_p4), %s251_s18, 4224  }
  0x3e   : > { %6197 = vsyncadd (%p6350_p4), %s251_s18, 4294963072 }
  0x3f   : > { %6199 = dma.done.wait (%p6342_p1), [#allocation6], 18432  }
  0x40   : > { %6201 = vsyncadd (%p6342_p1), [#allocation6], 4294948864  ;;  %v5607_v0 = vld [vmem:[#allocation5 + $0x78] sm:$0xff]  ;;  %s5591_s5 = smul.u32 96, %s6232_s24  ;;  %v5606_v3 = vld [vmem:[#allocation5 + $0x70] sm:$0xff]  ;;  %vm1041_vm1 = vcmask 1046528  }
  0x41   : > { %v5599_v1 = vld [vmem:[#allocation5 + $0x38] sm:$0xff]  ;;  %776 = vmatpush.bf16.msra.mxu0 %v5607_v0  ;;  %v5598_v4 = vld [vmem:[#allocation5 + $0x30] sm:$0xff]  ;;  %v5605_v6 = vld [vmem:[#allocation5 + $0x68] sm:$0xff]  ;;  %vm575_vm0 = vsmask.f32 7424  ;;  %s5004_s6 = sshll.u32 %s6232_s24, 3 }
  0x42   : > { %v6436_v2 = vld [vmem:[#allocation5 + $0xb8] sm:$0xff]  ;;  %933 = vmatpush.bf16.msra.mxu1 %v5599_v1  ;;  %5883 = vmatpush.bf16.msra.mxu3 %v5599_v1  ;;  %v6440_v5 = vld [vmem:[#allocation5 + $0xb0] sm:$0xff]  ;;  %s6442_s25 = scalar_lea.vmem %s254_s1, %s5591_s5 [#allocation2]  ;;  %v5597_v7 = vld [vmem:[#allocation5 + $0x28] sm:$0xff]  ;;  %s5295_s7 = sadd.s32 4294967295, %s5004_s6 }
  0x43   : > { %1140 = vmatpush.bf16.msra.mxu2 %v6436_v2  ;;  %v6445_v8 = vld [vmem:[#allocation5 + $0xa8] sm:$0xff]  ;;  %v5738_v9 = vld [vmem:[%s6442_s25] sm:$0xff]   ;;  %v5857_v10 = vld [vmem:[%s6442_s25 + $0x8] sm:$0xff]   ;;  %s289_s21 = sand.u32 1, %s6212_s19   ;;  %s9041_s15 = sld [smem:[#allocation13_spill]] }
  0x44   : > { %v5604_v11 = vld [vmem:[#allocation5 + $0x60] sm:$0xff]  ;;  %v5739_v12 = vunpack.c.l.bf16 %v5738_v9  ;;  %v5740_v13 = vunpack.c.h.bf16 %v5738_v9  ;;  %v5743_v14 = vunpack.c.l.bf16 %v5857_v10  ;;  %v5744_v15 = vunpack.c.h.bf16 %v5857_v10  ;;  %v5869_v16 = vld [vmem:[%s6442_s25 + $0x68] sm:$0xff]   ;;  %v5602_v41 = vld [vmem:[#allocation5 + $0x50] sm:$0xff]  ;;  %s5003_s11 = sshll.u32 %s289_s21, 6  ;;  %s5736_s30 = sshll.u32 %s6232_s24, 4 }
  0x45   : > { %777 = vmatpush.bf16.msra.mxu0 %v5606_v3  ;;  %v5596_v17 = vld [vmem:[#allocation5 + $0x20] sm:$0xff]  ;;  %v5791_v23 = vunpack.c.l.bf16 %v5869_v16  ;;  %v5603_v28 = vld [vmem:[#allocation5 + $0x58] sm:$0xff]  ;;  %v5792_v30 = vunpack.c.h.bf16 %v5869_v16  ;;  %v5594_v42 = vld [vmem:[#allocation5 + $0x10] sm:$0xff]  ;;  %s8413_s12 = scalar_lea.vmem [#allocation8], %s5003_s11  ;;  %s9045_s5 = sld [smem:[#allocation103_spill]] }
  0x46   : > { %934 = vmatpush.bf16.msra.mxu1 %v5598_v4  ;;  %5884 = vmatpush.bf16.msra.mxu3 %v5598_v4  ;;  %v6451_v18 = vld [vmem:[#allocation5 + $0xa0] sm:$0xff]  ;;  %v377_v19 = vmax.f32 %v5739_v12, 0.0  ;;  %v378_v20 = vmax.f32 %v5740_v13, 0.0  ;;  %v379_v21 = vmax.f32 %v5743_v14, 0.0  ;;  %v380_v22 = vmax.f32 %v5744_v15, 0.0  ;;  %v5595_v29 = vld [vmem:[#allocation5 + $0x18] sm:$0xff] }
  0x47   : > { %1141 = vmatpush.bf16.msra.mxu2 %v6440_v5  ;;  %v5858_v31 = vld [vmem:[%s6442_s25 + $0x10] sm:$0xff]   ;;  %v6455_v32 = vld [vmem:[#allocation5 + $0x98] sm:$0xff]  ;;  %v403_v38 = vmax.f32 %v5791_v23, 0.0  ;;  %v404_v44 = vmax.f32 %v5792_v30, 0.0  ;;  %v6463_v45 = vld [vmem:[#allocation5 + $0x90] sm:$0xff]  ;;  %s4867_s10 = scalar_lea.sflag [#allocation4], %s289_s21 }
  0x48   : > { %v417_v24 = vpack.c.bf16 %v377_v19, %v377_v19  ;;  %v418_v25 = vpack.c.bf16 %v378_v20, %v378_v20  ;;  %v419_v26 = vpack.c.bf16 %v379_v21, %v379_v21  ;;  %v420_v27 = vpack.c.bf16 %v380_v22, %v380_v22  ;;  %v5601_v50 = vld [vmem:[#allocation5 + $0x48] sm:$0xff]  ;;  %v5600_v59 = vld [vmem:[#allocation5 + $0x40] sm:$0xff]  ;;  %v5630_v23 = vld [vmem:[#allocation5 + $0x130] sm:$0xff] }
  0x49   : > { %778 = vmatpush.bf16.msra.mxu0 %v5605_v6  ;;  %v5747_v39 = vunpack.c.l.bf16 %v5858_v31  ;;  %v5748_v40 = vunpack.c.h.bf16 %v5858_v31  ;;  %v6465_v47 = vpack.c.bf16 %v403_v38, %v403_v38  ;;  %v5593_v51 = vld [vmem:[#allocation5 + $0x8] sm:$0xff]  ;;  %v6468_v55 = vpack.c.bf16 %v404_v44, %v404_v44  ;;  %v5592_v60 = vld [vmem:[#allocation5] sm:$0xff]  ;;  %s5587_s26 = sshll.u32 %s9041_s15, 5 }
  0x4a   : > { %935 = vmatpush.bf16.msra.mxu1 %v5597_v7  ;;  %5885 = vmatpush.bf16.msra.mxu3 %v5597_v7  ;;  %v524_v33 = vunpack.c.l.b16 %v417_v24  ;;  %v525_v34 = vunpack.c.l.b16 %v418_v25  ;;  %v526_v35 = vunpack.c.l.b16 %v419_v26  ;;  %v6457_v36 = vunpack.c.l.b16 %v420_v27  ;;  %v6471_v56 = vld [vmem:[#allocation5 + $0x88] sm:$0xff]  ;;  %v5870_v1 = vld [vmem:[%s6442_s25 + $0x70] sm:$0xff]   ;;  %v5631_v7 = vld [vmem:[#allocation5 + $0x138] sm:$0xff]  ;;  %s4879_s9 = sadd.s32 %s5736_s30, %s5587_s26 }
  0x4b   : > { %1142 = vmatpush.bf16.msra.mxu2 %v6445_v8  ;;  %8717 = vst [vmem:[#allocation19_spill] sm:$0xff] %v6465_v47  ;;  %v381_v48 = vmax.f32 %v5747_v39, 0.0  ;;  %v382_v49 = vmax.f32 %v5748_v40, 0.0  ;;  %v8580_v57 = vunpack.c.l.b16 %v6465_v47  ;;  %v8579_v63 = vunpack.c.l.b16 %v6468_v55  ;;  %v6477_v3 = vld [vmem:[#allocation5 + $0x80] sm:$0xff]  ;;  %v5859_v16 = vld [vmem:[%s6442_s25 + $0x18] sm:$0xff]   ;;  %s5588_s18 = sshll.u32 %s4879_s9, 2 }
  0x4c   : > { %v558_v37 = vpack.c.b16 %v525_v34, %v524_v33  ;;  %v6460_v43 = vpack.c.b16 %v6457_v36, %v526_v35  ;;  %8718 = vst [vmem:[#allocation20_spill] sm:$0xff] %v6468_v55  ;;  %v5795_v10 = vunpack.c.l.bf16 %v5870_v1  ;;  %v5796_v14 = vunpack.c.h.bf16 %v5870_v1  ;;  %v5871_v35 = vld [vmem:[%s6442_s25 + $0x78] sm:$0xff]   ;;  %s6142_s11 = scalar_lea.hbm %s9045_s5, 256 }
  0x4d   : > { %779 = vmatpush.bf16.msra.mxu0 %v5604_v11  ;;  %v421_v58 = vpack.c.bf16 %v381_v48, %v381_v48  ;;  %v422_v0 = vpack.c.bf16 %v382_v49, %v382_v49  ;;  %v6487_v12 = vpack.c.b16 %v8579_v63, %v8580_v57  ;;  %v5751_v21 = vunpack.c.l.bf16 %v5859_v16  ;;  %v5617_v63 = vld [vmem:[#allocation5 + $0xc8] sm:$0xff] }
  0x4e   : > { %936 = vmatpush.bf16.msra.mxu1 %v5596_v17  ;;  %5886 = vmatpush.bf16.msra.mxu3 %v5596_v17  ;;  %v579_v46 = vshll.u32 %v558_v37, 16  ;;  %v577_v52 = vshrl.u32 %v558_v37, 16  ;;  %v584_v54 = vshll.u32 %v6460_v43, 16  ;;  %v1042_v4 = vrot.slane %v558_v37, 1 }
  0x4f   : > { %1143 = vmatpush.bf16.msra.mxu2 %v6451_v18  ;;  %v1043_v6 = vrot.slane %v6460_v43, 1  ;;  %v6480_v9 = vunpack.c.l.b16 %v421_v58  ;;  %8719 = vst [vmem:[#allocation21_spill] sm:$0xff] %v6487_v12  ;;  %v6489_v13 = vunpack.c.l.b16 %v422_v0  ;;  %v405_v17 = vmax.f32 %v5795_v10, 0.0 }
  0x50   : > { %v581_v53 = vrot.slane %v579_v46, 1  ;;  %v586_v62 = vrot.slane %v584_v54, 1  ;;  %v406_v20 = vmax.f32 %v5796_v14, 0.0  ;;  %v5752_v22 = vunpack.c.h.bf16 %v5859_v16  ;;  %v5860_v46 = vld [vmem:[%s6442_s25 + $0x20] sm:$0xff]  }
  0x51   : > { %780 = vmatpush.bf16.msra.mxu0 %v5603_v28  ;;  %v1044_v15 = vsel %vm1041_vm1, %v1042_v4, %v1043_v6  ;;  %v6498_v19 = vpack.c.b16 %v6489_v13, %v6480_v9  ;;  %v6502_v24 = vpack.c.bf16 %v405_v17, %v405_v17  ;;  %v383_v27 = vmax.f32 %v5751_v21, 0.0  ;;  %v6551_v4 = vld [vmem:[%s6442_s25 + $0x80] sm:$0xff]   ;;  %v5629_v21 = vld [vmem:[#allocation5 + $0x128] sm:$0xff] }
  0x52   : > { %937 = vmatpush.bf16.msra.mxu1 %v5595_v29  ;;  %5887 = vmatpush.bf16.msra.mxu3 %v5595_v29  ;;  %v582_v61 = vor.u32 %v581_v53, %v577_v52  ;;  %v6505_v26 = vpack.c.bf16 %v406_v20, %v406_v20  ;;  %v384_v28 = vmax.f32 %v5752_v22, 0.0  ;;  %v5799_v38 = vunpack.c.l.bf16 %v5871_v35 }
  0x53   : > { %1144 = vmatpush.bf16.msra.mxu2 %v6455_v32  ;;  %8720 = vst [vmem:[#allocation22_spill] sm:$0xff] %v6502_v24  ;;  %v592_v25 = vshll.u32 %v6498_v19, 16  ;;  %v8578_v30 = vunpack.c.l.b16 %v6502_v24  ;;  %v5800_v39 = vunpack.c.h.bf16 %v5871_v35 }
  0x54   : > { %v587_v11 = vsel %vm575_vm0, %v582_v61, %v586_v62  ;;  %8721 = vst [vmem:[#allocation23_spill] sm:$0xff] %v6505_v26  ;;  %v8577_v33 = vunpack.c.l.b16 %v6505_v26  ;;  %v6512_v34 = vpack.c.bf16 %v384_v28, %v384_v28 }
  0x55   : > { %781 = vmatpush.bf16.msra.mxu0 %v5602_v41  ;;  %v594_v31 = vrot.slane %v592_v25, 1  ;;  %v408_v48 = vmax.f32 %v5800_v39, 0.0 }
  0x56   : > { %938 = vmatpush.bf16.msra.mxu1 %v5594_v42  ;;  %5888 = vmatpush.bf16.msra.mxu3 %v5594_v42  ;;  %8723 = vst [vmem:[#allocation25_spill] sm:$0xff] %v6512_v34  ;;  %v6522_v40 = vpack.c.b16 %v8577_v33, %v8578_v30  ;;  %v8592_v42 = vunpack.c.l.b16 %v6512_v34 }
  0x57   : > { %1145 = vmatpush.bf16.msra.mxu2 %v6463_v45  ;;  %v448_v52 = vpack.c.bf16 %v408_v48, %v408_v48 }
  0x58   : > { %8724 = vst [vmem:[#allocation26_spill] sm:$0xff] %v6522_v40 }
  0x59   : > { %782 = vmatpush.bf16.msra.mxu0 %v5601_v50  ;;  %v5755_v50 = vunpack.c.l.bf16 %v5860_v46 }
  0x5a   : > { %939 = vmatpush.bf16.msra.mxu1 %v5593_v51  ;;  %5889 = vmatpush.bf16.msra.mxu3 %v5593_v51  ;;  %v5756_v51 = vunpack.c.h.bf16 %v5860_v46 }
  0x5b   : > { %1146 = vmatpush.bf16.msra.mxu2 %v6471_v56  ;;  %v385_v54 = vmax.f32 %v5755_v50, 0.0 }
  0x5c   : > { %v386_v58 = vmax.f32 %v5756_v51, 0.0 }
  0x5d   : > { %783 = vmatpush.bf16.msra.mxu0 %v5600_v59  ;;  %v6545_v0 = vpack.c.bf16 %v385_v54, %v385_v54 }
  0x5e   : > { %940 = vmatpush.bf16.msra.mxu1 %v5592_v60  ;;  %5890 = vmatpush.bf16.msra.mxu3 %v5592_v60  ;;  %v6543_v60 = vunpack.c.l.b16 %v448_v52 }
  0x5f   : > { %1147 = vmatpush.bf16.msra.mxu2 %v6477_v3  ;;  %8727 = vst [vmem:[#allocation29_spill] sm:$0xff] %v6545_v0 }
  0x60   : > { %784 = vmatmul.bf16.vlgmr.msra.gmra.mxu0 %v587_v11  ;;  %8726 = vst [vmem:[#allocation28_spill] sm:$0xff] %v6543_v60  ;;  %v5803_v11 = vunpack.c.l.bf16 %v6551_v4 }
  0x61   : > { %1707 = vmatpush.bf16.msrb.mxu0 %v5631_v7  ;;  %941 = vmatmul.bf16.vlgmr.msra.gmra.mxu1 %v558_v37  ;;  %v1045_v37 = vrot.slane %v6498_v19, 1  ;;  %v8591_v7 = vunpack.c.l.b16 %v6545_v0 }
  0x62   : > { %5891 = vmatpush.bf16.msrb.mxu3 %v6436_v2  ;;  %1148 = vmatmul.bf16.vlgmr.msra.gmra.mxu2 %v1044_v15  ;;  %v588_v2 = vshrl.u32 %v6460_v43, 16  ;;  %v5861_v15 = vld [vmem:[%s6442_s25 + $0x28] sm:$0xff]   ;;  %v409_v16 = vmax.f32 %v5803_v11, 0.0  ;;  %v1069_v11 = vrot.slane %v6522_v40, 1 }
  0x63   : > { %1006 = vmatmul.bf16.vlgmr.msra.gmra.mxu3 %v6487_v12  ;;  %v1046_v44 = vsel %vm1041_vm1, %v1043_v6, %v1045_v37  ;;  %v5759_v17 = vunpack.c.l.bf16 %v5861_v15  ;;  %v5760_v20 = vunpack.c.h.bf16 %v5861_v15 }
  0x64   : > { %v590_v29 = vor.u32 %v588_v2, %v586_v62 }
  0x65   : > { %1708 = vmatpush.bf16.msrb.mxu0 %v5630_v23  ;;  %v387_v2 = vmax.f32 %v5759_v17, 0.0  ;;  %v388_v25 = vmax.f32 %v5760_v20, 0.0 }
  0x66   : > { %5892 = vmatpush.bf16.msrb.mxu3 %v6440_v5  ;;  %v6510_v5 = vpack.c.bf16 %v383_v27, %v383_v27 }
  0x67   : > { %v6578_v35 = vpack.c.bf16 %v388_v25, %v388_v25  ;;  %v5628_v25 = vld [vmem:[#allocation5 + $0x120] sm:$0xff] }
  0x68   : > { %8722 = vst [vmem:[#allocation24_spill] sm:$0xff] %v6510_v5  ;;  %v8593_v41 = vunpack.c.l.b16 %v6510_v5 }
  0x69   : > { %1709 = vmatpush.bf16.msrb.mxu0 %v5629_v21  ;;  %8732 = vst [vmem:[#allocation34_spill] sm:$0xff] %v6578_v35  ;;  %v5863_v21 = vld [vmem:[%s6442_s25 + $0x38] sm:$0xff]  }
  0x6a   : > { %5893 = vmatpush.bf16.msrb.mxu3 %v6445_v8  ;;  %v595_v8 = vsel %vm575_vm0, %v590_v29, %v594_v31  ;;  %v6535_v49 = vpack.c.b16 %v8592_v42, %v8593_v41 }
  0x6c   : > { %v600_v53 = vshll.u32 %v6535_v49, 16  ;;  %v1047_v1 = vrot.slane %v6535_v49, 1  ;;  %v604_v22 = vshrl.u32 %v6535_v49, 16 }
  0x6d   : > { %1710 = vmatpush.bf16.msrb.mxu0 %v5628_v25  ;;  %v5620_v25 = vld [vmem:[#allocation5 + $0xe0] sm:$0xff] }
  0x6e   : > { %5894 = vmatpush.bf16.msrb.mxu3 %v6451_v18  ;;  %v407_v18 = vmax.f32 %v5799_v38, 0.0  ;;  %v602_v62 = vrot.slane %v600_v53, 1  ;;  %v1048_v14 = vsel %vm1041_vm1, %v1045_v37, %v1047_v1 }
  0x70   : > { %789 = vmatmul.bf16.gmra.mxu0 %v595_v8  ;;  %v606_v27 = vor.u32 %v604_v22, %v602_v62  ;;  %v5623_v22 = vld [vmem:[#allocation5 + $0xf8] sm:$0xff] }
  0x71   : > { %946 = vmatmul.bf16.gmra.mxu1 %v6460_v43  ;;  %v596_v43 = vshrl.u32 %v6498_v19, 16 }
  0x72   : > { %5895 = vmatpush.bf16.msrb.mxu3 %v6455_v32  ;;  %1153 = vmatmul.bf16.gmra.mxu2 %v1046_v44  ;;  %v447_v32 = vpack.c.bf16 %v407_v18, %v407_v18  ;;  %v8586_v44 = vunpack.c.l.b16 %v6578_v35  ;;  %v5862_v18 = vld [vmem:[%s6442_s25 + $0x30] sm:$0xff]  }
  0x73   : > { %1011 = vmatmul.bf16.gmra.mxu3 %v6522_v40  ;;  %v598_v61 = vor.u32 %v596_v43, %v594_v31  ;;  %v6576_v31 = vpack.c.bf16 %v387_v2, %v387_v2  ;;  %v5763_v50 = vunpack.c.l.bf16 %v5862_v18  ;;  %v5764_v51 = vunpack.c.h.bf16 %v5862_v18 }
  0x74   : > { %v6541_v59 = vunpack.c.l.b16 %v447_v32  ;;  %v5768_v2 = vunpack.c.h.bf16 %v5863_v21 }
  0x75   : > { %v603_v6 = vsel %vm575_vm0, %v598_v61, %v602_v62  ;;  %8731 = vst [vmem:[#allocation33_spill] sm:$0xff] %v6576_v31  ;;  %v8587_v8 = vunpack.c.l.b16 %v6576_v31  ;;  %v389_v43 = vmax.f32 %v5763_v50, 0.0  ;;  %v390_v53 = vmax.f32 %v5764_v51, 0.0  ;;  %v5621_v51 = vld [vmem:[#allocation5 + $0xe8] sm:$0xff] }
  0x76   : > { %5896 = vmatpush.bf16.msrb.mxu3 %v6463_v45  ;;  %8725 = vst [vmem:[#allocation27_spill] sm:$0xff] %v6541_v59  ;;  %v6547_v45 = vpack.c.bf16 %v386_v58, %v386_v58  ;;  %v392_v18 = vmax.f32 %v5768_v2, 0.0  ;;  %v5804_v50 = vunpack.c.h.bf16 %v6551_v4 }
  0x77   : > { %v6599_v48 = vpack.c.b16 %v8586_v44, %v8587_v8  ;;  %v6603_v61 = vpack.c.bf16 %v389_v43, %v389_v43  ;;  %v6605_v62 = vpack.c.bf16 %v390_v53, %v390_v53 }
  0x78   : > { %8728 = vst [vmem:[#allocation30_spill] sm:$0xff] %v6547_v45  ;;  %v8588_v10 = vunpack.c.l.b16 %v6547_v45  ;;  %v6639_v53 = vpack.c.bf16 %v392_v18, %v392_v18 }
  0x79   : > { %v616_v52 = vshll.u32 %v6599_v48, 16  ;;  %8735 = vst [vmem:[#allocation37_spill] sm:$0xff] %v6603_v61  ;;  %v8585_v15 = vunpack.c.l.b16 %v6603_v61 }
  0x7a   : > { %5897 = vmatpush.bf16.msrb.mxu3 %v6471_v56  ;;  %v6556_v56 = vpack.c.b16 %v6543_v60, %v6541_v59  ;;  %8736 = vst [vmem:[#allocation38_spill] sm:$0xff] %v6605_v62 }
  0x7b   : > { %v618_v58 = vrot.slane %v616_v52, 1  ;;  %8741 = vst [vmem:[#allocation43_spill] sm:$0xff] %v6639_v53 }
  0x7c   : > { %8729 = vst [vmem:[#allocation31_spill] sm:$0xff] %v6556_v56 }
  0x7e   : > { %5898 = vmatpush.bf16.msrb.mxu3 %v6477_v3  ;;  %v6570_v3 = vpack.c.b16 %v8588_v10, %v8591_v7 }
  0x80   : > { %794 = vmatmul.bf16.gmra.mxu0 %v603_v6  ;;  %v608_v23 = vshll.u32 %v6570_v3, 16  ;;  %v1049_v37 = vrot.slane %v6570_v3, 1  ;;  %v612_v32 = vshrl.u32 %v6570_v3, 16  ;;  %v8584_v6 = vrot.slane %v6487_v12, 1 }
  0x81   : > { %951 = vmatmul.bf16.gmra.mxu1 %v6498_v19  ;;  %v449_v19 = vpack.c.bf16 %v409_v16, %v409_v16  ;;  %v8583_v16 = vunpack.c.l.b16 %v6605_v62 }
  0x82   : > { %1158 = vmatmul.bf16.gmra.mxu2 %v1048_v14  ;;  %v610_v28 = vrot.slane %v608_v23, 1  ;;  %v6589_v46 = vsel %vm1041_vm1, %v1047_v1, %v1049_v37  ;;  %v1051_v1 = vrot.slane %v6599_v48, 1  ;;  %v6621_v20 = vsel %vm1041_vm1, %v8584_v6, %v1069_v11  ;;  %1365 = vmatpush.bf16.msra.mxu3 %v5623_v22  ;;  %v5627_v6 = vld [vmem:[#allocation5 + $0x118] sm:$0xff] }
  0x83   : > { %1016 = vmatmul.bf16.gmra.mxu3 %v6556_v56  ;;  %v6574_v29 = vunpack.c.l.b16 %v449_v19  ;;  %8734 = vst [vmem:[#allocation36_spill] sm:$0xff] %v6589_v46  ;;  %v6632_v23 = vpack.c.b16 %v8583_v16, %v8585_v15  ;;  %v5767_v19 = vunpack.c.l.bf16 %v5863_v21  ;;  %v1071_v22 = vrot.slane %v6556_v56, 1  ;;  %1711 = vmatpush.bf16.msrb.mxu0 %v5627_v6 }
  0x84   : > { %v6582_v38 = vsel %vm575_vm0, %v606_v27, %v610_v28  ;;  %v614_v54 = vor.u32 %v612_v32, %v610_v28  ;;  %v6616_v17 = vsel %vm1041_vm1, %v1049_v37, %v1051_v1  ;;  %8739 = vst [vmem:[#allocation41_spill] sm:$0xff] %v6621_v20  ;;  %v5622_v27 = vld [vmem:[#allocation5 + $0xf0] sm:$0xff]  ;;  %v620_v28 = vshrl.u32 %v6599_v48, 16 }
  0x85   : > { %8730 = vst [vmem:[#allocation32_spill] sm:$0xff] %v6574_v29  ;;  %v867_v39 = vpack.c.b16 %v6574_v29, %v6574_v29  ;;  %v624_v37 = vshll.u32 %v6632_v23, 16  ;;  %v1053_v21 = vrot.slane %v6632_v23, 1 }
  0x86   : > { %8733 = vst [vmem:[#allocation35_spill] sm:$0xff] %v6582_v38  ;;  %v6611_v14 = vsel %vm575_vm0, %v614_v54, %v618_v58  ;;  %1366 = vmatpush.bf16.msra.mxu3 %v5622_v27  ;;  %v622_v32 = vor.u32 %v620_v28, %v618_v58  ;;  %v410_v54 = vmax.f32 %v5804_v50, 0.0  ;;  %v8581_v58 = vunpack.c.l.b16 %v6639_v53 }
  0x87   : > { %8737 = vst [vmem:[#allocation39_spill] sm:$0xff] %v6611_v14  ;;  %v626_v52 = vrot.slane %v624_v37, 1  ;;  %v6649_v27 = vsel %vm1041_vm1, %v1051_v1, %v1053_v21  ;;  %v6652_v28 = vsel %vm1041_vm1, %v1069_v11, %v1071_v22  ;;  %v5864_v37 = vld [vmem:[%s6442_s25 + $0x40] sm:$0xff]  }
  0x88   : > { %8738 = vst [vmem:[#allocation40_spill] sm:$0xff] %v6616_v17  ;;  %v450_v2 = vpack.c.bf16 %v410_v54, %v410_v54  ;;  %v5771_v18 = vunpack.c.l.bf16 %v5864_v37  ;;  %v5772_v11 = vunpack.c.h.bf16 %v5864_v37 }
  0x89   : > { %8743 = vst [vmem:[#allocation45_spill] sm:$0xff] %v6649_v27 }
  0x8a   : > { %1367 = vmatpush.bf16.msra.mxu3 %v5621_v51  ;;  %8744 = vst [vmem:[#allocation46_spill] sm:$0xff] %v6652_v28  ;;  %v6665_v50 = vunpack.c.l.b16 %v450_v2  ;;  %v5618_v51 = vld [vmem:[#allocation5 + $0xd0] sm:$0xff]  ;;  %v394_v33 = vmax.f32 %v5772_v11, 0.0 }
  0x8c   : > { %8745 = vst [vmem:[#allocation47_spill] sm:$0xff] %v6665_v50  ;;  %v6671_v30 = vpack.c.b16 %v6665_v50, %v6574_v29  ;;  %v6675_v2 = vpack.c.bf16 %v394_v33, %v394_v33  ;;  %v8783_v50 = vunpack.c.l.b16 %v6576_v31  ;;  %v5625_v29 = vld [vmem:[#allocation5 + $0x108] sm:$0xff] }
  0x8e   : > { %1368 = vmatpush.bf16.msra.mxu3 %v5620_v25  ;;  %v393_v25 = vmax.f32 %v5771_v18, 0.0  ;;  %8746 = vst [vmem:[#allocation48_spill] sm:$0xff] %v6671_v30  ;;  %v5616_v18 = vld [vmem:[#allocation5 + $0xc0] sm:$0xff]  ;;  %v8589_v16 = vunpack.c.l.b16 %v6675_v2 }
  0x8f   : > { %8748 = vst [vmem:[#allocation50_spill] sm:$0xff] %v6675_v2 }
  0x90   : > { %799 = vmatmul.bf16.gmra.mxu0 %v6582_v38  ;;  %v6673_v37 = vpack.c.bf16 %v393_v25, %v393_v25 }
  0x91   : > { %956 = vmatmul.bf16.gmra.mxu1 %v6535_v49 }
  0x92   : > { %1163 = vmatmul.bf16.gmra.mxu2 %v6589_v46  ;;  %8747 = vst [vmem:[#allocation49_spill] sm:$0xff] %v6673_v37 }
  0x93   : > { %1020 = vmatmul.bf16.gmra.mxu3 %v867_v39  ;;  %v391_v39 = vmax.f32 %v5767_v19, 0.0  ;;  %v6644_v19 = vsel %vm575_vm0, %v622_v32, %v626_v52  ;;  %v628_v32 = vshrl.u32 %v6632_v23, 16 }
  0x94   : > { %8742 = vst [vmem:[#allocation44_spill] sm:$0xff] %v6644_v19 }
  0x95   : > { %v6637_v43 = vpack.c.bf16 %v391_v39, %v391_v39  ;;  %v5619_v39 = vld [vmem:[#allocation5 + $0xd8] sm:$0xff]  ;;  %v630_v57 = vor.u32 %v628_v32, %v626_v52 }
  0x96   : > { %1369 = vmatpush.bf16.msra.mxu3 %v5619_v39  ;;  %v5865_v32 = vld [vmem:[%s6442_s25 + $0x48] sm:$0xff]  }
  0x97   : > { %8740 = vst [vmem:[#allocation42_spill] sm:$0xff] %v6637_v43  ;;  %v8582_v4 = vunpack.c.l.b16 %v6637_v43 }
  0x99   : > { %v6663_v1 = vpack.c.b16 %v8581_v58, %v8582_v4  ;;  %v6679_v4 = vrot.slane %v6671_v30, 1 }
  0x9a   : > { %1370 = vmatpush.bf16.msra.mxu3 %v5618_v51  ;;  %v8590_v51 = vunpack.c.l.b16 %v6673_v37 }
  0x9b   : > { %v632_v54 = vshll.u32 %v6663_v1, 16  ;;  %v1055_v39 = vrot.slane %v6663_v1, 1  ;;  %8749 = vst [vmem:[#allocation51_spill] sm:$0xff] %v6679_v4  ;;  %v6691_v33 = vsel %vm1041_vm1, %v1071_v22, %v6679_v4  ;;  %v636_v22 = vshrl.u32 %v6663_v1, 16 }
  0x9c   : > { %8752 = vst [vmem:[#allocation54_spill] sm:$0xff] %v6691_v33 }
  0x9d   : > { %v634_v58 = vrot.slane %v632_v54, 1  ;;  %v6687_v52 = vsel %vm1041_vm1, %v1053_v21, %v1055_v39  ;;  %v5776_v21 = vunpack.c.h.bf16 %v5865_v32 }
  0x9e   : > { %1371 = vmatpush.bf16.msra.mxu3 %v5617_v63  ;;  %8751 = vst [vmem:[#allocation53_spill] sm:$0xff] %v6687_v52  ;;  %v5775_v63 = vunpack.c.l.bf16 %v5865_v32 }
  0x9f   : > { %v6682_v11 = vsel %vm575_vm0, %v630_v57, %v634_v58  ;;  %v6702_v57 = vpack.c.b16 %v8589_v16, %v8590_v51  ;;  %v638_v15 = vor.u32 %v636_v22, %v634_v58 }
  0xa0   : > { %804 = vmatmul.bf16.gmra.mxu0 %v6611_v14  ;;  %8750 = vst [vmem:[#allocation52_spill] sm:$0xff] %v6682_v11  ;;  %v395_v25 = vmax.f32 %v5775_v63, 0.0 }
  0xa1   : > { %961 = vmatmul.bf16.gmra.mxu1 %v6570_v3  ;;  %v640_v54 = vshll.u32 %v6702_v57, 16  ;;  %v1057_v16 = vrot.slane %v6702_v57, 1 }
  0xa2   : > { %1168 = vmatmul.bf16.gmra.mxu2 %v6616_v17  ;;  %1372 = vmatpush.bf16.msra.mxu3 %v5616_v18  ;;  %v396_v18 = vmax.f32 %v5776_v21, 0.0  ;;  %v6706_v8 = vpack.c.bf16 %v395_v25, %v395_v25  ;;  %v5866_v21 = vld [vmem:[%s6442_s25 + $0x50] sm:$0xff]   ;;  %v5626_v17 = vld [vmem:[#allocation5 + $0x110] sm:$0xff] }
  0xa3   : > { %1213 = vmatmul.bf16.vlgmr.msrb.gmra.mxu3 %v6621_v20  ;;  %v642_v44 = vrot.slane %v640_v54, 1  ;;  %v6717_v63 = vsel %vm1041_vm1, %v1055_v39, %v1057_v16  ;;  %v5780_v58 = vunpack.c.h.bf16 %v5866_v21  ;;  %v644_v39 = vshrl.u32 %v6702_v57, 16  ;;  %1712 = vmatpush.bf16.msrb.mxu0 %v5626_v17 }
  0xa4   : > { %8753 = vst [vmem:[#allocation55_spill] sm:$0xff] %v6706_v8  ;;  %v6708_v10 = vpack.c.bf16 %v396_v18, %v396_v18  ;;  %v8598_v32 = vunpack.c.l.b16 %v6706_v8 }
  0xa5   : > { %v6712_v51 = vsel %vm575_vm0, %v638_v15, %v642_v44  ;;  %8756 = vst [vmem:[#allocation58_spill] sm:$0xff] %v6717_v63  ;;  %v5779_v15 = vunpack.c.l.bf16 %v5866_v21  ;;  %v398_v25 = vmax.f32 %v5780_v58, 0.0  ;;  %v646_v18 = vor.u32 %v644_v39, %v642_v44 }
  0xa6   : > { %8754 = vst [vmem:[#allocation56_spill] sm:$0xff] %v6708_v10  ;;  %v8597_v7 = vunpack.c.l.b16 %v6708_v10  ;;  %v6742_v21 = vpack.c.b16 %v6480_v9, %v6457_v36 }
  0xa7   : > { %8755 = vst [vmem:[#allocation57_spill] sm:$0xff] %v6712_v51  ;;  %v397_v54 = vmax.f32 %v5779_v15, 0.0  ;;  %1713 = vmatpush.bf16.msrb.mxu0 %v5625_v29  ;;  %v680_v29 = vshll.u32 %v6487_v12, 16 }
  0xa8   : > { %v6728_v6 = vpack.c.b16 %v8597_v7, %v8598_v32 }
  0xa9   : > { %v6732_v41 = vpack.c.bf16 %v397_v54, %v397_v54 }
  0xaa   : > { %8757 = vst [vmem:[#allocation59_spill] sm:$0xff] %v6728_v6  ;;  %v648_v22 = vshll.u32 %v6728_v6, 16  ;;  %v652_v54 = vshrl.u32 %v6728_v6, 16 }
  0xab   : > { %8758 = vst [vmem:[#allocation60_spill] sm:$0xff] %v6732_v41  ;;  %v8606_v15 = vunpack.c.l.b16 %v6732_v41 }
  0xac   : > { %v650_v42 = vrot.slane %v648_v22, 1  ;;  %v5867_v22 = vld [vmem:[%s6442_s25 + $0x58] sm:$0xff]  }
  0xad   : > { %v5783_v9 = vunpack.c.l.bf16 %v5867_v22 }
  0xae   : > { %v6738_v32 = vsel %vm575_vm0, %v646_v18, %v650_v42 }
  0xaf   : > { %8760 = vst [vmem:[#allocation62_spill] sm:$0xff] %v6738_v32 }
  0xb0   : > { %809 = vmatmul.bf16.gmra.mxu0 %v6644_v19 }
  0xb1   : > { %966 = vmatmul.bf16.gmra.mxu1 %v6599_v48 }
  0xb2   : > { %1173 = vmatmul.bf16.gmra.mxu2 %v6649_v27 }
  0xb3   : > { %1218 = vmatmul.bf16.gmra.mxu3 %v6652_v28 }
  0xc0   : > { %814 = vmatmul.bf16.gmra.mxu0 %v6682_v11 }
  0xc1   : > { %971 = vmatmul.bf16.gmra.mxu1 %v6632_v23 }
  0xc2   : > { %1178 = vmatmul.bf16.gmra.mxu2 %v6687_v52 }
  0xc3   : > { %1223 = vmatmul.bf16.gmra.mxu3 %v6691_v33  ;;  %v1059_v33 = vrot.slane %v6728_v6, 1 }
  0xc5   : > { %v6747_v39 = vsel %vm1041_vm1, %v1057_v16, %v1059_v33 }
  0xc6   : > { %8761 = vst [vmem:[#allocation63_spill] sm:$0xff] %v6747_v39 }
  0xd0   : > { %819 = vmatmul.bf16.gmra.mxu0 %v6712_v51  ;;  %v8767_v51 = vunpack.c.l.b16 %v6510_v5 }
  0xd1   : > { %976 = vmatmul.bf16.gmra.mxu1 %v6663_v1 }
  0xd2   : > { %1183 = vmatmul.bf16.gmra.mxu2 %v6717_v63  ;;  %v399_v63 = vmax.f32 %v5783_v9, 0.0  ;;  %v6776_v9 = vpack.c.b16 %v8767_v51, %v6489_v13 }
  0xd3   : > { %1227 = vmatmul.bf16.gmra.mxu3 %v6679_v4  ;;  %v6734_v4 = vpack.c.bf16 %v398_v25, %v398_v25 }
  0xd5   : > { %8759 = vst [vmem:[#allocation61_spill] sm:$0xff] %v6734_v4  ;;  %v8605_v44 = vunpack.c.l.b16 %v6734_v4 }
  0xd7   : > { %v6758_v36 = vpack.c.b16 %v8605_v44, %v8606_v15  ;;  %v654_v44 = vor.u32 %v652_v54, %v650_v42 }
  0xd9   : > { %8762 = vst [vmem:[#allocation64_spill] sm:$0xff] %v6758_v36 }
  0xdd   : > { %v785_v28 = vpop.f32.mrf.mxu0 }
  0xde   : > { %v942_v7 = vpop.f32.mrf.mxu1 }
  0xdf   : > { %v943_v58 = vadd.f32 %v942_v7, %v785_v28  ;;  %v5784_v7 = vunpack.c.h.bf16 %v5867_v22  ;;  %v6766_v22 = vpack.c.bf16 %v399_v63, %v399_v63 }
  0xe0   : > { %824 = vmatmul.bf16.gmra.mxu0 %v6738_v32  ;;  %v1061_v32 = vrot.slane %v6758_v36, 1 }
  0xe1   : > { %981 = vmatmul.bf16.gmra.mxu1 %v6702_v57  ;;  %v400_v52 = vmax.f32 %v5784_v7, 0.0  ;;  %8764 = vst [vmem:[#allocation66_spill] sm:$0xff] %v6766_v22 }
  0xe2   : > { %1188 = vmatmul.bf16.gmra.mxu2 %v6747_v39  ;;  %v656_v39 = vshll.u32 %v6758_v36, 16  ;;  %v6786_v54 = vsel %vm1041_vm1, %v1059_v33, %v1061_v32 }
  0xe3   : > { %1373 = vmatmul.bf16.vlgmr.msra.gmra.mxu3 %v6742_v21  ;;  %v6768_v46 = vpack.c.bf16 %v400_v52, %v400_v52  ;;  %v8614_v52 = vunpack.c.l.b16 %v6766_v22  ;;  %8769 = vst [vmem:[#allocation70_spill] sm:$0xff] %v6786_v54 }
  0xe4   : > { %v658_v15 = vrot.slane %v656_v39, 1 }
  0xe5   : > { %v1149_v16 = vpop.f32.mrf.mxu2  ;;  %v787_v18 = vpop.f32.mrf.mxu0  ;;  %8765 = vst [vmem:[#allocation67_spill] sm:$0xff] %v6768_v46  ;;  %v8613_v63 = vunpack.c.l.b16 %v6768_v46 }
  0xe6   : > { %v6760_v28 = vpop.f32.mrf.mxu3  ;;  %v6763_v25 = vadd.f32 %v1149_v16, %v943_v58  ;;  %v944_v20 = vpop.f32.mrf.mxu1  ;;  %v6781_v39 = vsel %vm575_vm0, %v654_v44, %v658_v15 }
  0xe7   : > { %8763 = vst [vmem:[#allocation65_spill] sm:$0xff] %v6760_v28  ;;  %v945_v27 = vadd.f32 %v944_v20, %v787_v18  ;;  %v5868_v18 = vld [vmem:[%s6442_s25 + $0x60] sm:$0xff]   ;;  %v6797_v13 = vpack.c.b16 %v8613_v63, %v8614_v52 }
  0xe8   : > { %8768 = vst [vmem:[#allocation69_spill] sm:$0xff] %v6781_v39  ;;  %v5788_v51 = vunpack.c.h.bf16 %v5868_v18 }
  0xe9   : > { %8770 = vst [vmem:[#allocation71_spill] sm:$0xff] %v6797_v13 }
  0xed   : > { %v1151_v16 = vpop.f32.mrf.mxu2  ;;  %v790_v17 = vpop.f32.mrf.mxu0 }
  0xee   : > { %v6771_v58 = vpop.f32.mrf.mxu3  ;;  %v6778_v20 = vadd.f32 %v1151_v16, %v945_v27  ;;  %v947_v42 = vpop.f32.mrf.mxu1  ;;  %v5787_v27 = vunpack.c.l.bf16 %v5868_v18  ;;  %v660_v16 = vshrl.u32 %v6758_v36, 16 }
  0xef   : > { %8766 = vst [vmem:[#allocation68_spill] sm:$0xff] %v6771_v58  ;;  %v948_v7 = vadd.f32 %v947_v42, %v790_v17  ;;  %v402_v58 = vmax.f32 %v5788_v51, 0.0 }
  0xf0   : > { %829 = vmatmul.bf16.gmra.mxu0 %v6781_v39  ;;  %v401_v39 = vmax.f32 %v5787_v27, 0.0  ;;  %v662_v28 = vor.u32 %v660_v16, %v658_v15  ;;  %v8776_v27 = vunpack.c.l.b16 %v6512_v34  ;;  %v8777_v15 = vunpack.c.l.b16 %v6545_v0 }
  0xf1   : > { %986 = vmatmul.bf16.gmra.mxu1 %v6728_v6  ;;  %v6811_v18 = vpack.c.bf16 %v402_v58, %v402_v58  ;;  %v668_v0 = vshrl.u32 %v6797_v13, 16  ;;  %v8788_v6 = vrot.slane %v6487_v12, 1 }
  0xf2   : > { %1193 = vmatmul.bf16.gmra.mxu2 %v6786_v54  ;;  %v664_v54 = vshll.u32 %v6797_v13, 16  ;;  %v6809_v52 = vpack.c.bf16 %v401_v39, %v401_v39 }
  0xf3   : > { %1378 = vmatmul.bf16.gmra.mxu3 %v6776_v9  ;;  %8773 = vst [vmem:[#allocation74_spill] sm:$0xff] %v6811_v18  ;;  %v8623_v39 = vunpack.c.l.b16 %v6811_v18 }
  0xf4   : > { %v666_v63 = vrot.slane %v664_v54, 1  ;;  %8772 = vst [vmem:[#allocation73_spill] sm:$0xff] %v6809_v52  ;;  %v6825_v54 = vpack.c.b16 %v8777_v15, %v8776_v27  ;;  %v8624_v58 = vunpack.c.l.b16 %v6809_v52 }
  0xf5   : > { %v1154_v33 = vpop.f32.mrf.mxu2  ;;  %v6804_v42 = vpop.f32.mrf.mxu0 }
  0xf6   : > { %v6799_v44 = vpop.f32.mrf.mxu3  ;;  %v6802_v17 = vadd.f32 %v1154_v33, %v948_v7  ;;  %v6806_v5 = vpop.f32.mrf.mxu1  ;;  %v6819_v14 = vsel %vm575_vm0, %v662_v28, %v666_v63  ;;  %v6840_v28 = vpack.c.b16 %v8623_v39, %v8624_v58 }
  0xf7   : > { %8771 = vst [vmem:[#allocation72_spill] sm:$0xff] %v6799_v44  ;;  %v1063_v44 = vrot.slane %v6797_v13, 1 }
  0xf8   : > { %8775 = vst [vmem:[#allocation76_spill] sm:$0xff] %v6819_v14  ;;  %v672_v34 = vshll.u32 %v6840_v28, 16 }
  0xf9   : > { %v6830_v16 = vsel %vm1041_vm1, %v1061_v32, %v1063_v44  ;;  %8779 = vst [vmem:[#allocation78_spill] sm:$0xff] %v6840_v28 }
  0xfa   : > { %8778 = vst [vmem:[#allocation77_spill] sm:$0xff] %v6830_v16 }
  0xfd   : > { %v6816_v7 = vpop.f32.mrf.mxu2  ;;  %v795_v33 = vpop.f32.mrf.mxu0 }
  0xfe   : > { %v6814_v11 = vpop.f32.mrf.mxu3  ;;  %v952_v19 = vpop.f32.mrf.mxu1 }
  0xff   : > { %8774 = vst [vmem:[#allocation75_spill] sm:$0xff] %v6814_v11  ;;  %v953_v51 = vadd.f32 %v952_v19, %v795_v33  ;;  %v1065_v11 = vrot.slane %v6840_v28, 1 }
 0x100   : > { %834 = vmatmul.bf16.gmra.mxu0 %v6819_v14  ;;  %v674_v14 = vrot.slane %v672_v34, 1 }
 0x101   : > { %991 = vmatmul.bf16.gmra.mxu1 %v6758_v36  ;;  %v6865_v34 = vsel %vm1041_vm1, %v1063_v44, %v1065_v11  ;;  %v676_v44 = vshrl.u32 %v6840_v28, 16 }
 0x102   : > { %1198 = vmatmul.bf16.gmra.mxu2 %v6830_v16  ;;  %v670_v16 = vor.u32 %v668_v0, %v666_v63  ;;  %8784 = vst [vmem:[#allocation81_spill] sm:$0xff] %v6865_v34 }
 0x103   : > { %1383 = vmatmul.bf16.gmra.mxu3 %v6825_v54 }
 0x105   : > { %v1159_v19 = vpop.f32.mrf.mxu2  ;;  %v6846_v32 = vpop.f32.mrf.mxu0 }
 0x106   : > { %v6842_v27 = vpop.f32.mrf.mxu3  ;;  %v6844_v33 = vadd.f32 %v1159_v19, %v953_v51  ;;  %v6848_v15 = vpop.f32.mrf.mxu1  ;;  %v6856_v51 = vsel %vm575_vm0, %v670_v16, %v674_v14  ;;  %v8782_v19 = vunpack.c.l.b16 %v6547_v45 }
 0x107   : > { %8780 = vst [vmem:[#allocation79_spill] sm:$0xff] %v6842_v27 }
 0x108   : > { %8781 = vst [vmem:[#allocation80_spill] sm:$0xff] %v6856_v51  ;;  %v6862_v36 = vpack.c.b16 %v8783_v50, %v8782_v19 }
 0x10d   : > { %v6853_v39 = vpop.f32.mrf.mxu2  ;;  %v800_v58 = vpop.f32.mrf.mxu0 }
 0x10e   : > { %v1019_v38 = vpop.f32.mrf.mxu3  ;;  %v957_v27 = vpop.f32.mrf.mxu1 }
 0x10f   : > { %v958_v60 = vadd.f32 %v957_v27, %v800_v58  ;;  %v678_v58 = vor.u32 %v676_v44, %v674_v14  ;;  %v682_v27 = vrot.slane %v680_v29, 1  ;;  %v6893_v14 = vsel %vm1041_vm1, %v1065_v11, %v8788_v6 }
 0x110   : > { %839 = vmatmul.bf16.gmra.mxu0 %v6856_v51  ;;  %8789 = vst [vmem:[#allocation83_spill] sm:$0xff] %v6893_v14  ;;  %v684_v11 = vshrl.u32 %v6487_v12, 16  ;;  %v688_v6 = vshll.u32 %v6522_v40, 16  ;;  %v8794_v12 = vunpack.c.l.b16 %v6637_v43 }
 0x111   : > { %996 = vmatmul.bf16.gmra.mxu1 %v6797_v13 }
 0x112   : > { %1203 = vmatmul.bf16.gmra.mxu2 %v6865_v34 }
 0x113   : > { %1388 = vmatmul.bf16.gmra.mxu3 %v6862_v36 }
 0x115   : > { %v1164_v38 = vpop.f32.mrf.mxu2  ;;  %v6873_v50 = vpop.f32.mrf.mxu0 }
 0x116   : > { %v1021_v0 = vpop.f32.mrf.mxu3  ;;  %v6871_v63 = vadd.f32 %v1164_v38, %v958_v60  ;;  %v6875_v16 = vpop.f32.mrf.mxu1  ;;  %v8786_v60 = vunpack.c.l.b16 %v6578_v35  ;;  %v8787_v38 = vunpack.c.l.b16 %v6603_v61  ;;  %v690_v61 = vrot.slane %v688_v6, 1 }
 0x117   : > { %v6882_v0 = vsel %vm575_vm0, %v678_v58, %v682_v27 }
 0x118   : > { %8785 = vst [vmem:[#allocation82_spill] sm:$0xff] %v6882_v0  ;;  %v6888_v51 = vpack.c.b16 %v8787_v38, %v8786_v60  ;;  %v5639_v60 = vld [vmem:[#allocation5 + $0x178] sm:$0xff]  ;;  %v686_v38 = vor.u32 %v684_v11, %v682_v27  ;;  %v5646_v27 = vld [vmem:[#allocation5 + $0x1b0] sm:$0xff] }
 0x119   : > { %1944 = vmatpush.bf16.msrb.mxu1 %v5639_v60 }
 0x11d   : > { %v6879_v31 = vpop.f32.mrf.mxu2  ;;  %v805_v45 = vpop.f32.mrf.mxu0 }
 0x11e   : > { %v1022_v19 = vpop.f32.mrf.mxu3  ;;  %v962_v34 = vpop.f32.mrf.mxu1 }
 0x11f   : > { %v963_v13 = vadd.f32 %v962_v34, %v805_v45  ;;  %v5647_v34 = vld [vmem:[#allocation5 + $0x1b8] sm:$0xff] }
 0x120   : > { %844 = vmatmul.bf16.gmra.mxu0 %v6882_v0  ;;  %2142 = vmatpush.bf16.msrb.mxu2 %v5647_v34  ;;  %v6914_v0 = vsel %vm575_vm0, %v686_v38, %v690_v61  ;;  %v5624_v34 = vld [vmem:[#allocation5 + $0x100] sm:$0xff] }
 0x121   : > { %1001 = vmatmul.bf16.gmra.mxu1 %v6840_v28  ;;  %8792 = vst [vmem:[#allocation86_spill] sm:$0xff] %v6914_v0  ;;  %1714 = vmatpush.bf16.msrb.mxu0 %v5624_v34 }
 0x122   : > { %1208 = vmatmul.bf16.gmra.mxu2 %v6893_v14 }
 0x123   : > { %1393 = vmatmul.bf16.gmra.mxu3 %v6888_v51 }
 0x124   : > { %2143 = vmatpush.bf16.msrb.mxu2 %v5646_v27 }
 0x125   : > { %v1169_v44 = vpop.f32.mrf.mxu2  ;;  %v6903_v19 = vpop.f32.mrf.mxu0 }
 0x126   : > { %v6899_v29 = vpop.f32.mrf.mxu3  ;;  %v6901_v58 = vadd.f32 %v1169_v44, %v963_v13  ;;  %v6905_v45 = vpop.f32.mrf.mxu1 }
 0x127   : > { %8790 = vst [vmem:[#allocation84_spill] sm:$0xff] %v6899_v29  ;;  %v8793_v29 = vunpack.c.l.b16 %v6605_v62 }
 0x129   : > { %v6920_v28 = vpack.c.b16 %v8794_v12, %v8793_v29  ;;  %v692_v12 = vshrl.u32 %v6522_v40, 16  ;;  %v696_v29 = vshll.u32 %v6556_v56, 16 }
 0x12b   : > { %v694_v34 = vor.u32 %v692_v12, %v690_v61  ;;  %v698_v43 = vrot.slane %v696_v29, 1  ;;  %v5636_v12 = vld [vmem:[#allocation5 + $0x160] sm:$0xff]  ;;  %v5643_v29 = vld [vmem:[#allocation5 + $0x198] sm:$0xff] }
 0x12d   : > { %v6909_v35 = vpop.f32.mrf.mxu2  ;;  %v810_v13 = vpop.f32.mrf.mxu0  ;;  %v6939_v40 = vsel %vm575_vm0, %v694_v34, %v698_v43 }
 0x12e   : > { %v6911_v14 = vpop.f32.mrf.mxu3  ;;  %v967_v44 = vpop.f32.mrf.mxu1  ;;  %8799 = vst [vmem:[#allocation91_spill] sm:$0xff] %v6939_v40 }
 0x12f   : > { %8791 = vst [vmem:[#allocation85_spill] sm:$0xff] %v6911_v14  ;;  %v968_v59 = vadd.f32 %v967_v44, %v810_v13  ;;  %v5638_v13 = vld [vmem:[#allocation5 + $0x170] sm:$0xff]  ;;  %v5645_v44 = vld [vmem:[#allocation5 + $0x1a8] sm:$0xff]  ;;  %v5644_v14 = vld [vmem:[#allocation5 + $0x1a0] sm:$0xff] }
 0x130   : > { %849 = vmatmul.bf16.gmra.mxu0 %v6914_v0  ;;  %1945 = vmatpush.bf16.msrb.mxu1 %v5638_v13  ;;  %v5637_v0 = vld [vmem:[#allocation5 + $0x168] sm:$0xff]  ;;  %v8801_v13 = vunpack.c.l.b16 %v6673_v37 }
 0x131   : > { %2144 = vmatpush.bf16.msrb.mxu2 %v5645_v44 }
 0x133   : > { %1398 = vmatmul.bf16.gmra.mxu3 %v6920_v28 }
 0x134   : > { %1946 = vmatpush.bf16.msrb.mxu1 %v5637_v0  ;;  %v5635_v0 = vld [vmem:[#allocation5 + $0x158] sm:$0xff] }
 0x135   : > { %v1174_v11 = vpop.f32.mrf.mxu2  ;;  %v6928_v38 = vpop.f32.mrf.mxu0  ;;  %2145 = vmatpush.bf16.msrb.mxu2 %v5644_v14  ;;  %v5642_v14 = vld [vmem:[#allocation5 + $0x190] sm:$0xff] }
 0x136   : > { %v6924_v6 = vpop.f32.mrf.mxu3  ;;  %v6926_v60 = vadd.f32 %v1174_v11, %v968_v59  ;;  %v6930_v62 = vpop.f32.mrf.mxu1 }
 0x137   : > { %8795 = vst [vmem:[#allocation87_spill] sm:$0xff] %v6924_v6 }
 0x138   : > { %8796 = vst [vmem:[#allocation88_spill] sm:$0xff] %v6930_v62  ;;  %v8800_v62 = vunpack.c.l.b16 %v6639_v53  ;;  %1947 = vmatpush.bf16.msrb.mxu1 %v5636_v12  ;;  %v5641_v12 = vld [vmem:[#allocation5 + $0x188] sm:$0xff] }
 0x139   : > { %2146 = vmatpush.bf16.msrb.mxu2 %v5643_v29  ;;  %v5655_v29 = vld [vmem:[#allocation5 + $0x1f8] sm:$0xff] }
 0x13a   : > { %v6945_v44 = vpack.c.b16 %v8801_v13, %v8800_v62  ;;  %v5634_v13 = vld [vmem:[#allocation5 + $0x150] sm:$0xff]  ;;  %2360 = vmatpush.bf16.msrb.mxu3 %v5655_v29 }
 0x13c   : > { %1948 = vmatpush.bf16.msrb.mxu1 %v5635_v0  ;;  %v5633_v0 = vld [vmem:[#allocation5 + $0x148] sm:$0xff] }
 0x13d   : > { %v6934_v6 = vpop.f32.mrf.mxu2  ;;  %v815_v27 = vpop.f32.mrf.mxu0  ;;  %2147 = vmatpush.bf16.msrb.mxu2 %v5642_v14  ;;  %v8807_v14 = vunpack.c.l.b16 %v6675_v2 }
 0x13e   : > { %8797 = vst [vmem:[#allocation89_spill] sm:$0xff] %v6934_v6  ;;  %v6936_v59 = vpop.f32.mrf.mxu3  ;;  %v972_v11 = vpop.f32.mrf.mxu1 }
 0x13f   : > { %8798 = vst [vmem:[#allocation90_spill] sm:$0xff] %v6936_v59  ;;  %v973_v61 = vadd.f32 %v972_v11, %v815_v27  ;;  %v700_v27 = vshrl.u32 %v6556_v56, 16  ;;  %v704_v11 = vshll.u32 %v6671_v30, 16 }
 0x140   : > { %854 = vmatmul.bf16.gmra.mxu0 %v6939_v40  ;;  %1949 = vmatpush.bf16.msrb.mxu1 %v5634_v13 }
 0x141   : > { %v702_v40 = vor.u32 %v700_v27, %v698_v43  ;;  %v706_v6 = vrot.slane %v704_v11, 1  ;;  %2148 = vmatpush.bf16.msrb.mxu2 %v5641_v12  ;;  %v5632_v27 = vld [vmem:[#allocation5 + $0x140] sm:$0xff]  ;;  %v1847_v11 = vrot.slane %v6776_v9, 1 }
 0x143   : > { %1403 = vmatmul.bf16.gmra.mxu3 %v6945_v44  ;;  %v6962_v56 = vsel %vm575_vm0, %v702_v40, %v706_v6  ;;  %v5663_v40 = vld [vmem:[#allocation5 + $0x238] sm:$0xff] }
 0x144   : > { %1950 = vmatpush.bf16.msrb.mxu1 %v5633_v0  ;;  %8806 = vst [vmem:[#allocation96_spill] sm:$0xff] %v6962_v56  ;;  %2557 = vmatpush.bf16.msra.mxu0 %v5663_v40  ;;  %v8811_v40 = vunpack.c.l.b16 %v6732_v41  ;;  %v1515_v41 = vshll.u32 %v6776_v9, 16 }
 0x145   : > { %v1179_v59 = vpop.f32.mrf.mxu2  ;;  %v6953_v37 = vpop.f32.mrf.mxu0 }
 0x146   : > { %v6949_v34 = vpop.f32.mrf.mxu3  ;;  %v6951_v53 = vadd.f32 %v1179_v59, %v973_v61  ;;  %8804 = vst [vmem:[#allocation94_spill] sm:$0xff] %v6953_v37  ;;  %v6955_v62 = vpop.f32.mrf.mxu1  ;;  %v5640_v59 = vld [vmem:[#allocation5 + $0x180] sm:$0xff] }
 0x147   : > { %8802 = vst [vmem:[#allocation92_spill] sm:$0xff] %v6949_v34  ;;  %2149 = vmatpush.bf16.msrb.mxu2 %v5640_v59 }
 0x148   : > { %8803 = vst [vmem:[#allocation93_spill] sm:$0xff] %v6951_v53  ;;  %v8808_v53 = vunpack.c.l.b16 %v6706_v8  ;;  %1951 = vmatpush.bf16.msrb.mxu1 %v5632_v27 }
 0x149   : > { %8805 = vst [vmem:[#allocation95_spill] sm:$0xff] %v6955_v62 }
 0x14a   : > { %v6968_v13 = vpack.c.b16 %v8808_v53, %v8807_v14  ;;  %2150 = vmatmul.bf16.vlgmr.msrb.gmra.mxu2 %v6535_v49  ;;  %v708_v49 = vshrl.u32 %v6671_v30, 16 }
 0x14c   : > { %v6985_v8 = vor.u32 %v708_v49, %v706_v6  ;;  %v1510_v6 = vshll.u32 %v6742_v21, 16 }
 0x14d   : > { %v6959_v61 = vpop.f32.mrf.mxu2  ;;  %v820_v62 = vpop.f32.mrf.mxu0 }
 0x14e   : > { %v1226_v34 = vpop.f32.mrf.mxu3  ;;  %v977_v37 = vpop.f32.mrf.mxu1  ;;  %8809 = vst [vmem:[#allocation97_spill] sm:$0xff] %v6985_v8 }
 0x14f   : > { %v978_v43 = vadd.f32 %v977_v37, %v820_v62  ;;  %v1846_v34 = vrot.slane %v6742_v21, 1 }
 0x150   : > { %859 = vmatmul.bf16.gmra.mxu0 %v6962_v56  ;;  %v1517_v56 = vrot.slane %v1515_v41, 1  ;;  %v1851_v41 = vrot.slane %v6862_v36, 1 }
 0x151   : > { %v1848_v12 = vsel %vm1041_vm1, %v1846_v34, %v1847_v11  ;;  %v8810_v34 = vunpack.c.l.b16 %v6708_v10  ;;  %v1508_v10 = vshrl.u32 %v6742_v21, 16 }
 0x152   : > { %1952 = vmatmul.bf16.vlgmr.msrb.gmra.mxu1 %v1848_v12 }
 0x153   : > { %1408 = vmatmul.bf16.gmra.mxu3 %v6968_v13  ;;  %v6991_v12 = vpack.c.b16 %v8811_v40, %v8810_v34  ;;  %v1512_v40 = vrot.slane %v1510_v6, 1 }
 0x155   : > { %v1184_v53 = vpop.f32.mrf.mxu2  ;;  %v6978_v62 = vpop.f32.mrf.mxu0 }
 0x156   : > { %v1228_v29 = vpop.f32.mrf.mxu3  ;;  %v6976_v37 = vadd.f32 %v1184_v53, %v978_v43  ;;  %v6980_v0 = vpop.f32.mrf.mxu1  ;;  %v1849_v53 = vrot.slane %v6825_v54, 1 }
 0x158   : > { %v1850_v29 = vsel %vm1041_vm1, %v1847_v11, %v1849_v53  ;;  %v1513_v11 = vor.u32 %v1512_v40, %v1508_v10  ;;  %v5662_v10 = vld [vmem:[#allocation5 + $0x230] sm:$0xff] }
 0x159   : > { %2558 = vmatpush.bf16.msra.mxu0 %v5662_v10 }
 0x15a   : > { %2155 = vmatmul.bf16.gmra.mxu2 %v6570_v3  ;;  %v1518_v6 = vsel %vm575_vm0, %v1513_v11, %v1517_v56 }
 0x15d   : > { %v6983_v59 = vpop.f32.mrf.mxu2  ;;  %v825_v27 = vpop.f32.mrf.mxu0 }
 0x15e   : > { %v1229_v14 = vpop.f32.mrf.mxu3  ;;  %v982_v2 = vpop.f32.mrf.mxu1 }
 0x15f   : > { %v983_v43 = vadd.f32 %v982_v2, %v825_v27 }
 0x160   : > { %863 = vmatmul.bf16.gmra.mxu0 %v6985_v8  ;;  %v5654_v8 = vld [vmem:[#allocation5 + $0x1f0] sm:$0xff] }
 0x161   : > { %2361 = vmatpush.bf16.msrb.mxu3 %v5654_v8  ;;  %v1852_v8 = vsel %vm1041_vm1, %v1849_v53, %v1851_v41  ;;  %v950_v53 = vadd.f32 %v6806_v5, %v6804_v42 }
 0x162   : > { %1957 = vmatmul.bf16.gmra.mxu1 %v1850_v29 }
 0x163   : > { %1413 = vmatmul.bf16.gmra.mxu3 %v6991_v12  ;;  %v1234_v10 = vadd.f32 %v6816_v7, %v950_v53 }
 0x165   : > { %v1189_v49 = vpop.f32.mrf.mxu2  ;;  %v7005_v27 = vpop.f32.mrf.mxu0 }
 0x166   : > { %v1374_v14 = vpop.f32.mrf.mxu3  ;;  %v7000_v34 = vadd.f32 %v1189_v49, %v983_v43  ;;  %v7007_v3 = vpop.f32.mrf.mxu1  ;;  %v8814_v49 = vunpack.c.l.b16 %v6734_v4 }
 0x167   : > { %v7003_v2 = vadd.f32 %v1374_v14, %v6763_v25  ;;  %8813 = vst [vmem:[#allocation99_spill] sm:$0xff] %v7007_v3  ;;  %v8815_v14 = vunpack.c.l.b16 %v6766_v22  ;;  %v8817_v22 = vunpack.c.l.b16 %v6768_v46 }
 0x169   : > { %8812 = vst [vmem:[#allocation98_spill] sm:$0xff] %v7003_v2  ;;  %v7019_v2 = vpack.c.b16 %v8815_v14, %v8814_v49 }
 0x16a   : > { %2160 = vmatmul.bf16.gmra.mxu2 %v6599_v48  ;;  %v1519_v48 = vshrl.u32 %v6776_v9, 16  ;;  %v8818_v9 = vunpack.c.l.b16 %v6809_v52 }
 0x16c   : > { %v1521_v14 = vor.u32 %v1519_v48, %v1517_v56  ;;  %v7048_v4 = vpack.c.b16 %v8818_v9, %v8817_v22  ;;  %v1853_v56 = vrot.slane %v6888_v51, 1 }
 0x16d   : > { %v7010_v30 = vpop.f32.mrf.mxu2  ;;  %v830_v29 = vpop.f32.mrf.mxu0 }
 0x16e   : > { %v1376_v21 = vpop.f32.mrf.mxu3  ;;  %v987_v25 = vpop.f32.mrf.mxu1  ;;  %v1854_v42 = vsel %vm1041_vm1, %v1851_v41, %v1853_v56 }
 0x16f   : > { %v7013_v43 = vadd.f32 %v1376_v21, %v6778_v20  ;;  %v988_v3 = vadd.f32 %v987_v25, %v830_v29  ;;  %v1523_v25 = vshll.u32 %v6825_v54, 16 }
 0x170   : > { %1715 = vmatmul.bf16.vlgmr.msrb.gmra.mxu0 %v1518_v6 }
 0x171   : > { %v1525_v6 = vrot.slane %v1523_v25, 1 }
 0x172   : > { %1962 = vmatmul.bf16.gmra.mxu1 %v1852_v8 }
 0x173   : > { %1418 = vmatmul.bf16.gmra.mxu3 %v7019_v2 }
 0x175   : > { %v1194_v20 = vpop.f32.mrf.mxu2  ;;  %v7031_v11 = vpop.f32.mrf.mxu0 }
 0x176   : > { %v1379_v40 = vpop.f32.mrf.mxu3  ;;  %v7026_v21 = vadd.f32 %v1194_v20, %v988_v3  ;;  %v7033_v29 = vpop.f32.mrf.mxu1 }
 0x177   : > { %v7029_v49 = vadd.f32 %v1379_v40, %v6802_v17 }
 0x179   : > { %8816 = vst [vmem:[#allocation100_spill] sm:$0xff] %v7029_v49  ;;  %v1526_v49 = vsel %vm575_vm0, %v1521_v14, %v1525_v6 }
 0x17a   : > { %2165 = vmatmul.bf16.gmra.mxu2 %v6632_v23  ;;  %v1527_v23 = vshrl.u32 %v6825_v54, 16  ;;  %v8820_v54 = vunpack.c.l.b16 %v6465_v47 }
 0x17c   : > { %v1529_v41 = vor.u32 %v1527_v23, %v1525_v6 }
 0x17d   : > { %v7040_v3 = vpop.f32.mrf.mxu2  ;;  %v835_v20 = vpop.f32.mrf.mxu0 }
 0x17e   : > { %v1381_v8 = vpop.f32.mrf.mxu3  ;;  %v992_v40 = vpop.f32.mrf.mxu1 }
 0x17f   : > { %v7042_v17 = vadd.f32 %v1381_v8, %v1234_v10  ;;  %v993_v5 = vadd.f32 %v992_v40, %v835_v20  ;;  %v955_v10 = vadd.f32 %v6848_v15, %v6846_v32  ;;  %v5653_v32 = vld [vmem:[#allocation5 + $0x1e8] sm:$0xff] }
 0x180   : > { %1720 = vmatmul.bf16.gmra.mxu0 %v1526_v49  ;;  %v1531_v49 = vshll.u32 %v6862_v36, 16  ;;  %2362 = vmatpush.bf16.msrb.mxu3 %v5653_v32 }
 0x181   : > { %v1236_v20 = vadd.f32 %v6853_v39, %v955_v10  ;;  %v1855_v39 = vrot.slane %v6920_v28, 1 }
 0x182   : > { %1967 = vmatmul.bf16.gmra.mxu1 %v1854_v42  ;;  %v1533_v8 = vrot.slane %v1531_v49, 1 }
 0x183   : > { %1423 = vmatmul.bf16.gmra.mxu3 %v7048_v4  ;;  %v1856_v6 = vsel %vm1041_vm1, %v1853_v56, %v1855_v39  ;;  %v960_v56 = vadd.f32 %v6875_v16, %v6873_v50 }
 0x184   : > { %v1534_v52 = vsel %vm575_vm0, %v1529_v41, %v1533_v8 }
 0x185   : > { %v1199_v7 = vpop.f32.mrf.mxu2  ;;  %v7060_v53 = vpop.f32.mrf.mxu0 }
 0x186   : > { %v1384_v48 = vpop.f32.mrf.mxu3  ;;  %v7055_v25 = vadd.f32 %v1199_v7, %v993_v5  ;;  %v7062_v14 = vpop.f32.mrf.mxu1  ;;  %v8819_v7 = vunpack.c.l.b16 %v6811_v18 }
 0x187   : > { %v7058_v22 = vadd.f32 %v1384_v48, %v6844_v33 }
 0x188   : > { %v7077_v48 = vpack.c.b16 %v8820_v54, %v8819_v7  ;;  %v1238_v54 = vadd.f32 %v6879_v31, %v960_v56  ;;  %v1857_v31 = vrot.slane %v6945_v44, 1 }
 0x18a   : > { %2170 = vmatmul.bf16.gmra.mxu2 %v6663_v1  ;;  %v1535_v1 = vshrl.u32 %v6862_v36, 16  ;;  %v8821_v36 = vunpack.c.l.b16 %v6468_v55  ;;  %v1858_v16 = vsel %vm1041_vm1, %v1855_v39, %v1857_v31  ;;  %v8831_v55 = vld [vmem:[#allocation64_spill] sm:$0xff] }
 0x18d   : > { %v7069_v40 = vpop.f32.mrf.mxu2  ;;  %v840_v5 = vpop.f32.mrf.mxu0 }
 0x18e   : > { %v1386_v9 = vpop.f32.mrf.mxu3  ;;  %v997_v42 = vpop.f32.mrf.mxu1 }
 0x18f   : > { %v7071_v33 = vadd.f32 %v1386_v9, %v1236_v20  ;;  %v998_v15 = vadd.f32 %v997_v42, %v840_v5  ;;  %v5661_v5 = vld [vmem:[#allocation5 + $0x228] sm:$0xff]  ;;  %v1537_v42 = vor.u32 %v1535_v1, %v1533_v8 }
 0x190   : > { %1725 = vmatmul.bf16.gmra.mxu0 %v1534_v52  ;;  %v1539_v52 = vshll.u32 %v6888_v51, 16 }
 0x191   : > { %2559 = vmatpush.bf16.msra.mxu0 %v5661_v5 }
 0x192   : > { %1972 = vmatmul.bf16.gmra.mxu1 %v1856_v6  ;;  %v1541_v7 = vrot.slane %v1539_v52, 1 }
 0x193   : > { %1428 = vmatmul.bf16.gmra.mxu3 %v7077_v48 }
 0x194   : > { %v1542_v5 = vsel %vm575_vm0, %v1537_v42, %v1541_v7  ;;  %v1543_v42 = vshrl.u32 %v6888_v51, 16 }
 0x195   : > { %v1204_v23 = vpop.f32.mrf.mxu2  ;;  %v7089_v41 = vpop.f32.mrf.mxu0 }
 0x196   : > { %v1389_v49 = vpop.f32.mrf.mxu3  ;;  %v7084_v10 = vadd.f32 %v1204_v23, %v998_v15  ;;  %v7091_v9 = vpop.f32.mrf.mxu1 }
 0x197   : > { %v7087_v20 = vadd.f32 %v1389_v49, %v6871_v63  ;;  %v8822_v49 = vunpack.c.l.b16 %v6502_v24 }
 0x199   : > { %v7106_v47 = vpack.c.b16 %v8822_v49, %v8821_v36 }
 0x19a   : > { %2175 = vmatmul.bf16.gmra.mxu2 %v6702_v57  ;;  %v1547_v57 = vshll.u32 %v6920_v28, 16 }
 0x19d   : > { %v7098_v32 = vpop.f32.mrf.mxu2  ;;  %v845_v6 = vpop.f32.mrf.mxu0 }
 0x19e   : > { %v1391_v63 = vpop.f32.mrf.mxu3  ;;  %v1002_v23 = vpop.f32.mrf.mxu1 }
 0x19f   : > { %v7100_v15 = vadd.f32 %v1391_v63, %v1238_v54  ;;  %v1003_v50 = vadd.f32 %v1002_v23, %v845_v6  ;;  %v965_v63 = vadd.f32 %v6905_v45, %v6903_v19  ;;  %v1545_v6 = vor.u32 %v1543_v42, %v1541_v7 }
 0x1a0   : > { %1730 = vmatmul.bf16.gmra.mxu0 %v1542_v5  ;;  %v1549_v23 = vrot.slane %v1547_v57, 1  ;;  %v1859_v19 = vrot.slane %v6968_v13, 1  ;;  %v1551_v57 = vshrl.u32 %v6920_v28, 16 }
 0x1a1   : > { %v1240_v39 = vadd.f32 %v6909_v35, %v965_v63  ;;  %v1555_v63 = vshll.u32 %v6945_v44, 16 }
 0x1a2   : > { %1977 = vmatmul.bf16.gmra.mxu1 %v1858_v16  ;;  %v1550_v51 = vsel %vm575_vm0, %v1545_v6, %v1549_v23  ;;  %v1860_v35 = vsel %vm1041_vm1, %v1857_v31, %v1859_v19  ;;  %v5660_v6 = vld [vmem:[#allocation5 + $0x220] sm:$0xff]  ;;  %v8827_v31 = vld [vmem:[#allocation89_spill] sm:$0xff] }
 0x1a3   : > { %1433 = vmatmul.bf16.gmra.mxu3 %v7106_v47  ;;  %2560 = vmatpush.bf16.msra.mxu0 %v5660_v6 }
 0x1a5   : > { %v1209_v8 = vpop.f32.mrf.mxu2  ;;  %v7118_v54 = vpop.f32.mrf.mxu0 }
 0x1a6   : > { %v1394_v1 = vpop.f32.mrf.mxu3  ;;  %v7113_v52 = vadd.f32 %v1209_v8, %v1003_v50  ;;  %v8824_v50 = vld [vmem:[#allocation27_spill] sm:$0xff]  ;;  %v7172_v18 = vpop.f32.mrf.mxu1 }
 0x1a7   : > { %v7116_v56 = vadd.f32 %v1394_v1, %v6901_v58  ;;  %v8823_v58 = vunpack.c.l.b16 %v6505_v26  ;;  %v5652_v8 = vld [vmem:[#allocation5 + $0x1e0] sm:$0xff]  ;;  %v8830_v26 = vld [vmem:[#allocation32_spill] sm:$0xff] }
 0x1a8   : > { %v8825_v1 = vld [vmem:[#allocation59_spill] sm:$0xff]  ;;  %2363 = vmatpush.bf16.msrb.mxu3 %v5652_v8 }
 0x1a9   : > { %v7132_v16 = vpack.c.b16 %v8824_v50, %v8823_v58  ;;  %v1553_v58 = vor.u32 %v1551_v57, %v1549_v23  ;;  %v1557_v50 = vrot.slane %v1555_v63, 1  ;;  %v1861_v23 = vrot.slane %v6991_v12, 1 }
 0x1aa   : > { %2180 = vmatmul.bf16.gmra.mxu2 %v8825_v1 }
 0x1ab   : > { %v1558_v24 = vsel %vm575_vm0, %v1553_v58, %v1557_v50  ;;  %v1862_v63 = vsel %vm1041_vm1, %v1859_v19, %v1861_v23 }
 0x1ad   : > { %v7127_v5 = vpop.f32.mrf.mxu0 }
 0x1ae   : > { %v1396_v36 = vpop.f32.mrf.mxu3 }
 0x1af   : > { %v7125_v49 = vadd.f32 %v1396_v36, %v1240_v39  ;;  %v8826_v39 = vld [vmem:[#allocation88_spill] sm:$0xff] }
 0x1b0   : > { %1735 = vmatmul.bf16.gmra.mxu0 %v1550_v51  ;;  %v970_v36 = vadd.f32 %v8826_v39, %v6928_v38  ;;  %v5873_v51 = vld [vmem:[%s6442_s25 + $0x88] sm:$0xff]  }
 0x1b1   : > { %v5807_v6 = vunpack.c.l.bf16 %v5873_v51  ;;  %v5651_v38 = vld [vmem:[#allocation5 + $0x1d8] sm:$0xff] }
 0x1b2   : > { %1982 = vmatmul.bf16.gmra.mxu1 %v1860_v35  ;;  %v1242_v8 = vadd.f32 %v8827_v31, %v970_v36  ;;  %2364 = vmatpush.bf16.msrb.mxu3 %v5651_v38  ;;  %v5650_v36 = vld [vmem:[#allocation5 + $0x1d0] sm:$0xff] }
 0x1b3   : > { %1438 = vmatmul.bf16.gmra.mxu3 %v7132_v16  ;;  %v411_v57 = vmax.f32 %v5807_v6, 0.0  ;;  %v8836_v6 = vld [vmem:[#allocation95_spill] sm:$0xff] }
 0x1b5   : > { %v7142_v42 = vpop.f32.mrf.mxu0 }
 0x1b6   : > { %v1399_v45 = vpop.f32.mrf.mxu3  ;;  %2365 = vmatpush.bf16.msrb.mxu3 %v5650_v36 }
 0x1b7   : > { %v7140_v7 = vadd.f32 %v1399_v45, %v6926_v60  ;;  %v8829_v45 = vld [vmem:[#allocation28_spill] sm:$0xff] }
 0x1b8   : > { %v7156_v28 = vpack.c.b16 %v8830_v26, %v8829_v45  ;;  %v8832_v26 = vld [vmem:[#allocation93_spill] sm:$0xff]  ;;  %v8835_v45 = vld [vmem:[#allocation94_spill] sm:$0xff] }
 0x1b9   : > { %v975_v38 = vadd.f32 %v8836_v6, %v8835_v45  ;;  %v5808_v6 = vunpack.c.h.bf16 %v5873_v51 }
 0x1ba   : > { %2185 = vmatmul.bf16.gmra.mxu2 %v8831_v55  ;;  %v1559_v55 = vshrl.u32 %v6945_v44, 16  ;;  %v5648_v44 = vld [vmem:[#allocation5 + $0x1c0] sm:$0xff] }
 0x1bd   : > { %v7152_v60 = vpop.f32.mrf.mxu0 }
 0x1be   : > { %v1401_v1 = vpop.f32.mrf.mxu3 }
 0x1bf   : > { %v7150_v35 = vadd.f32 %v1401_v1, %v1242_v8  ;;  %v1563_v8 = vshll.u32 %v6968_v13, 16  ;;  %v5649_v1 = vld [vmem:[#allocation5 + $0x1c8] sm:$0xff] }
 0x1c0   : > { %1740 = vmatmul.bf16.gmra.mxu0 %v1558_v24  ;;  %v451_v24 = vpack.c.bf16 %v411_v57, %v411_v57  ;;  %2366 = vmatpush.bf16.msrb.mxu3 %v5649_v1 }
 0x1c1   : > { %8828 = vst [vmem:[#allocation27_spill] sm:$0xff] %v7150_v35  ;;  %v1565_v46 = vrot.slane %v1563_v8, 1 }
 0x1c2   : > { %1987 = vmatmul.bf16.gmra.mxu1 %v1862_v63  ;;  %v7174_v19 = vunpack.c.l.b16 %v451_v24  ;;  %v1561_v63 = vor.u32 %v1559_v55, %v1557_v50  ;;  %v8840_v50 = vld [vmem:[#allocation71_spill] sm:$0xff]  ;;  %v412_v55 = vmax.f32 %v5808_v6, 0.0 }
 0x1c3   : > { %1443 = vmatmul.bf16.gmra.mxu3 %v7156_v28 }
 0x1c4   : > { %v1566_v24 = vsel %vm575_vm0, %v1561_v63, %v1565_v46  ;;  %2367 = vmatpush.bf16.msrb.mxu3 %v5648_v44  ;;  %v452_v51 = vpack.c.bf16 %v412_v55, %v412_v55  ;;  %v1571_v44 = vshll.u32 %v6991_v12, 16 }
 0x1c5   : > { %v7166_v58 = vpop.f32.mrf.mxu0 }
 0x1c6   : > { %v1404_v39 = vpop.f32.mrf.mxu3  ;;  %8834 = vst [vmem:[#allocation88_spill] sm:$0xff] %v7166_v58  ;;  %v8839_v58 = vld [vmem:[#allocation47_spill] sm:$0xff]  ;;  %v7199_v6 = vunpack.c.l.b16 %v452_v51 }
 0x1c7   : > { %v7164_v31 = vadd.f32 %v1404_v39, %v8832_v26  ;;  %v1244_v39 = vadd.f32 %v6959_v61, %v975_v38  ;;  %v7177_v26 = vpop.f32.mrf.mxu2  ;;  %v7185_v45 = vpack.c.b16 %v7174_v19, %v8839_v58  ;;  %v1863_v61 = vrot.slane %v7019_v2, 1 }
 0x1c9   : > { %8833 = vst [vmem:[#allocation59_spill] sm:$0xff] %v7164_v31  ;;  %v1864_v1 = vsel %vm1041_vm1, %v1861_v23, %v1863_v61  ;;  %v1573_v23 = vrot.slane %v1571_v44, 1 }
 0x1ca   : > { %2190 = vmatmul.bf16.gmra.mxu2 %v8840_v50  ;;  %v980_v50 = vadd.f32 %v6980_v0, %v6978_v62  ;;  %v8843_v62 = vld [vmem:[#allocation78_spill] sm:$0xff] }
 0x1cd   : > { %v7181_v36 = vpop.f32.mrf.mxu0 }
 0x1ce   : > { %v1406_v57 = vpop.f32.mrf.mxu3  ;;  %8838 = vst [vmem:[#allocation28_spill] sm:$0xff] %v7181_v36 }
 0x1cf   : > { %v7179_v31 = vadd.f32 %v1406_v57, %v1244_v39  ;;  %v1953_v8 = vpop.f32.mrf.mxu1  ;;  %v2151_v38 = vpop.f32.mrf.mxu2  ;;  %v1567_v57 = vshrl.u32 %v6968_v13, 16  ;;  %v1299_v13 = vpack.c.b16 %v7199_v6, %v7199_v6 }
 0x1d0   : > { %1745 = vmatmul.bf16.gmra.mxu0 %v1566_v24  ;;  %v5659_v24 = vld [vmem:[#allocation5 + $0x218] sm:$0xff] }
 0x1d1   : > { %8837 = vst [vmem:[#allocation89_spill] sm:$0xff] %v7179_v31  ;;  %v1569_v31 = vor.u32 %v1567_v57, %v1565_v46  ;;  %2561 = vmatpush.bf16.msra.mxu0 %v5659_v24  ;;  %v1865_v46 = vrot.slane %v7048_v4, 1 }
 0x1d2   : > { %1992 = vmatmul.bf16.gmra.mxu1 %v1864_v1  ;;  %v1246_v1 = vadd.f32 %v6983_v59, %v980_v50  ;;  %v1575_v50 = vshrl.u32 %v6991_v12, 16 }
 0x1d3   : > { %1448 = vmatmul.bf16.gmra.mxu3 %v7185_v45  ;;  %v1866_v51 = vsel %vm1041_vm1, %v1863_v61, %v1865_v46 }
 0x1d5   : > { %v862_v63 = vpop.f32.mrf.mxu0 }
 0x1d6   : > { %v1409_v39 = vpop.f32.mrf.mxu3 }
 0x1d7   : > { %v7193_v58 = vadd.f32 %v1409_v39, %v6976_v37  ;;  %v1955_v36 = vpop.f32.mrf.mxu1  ;;  %v2153_v37 = vpop.f32.mrf.mxu2 }
 0x1d9   : > { %8841 = vst [vmem:[#allocation32_spill] sm:$0xff] %v7193_v58  ;;  %v1574_v58 = vsel %vm575_vm0, %v1569_v31, %v1573_v23  ;;  %v1579_v31 = vshll.u32 %v7019_v2, 16 }
 0x1da   : > { %2195 = vmatmul.bf16.gmra.mxu2 %v8843_v62 }
 0x1dd   : > { %v864_v55 = vpop.f32.mrf.mxu0 }
 0x1de   : > { %v1411_v39 = vpop.f32.mrf.mxu3  ;;  %v1581_v55 = vrot.slane %v1579_v31, 1 }
 0x1df   : > { %v7202_v63 = vadd.f32 %v1411_v39, %v1246_v1  ;;  %v1958_v0 = vpop.f32.mrf.mxu1  ;;  %v2156_v59 = vpop.f32.mrf.mxu2  ;;  %v1577_v39 = vor.u32 %v1575_v50, %v1573_v23  ;;  %v8848_v23 = vld [vmem:[#allocation35_spill] sm:$0xff] }
 0x1e0   : > { %1750 = vmatmul.bf16.gmra.mxu0 %v1574_v58  ;;  %v8845_v58 = vld [vmem:[#allocation99_spill] sm:$0xff] }
 0x1e1   : > { %8842 = vst [vmem:[#allocation64_spill] sm:$0xff] %v7202_v63  ;;  %v985_v1 = vadd.f32 %v8845_v58, %v7005_v27  ;;  %v1867_v27 = vrot.slane %v7077_v48, 1 }
 0x1e2   : > { %1997 = vmatmul.bf16.gmra.mxu1 %v1866_v51 }
 0x1e3   : > { %1452 = vmatmul.bf16.gmra.mxu3 %v1299_v13  ;;  %v1248_v62 = vadd.f32 %v7010_v30, %v985_v1  ;;  %v1868_v30 = vsel %vm1041_vm1, %v1865_v46, %v1867_v27  ;;  %v990_v46 = vadd.f32 %v7033_v29, %v7031_v11  ;;  %v8851_v29 = vld [vmem:[#allocation26_spill] sm:$0xff] }
 0x1e5   : > { %v865_v24 = vpop.f32.mrf.mxu0 }
 0x1e6   : > { %v1414_v57 = vpop.f32.mrf.mxu3 }
 0x1e7   : > { %v7211_v44 = vadd.f32 %v1414_v57, %v7000_v34  ;;  %v1960_v13 = vpop.f32.mrf.mxu1  ;;  %v2158_v61 = vpop.f32.mrf.mxu2  ;;  %v1582_v34 = vsel %vm575_vm0, %v1577_v39, %v1581_v55  ;;  %v8846_v57 = vld [vmem:[#allocation98_spill] sm:$0xff] }
 0x1e9   : > { %8844 = vst [vmem:[#allocation93_spill] sm:$0xff] %v7211_v44  ;;  %v8847_v44 = vld [vmem:[#allocation21_spill] sm:$0xff] }
 0x1ea   : > { %2200 = vmatmul.bf16.gmra.mxu2 %v8847_v44  ;;  %v1587_v44 = vshll.u32 %v7048_v4, 16 }
 0x1ed   : > { %v1716_v51 = vpop.f32.mrf.mxu0 }
 0x1ee   : > { %v1416_v63 = vpop.f32.mrf.mxu3  ;;  %v1798_v24 = vadd.f32 %v1716_v51, %v8846_v57 }
 0x1ef   : > { %v7218_v35 = vadd.f32 %v1416_v63, %v1248_v62  ;;  %v1963_v50 = vpop.f32.mrf.mxu1  ;;  %v2161_v63 = vpop.f32.mrf.mxu2  ;;  %v5671_v62 = vld [vmem:[#allocation7 + $0x38] sm:$0xff] }
 0x1f0   : > { %v2035_v12 = vadd.f32 %v1953_v8, %v1798_v24  ;;  %1755 = vmatmul.bf16.gmra.mxu0 %v1582_v34  ;;  %v1583_v8 = vshrl.u32 %v7019_v2, 16  ;;  %3363 = vmatpush.bf16.msra.mxu2 %v5671_v62  ;;  %v1589_v24 = vrot.slane %v1587_v44, 1  ;;  %v1250_v2 = vadd.f32 %v7040_v3, %v990_v46 }
 0x1f2   : > { %v7225_v31 = vadd.f32 %v2151_v38, %v2035_v12  ;;  %2002 = vmatmul.bf16.gmra.mxu1 %v1868_v30  ;;  %v5679_v38 = vld [vmem:[#allocation7 + $0x78] sm:$0xff]  ;;  %v1585_v57 = vor.u32 %v1583_v8, %v1581_v55  ;;  %v8852_v55 = vld [vmem:[#allocation39_spill] sm:$0xff] }
 0x1f3   : > { %2368 = vmatmul.bf16.vlgmr.msrb.gmra.mxu3 %v8848_v23  ;;  %3242 = vmatpush.bf16.msra.mxu1 %v5679_v38 }
 0x1f5   : > { %v1718_v39 = vpop.f32.mrf.mxu0 }
 0x1f6   : > { %v1419_v58 = vpop.f32.mrf.mxu3  ;;  %v1799_v51 = vadd.f32 %v1718_v39, %v7013_v43  ;;  %v8850_v39 = vld [vmem:[#allocation100_spill] sm:$0xff] }
 0x1f7   : > { %v7229_v1 = vadd.f32 %v1419_v58, %v7026_v21  ;;  %v1965_v12 = vpop.f32.mrf.mxu1  ;;  %v5658_v21 = vld [vmem:[#allocation5 + $0x210] sm:$0xff]  ;;  %v2163_v30 = vpop.f32.mrf.mxu2 }
 0x1f8   : > { %v2036_v34 = vadd.f32 %v1955_v36, %v1799_v51  ;;  %2562 = vmatpush.bf16.msra.mxu0 %v5658_v21  ;;  %v1590_v36 = vsel %vm575_vm0, %v1585_v57, %v1589_v24  ;;  %v1595_v57 = vshll.u32 %v7077_v48, 16 }
 0x1f9   : > { %8849 = vst [vmem:[#allocation94_spill] sm:$0xff] %v7229_v1 }
 0x1fa   : > { %v7236_v23 = vadd.f32 %v2153_v37, %v2036_v34  ;;  %2205 = vmatmul.bf16.gmra.mxu2 %v8851_v29  ;;  %v1869_v37 = vrot.slane %v7106_v47, 1 }
 0x1fc   : > { %v1870_v44 = vsel %vm1041_vm1, %v1867_v27, %v1869_v37 }
 0x1fd   : > { %v1721_v43 = vpop.f32.mrf.mxu0 }
 0x1fe   : > { %v1421_v58 = vpop.f32.mrf.mxu3  ;;  %v1800_v62 = vadd.f32 %v1721_v43, %v8850_v39  ;;  %v1597_v43 = vrot.slane %v1595_v57, 1 }
 0x1ff   : > { %v7239_v1 = vadd.f32 %v1421_v58, %v1250_v2  ;;  %v1968_v8 = vpop.f32.mrf.mxu1  ;;  %v2166_v51 = vpop.f32.mrf.mxu2 }
 0x200   : > { %v2037_v11 = vadd.f32 %v1958_v0, %v1800_v62  ;;  %1760 = vmatmul.bf16.gmra.mxu0 %v1590_v36  ;;  %v1591_v0 = vshrl.u32 %v7048_v4, 16 }
 0x202   : > { %v7246_v3 = vadd.f32 %v2156_v59, %v2037_v11  ;;  %2007 = vmatmul.bf16.gmra.mxu1 %v1870_v44  ;;  %v995_v59 = vadd.f32 %v7062_v14, %v7060_v53  ;;  %v1593_v58 = vor.u32 %v1591_v0, %v1589_v24  ;;  %v1871_v53 = vrot.slane %v7132_v16, 1  ;;  %v8854_v14 = vld [vmem:[#allocation44_spill] sm:$0xff] }
 0x203   : > { %2373 = vmatmul.bf16.gmra.mxu3 %v8852_v55  ;;  %v8853_v55 = vld [vmem:[#allocation31_spill] sm:$0xff]  ;;  %v1603_v0 = vshll.u32 %v7106_v47, 16 }
 0x204   : > { %v1252_v39 = vadd.f32 %v7069_v40, %v995_v59  ;;  %v1598_v29 = vsel %vm575_vm0, %v1593_v58, %v1597_v43  ;;  %v1872_v40 = vsel %vm1041_vm1, %v1869_v37, %v1871_v53 }
 0x205   : > { %v1723_v46 = vpop.f32.mrf.mxu0  ;;  %v1605_v59 = vrot.slane %v1603_v0, 1 }
 0x206   : > { %v1424_v34 = vpop.f32.mrf.mxu3  ;;  %v1801_v21 = vadd.f32 %v1723_v46, %v7042_v17 }
 0x207   : > { %v7250_v38 = vadd.f32 %v1424_v34, %v7055_v25  ;;  %v1970_v27 = vpop.f32.mrf.mxu1  ;;  %v2168_v25 = vpop.f32.mrf.mxu2 }
 0x208   : > { %v2038_v2 = vadd.f32 %v1960_v13, %v1801_v21  ;;  %v5670_v21 = vld [vmem:[#allocation7 + $0x30] sm:$0xff] }
 0x209   : > { %3364 = vmatpush.bf16.msra.mxu2 %v5670_v21 }
 0x20a   : > { %v7257_v36 = vadd.f32 %v2158_v61, %v2038_v2  ;;  %2210 = vmatmul.bf16.gmra.mxu2 %v8853_v55 }
 0x20d   : > { %v1726_v4 = vpop.f32.mrf.mxu0 }
 0x20e   : > { %v1426_v62 = vpop.f32.mrf.mxu3  ;;  %v1802_v17 = vadd.f32 %v1726_v4, %v7058_v22 }
 0x20f   : > { %v7260_v11 = vadd.f32 %v1426_v62, %v1252_v39  ;;  %v1973_v61 = vpop.f32.mrf.mxu1  ;;  %v7270_v44 = vpop.f32.mrf.mxu2 }
 0x210   : > { %v2039_v13 = vadd.f32 %v1963_v50, %v1802_v17  ;;  %1765 = vmatmul.bf16.gmra.mxu0 %v1598_v29  ;;  %v1599_v50 = vshrl.u32 %v7077_v48, 16  ;;  %v5657_v17 = vld [vmem:[#allocation5 + $0x208] sm:$0xff] }
 0x211   : > { %2563 = vmatpush.bf16.msra.mxu0 %v5657_v17 }
 0x212   : > { %v7267_v24 = vadd.f32 %v2161_v63, %v2039_v13  ;;  %2012 = vmatmul.bf16.gmra.mxu1 %v1872_v40  ;;  %v1000_v63 = vadd.f32 %v7091_v9, %v7089_v41  ;;  %v1601_v37 = vor.u32 %v1599_v50, %v1597_v43  ;;  %v1873_v43 = vrot.slane %v7156_v28, 1 }
 0x213   : > { %2378 = vmatmul.bf16.gmra.mxu3 %v8854_v14  ;;  %v1611_v50 = vshll.u32 %v7132_v16, 16 }
 0x214   : > { %v1254_v62 = vadd.f32 %v7098_v32, %v1000_v63  ;;  %v1606_v29 = vsel %vm575_vm0, %v1601_v37, %v1605_v59  ;;  %v8856_v32 = vld [vmem:[#allocation52_spill] sm:$0xff]  ;;  %v1874_v14 = vsel %vm1041_vm1, %v1871_v53, %v1873_v43 }
 0x215   : > { %v1728_v22 = vpop.f32.mrf.mxu0  ;;  %v1613_v53 = vrot.slane %v1611_v50, 1 }
 0x216   : > { %v1429_v34 = vpop.f32.mrf.mxu3  ;;  %v1803_v57 = vadd.f32 %v1728_v22, %v7071_v33  ;;  %v1607_v22 = vshrl.u32 %v7106_v47, 16 }
 0x217   : > { %v7273_v46 = vadd.f32 %v1429_v34, %v7084_v10  ;;  %v7280_v58 = vpop.f32.mrf.mxu1  ;;  %v5678_v10 = vld [vmem:[#allocation7 + $0x70] sm:$0xff]  ;;  %v7285_v48 = vpop.f32.mrf.mxu2 }
 0x218   : > { %v2040_v2 = vadd.f32 %v1965_v12, %v1803_v57  ;;  %3243 = vmatpush.bf16.msra.mxu1 %v5678_v10  ;;  %v1609_v21 = vor.u32 %v1607_v22, %v1605_v59 }
 0x21a   : > { %v7282_v39 = vadd.f32 %v2163_v30, %v2040_v2  ;;  %v8855_v30 = vld [vmem:[#allocation48_spill] sm:$0xff] }
 0x21b   : > { %2215 = vmatmul.bf16.gmra.mxu2 %v8855_v30 }
 0x21d   : > { %v1731_v12 = vpop.f32.mrf.mxu0 }
 0x21e   : > { %v1431_v4 = vpop.f32.mrf.mxu3  ;;  %v1804_v41 = vadd.f32 %v1731_v12, %v7087_v20 }
 0x21f   : > { %v7287_v33 = vadd.f32 %v1431_v4, %v1254_v62  ;;  %v7294_v13 = vpop.f32.mrf.mxu1  ;;  %v7299_v40 = vpop.f32.mrf.mxu2  ;;  %v8858_v4 = vld [vmem:[#allocation57_spill] sm:$0xff] }
 0x220   : > { %v2041_v9 = vadd.f32 %v1968_v8, %v1804_v41  ;;  %1770 = vmatmul.bf16.gmra.mxu0 %v1606_v29  ;;  %v5874_v29 = vld [vmem:[%s6442_s25 + $0x90] sm:$0xff]   ;;  %v8859_v41 = vld [vmem:[#allocation84_spill] sm:$0xff] }
 0x221   : > { %v5812_v22 = vunpack.c.h.bf16 %v5874_v29 }
 0x222   : > { %v7296_v55 = vadd.f32 %v2166_v51, %v2041_v9  ;;  %2017 = vmatmul.bf16.gmra.mxu1 %v1874_v14  ;;  %v1005_v51 = vadd.f32 %v7172_v18, %v7118_v54  ;;  %v7321_v18 = vpack.c.b16 %v7199_v6, %v7174_v19 }
 0x223   : > { %2383 = vmatmul.bf16.gmra.mxu3 %v8856_v32 }
 0x225   : > { %v1733_v8 = vpop.f32.mrf.mxu0 }
 0x226   : > { %v1434_v34 = vpop.f32.mrf.mxu3  ;;  %v1805_v0 = vadd.f32 %v1733_v8, %v7100_v15  ;;  %v1614_v15 = vsel %vm575_vm0, %v1609_v21, %v1613_v53  ;;  %v1619_v8 = vshll.u32 %v7156_v28, 16  ;;  %v5669_v21 = vld [vmem:[#allocation7 + $0x28] sm:$0xff] }
 0x227   : > { %v7302_v20 = vadd.f32 %v1434_v34, %v7113_v52  ;;  %v7309_v2 = vpop.f32.mrf.mxu1  ;;  %v1256_v52 = vadd.f32 %v7177_v26, %v1005_v51  ;;  %v7314_v37 = vpop.f32.mrf.mxu2  ;;  %v1875_v26 = vrot.slane %v7185_v45, 1  ;;  %v1615_v34 = vshrl.u32 %v7132_v16, 16  ;;  %3365 = vmatpush.bf16.msra.mxu2 %v5669_v21  ;;  %v8865_v21 = vld [vmem:[#allocation27_spill] sm:$0xff] }
 0x228   : > { %v2042_v57 = vadd.f32 %v1970_v27, %v1805_v0  ;;  %v8857_v27 = vld [vmem:[#allocation65_spill] sm:$0xff] }
 0x229   : > { %v1876_v19 = vsel %vm1041_vm1, %v1873_v43, %v1875_v26  ;;  %v8860_v43 = vld [vmem:[#allocation68_spill] sm:$0xff] }
 0x22a   : > { %v7311_v63 = vadd.f32 %v2168_v25, %v2042_v57  ;;  %v1008_v25 = vadd.f32 %v8857_v27, %v7127_v5  ;;  %v1010_v0 = vadd.f32 %v8860_v43, %v7142_v42  ;;  %v414_v57 = vmax.f32 %v5812_v22, 0.0  ;;  %v8864_v22 = vld [vmem:[#allocation87_spill] sm:$0xff] }
 0x22b   : > { %2220 = vmatmul.bf16.gmra.mxu2 %v7321_v18 }
 0x22c   : > { %v1257_v9 = vadd.f32 %v8859_v41, %v1008_v25 }
 0x22d   : > { %v1736_v62 = vpop.f32.mrf.mxu0 }
 0x22e   : > { %v1436_v47 = vpop.f32.mrf.mxu3  ;;  %v1806_v54 = vadd.f32 %v1736_v62, %v7116_v56  ;;  %v5811_v56 = vunpack.c.l.bf16 %v5874_v29 }
 0x22f   : > { %v7316_v10 = vadd.f32 %v1436_v47, %v1256_v52  ;;  %v7329_v12 = vpop.f32.mrf.mxu1  ;;  %v7337_v5 = vpop.f32.mrf.mxu2  ;;  %v1617_v52 = vor.u32 %v1615_v34, %v1613_v53  ;;  %v1621_v47 = vrot.slane %v1619_v8, 1  ;;  %v8863_v34 = vld [vmem:[#allocation62_spill] sm:$0xff] }
 0x230   : > { %v2043_v59 = vadd.f32 %v1973_v61, %v1806_v54  ;;  %1775 = vmatmul.bf16.gmra.mxu0 %v1614_v15  ;;  %v413_v30 = vmax.f32 %v5811_v56, 0.0  ;;  %v454_v15 = vpack.c.bf16 %v414_v57, %v414_v57  ;;  %v8861_v54 = vld [vmem:[#allocation85_spill] sm:$0xff]  ;;  %v5656_v56 = vld [vmem:[#allocation5 + $0x200] sm:$0xff]  ;;  %v1627_v57 = vshll.u32 %v7185_v45, 16 }
 0x231   : > { %v1258_v27 = vadd.f32 %v8861_v54, %v1010_v0  ;;  %2564 = vmatpush.bf16.msra.mxu0 %v5656_v56  ;;  %v1623_v0 = vshrl.u32 %v7156_v28, 16  ;;  %v8869_v56 = vld [vmem:[#allocation59_spill] sm:$0xff] }
 0x232   : > { %v7333_v17 = vadd.f32 %v7270_v44, %v2043_v59  ;;  %2022 = vmatmul.bf16.gmra.mxu1 %v1876_v19  ;;  %v453_v50 = vpack.c.bf16 %v413_v30, %v413_v30 }
 0x233   : > { %2388 = vmatmul.bf16.gmra.mxu3 %v8858_v4  ;;  %v5677_v4 = vld [vmem:[#allocation7 + $0x68] sm:$0xff]  ;;  %v1625_v54 = vor.u32 %v1623_v0, %v1621_v47 }
 0x234   : > { %v1505_v16 = vunpack.c.l.b16 %v453_v50  ;;  %3244 = vmatpush.bf16.msra.mxu1 %v5677_v4 }
 0x235   : > { %v1738_v14 = vpop.f32.mrf.mxu0 }
 0x236   : > { %v1439_v61 = vpop.f32.mrf.mxu3  ;;  %v1807_v44 = vadd.f32 %v1738_v14, %v7125_v49  ;;  %v2085_v49 = vunpack.c.l.b16 %v454_v15  ;;  %v7361_v41 = vpack.c.b16 %v1505_v16, %v7199_v6  ;;  %v8866_v15 = vld [vmem:[#allocation88_spill] sm:$0xff] }
 0x237   : > { %v7339_v32 = vadd.f32 %v1439_v61, %v1257_v9  ;;  %v7349_v62 = vpop.f32.mrf.mxu1  ;;  %v7352_v25 = vpop.f32.mrf.mxu2  ;;  %v8862_v9 = vld [vmem:[#allocation72_spill] sm:$0xff] }
 0x238   : > { %v7347_v51 = vadd.f32 %v7280_v58, %v1807_v44  ;;  %v1622_v58 = vsel %vm575_vm0, %v1617_v52, %v1621_v47  ;;  %v7357_v19 = vpack.c.b16 %v2085_v49, %v1505_v16  ;;  %v1013_v61 = vadd.f32 %v8862_v9, %v7152_v60  ;;  %v8868_v49 = vld [vmem:[#allocation90_spill] sm:$0xff] }
 0x239   : > { %v1877_v14 = vrot.slane %v7361_v41, 1 }
 0x23a   : > { %v1259_v44 = vadd.f32 %v8864_v22, %v1013_v61  ;;  %v8870_v61 = vld [vmem:[#allocation28_spill] sm:$0xff] }
 0x23b   : > { %2225 = vmatmul.bf16.gmra.mxu2 %v7357_v19  ;;  %v1878_v6 = vsel %vm1041_vm1, %v1875_v26, %v1877_v14  ;;  %v1629_v26 = vrot.slane %v1627_v57, 1 }
 0x23d   : > { %v1741_v29 = vpop.f32.mrf.mxu0 }
 0x23e   : > { %v1441_v59 = vpop.f32.mrf.mxu3  ;;  %v1808_v53 = vadd.f32 %v1741_v29, %v7140_v7 }
 0x23f   : > { %v7354_v42 = vadd.f32 %v1441_v59, %v1258_v27  ;;  %v1988_v8 = vpop.f32.mrf.mxu1  ;;  %v2186_v50 = vpop.f32.mrf.mxu2 }
 0x240   : > { %v2045_v30 = vadd.f32 %v7294_v13, %v1808_v53  ;;  %1780 = vmatmul.bf16.gmra.mxu0 %v1622_v58  ;;  %v1630_v53 = vsel %vm575_vm0, %v1625_v54, %v1629_v26 }
 0x242   : > { %v7370_v7 = vadd.f32 %v7299_v40, %v2045_v30  ;;  %2027 = vmatmul.bf16.gmra.mxu1 %v1878_v6  ;;  %v8867_v40 = vld [vmem:[#allocation75_spill] sm:$0xff]  ;;  %v8872_v6 = vld [vmem:[#allocation69_spill] sm:$0xff] }
 0x243   : > { %2393 = vmatmul.bf16.gmra.mxu3 %v8863_v34  ;;  %v1015_v16 = vadd.f32 %v8867_v40, %v8866_v15  ;;  %v8871_v30 = vld [vmem:[#allocation79_spill] sm:$0xff]  ;;  %v1631_v40 = vshrl.u32 %v7185_v45, 16 }
 0x244   : > { %v1018_v34 = vadd.f32 %v8871_v30, %v8870_v61  ;;  %v5676_v45 = vld [vmem:[#allocation7 + $0x60] sm:$0xff] }
 0x245   : > { %v1743_v43 = vpop.f32.mrf.mxu0  ;;  %v1260_v59 = vadd.f32 %v8868_v49, %v1015_v16  ;;  %v1635_v16 = vshll.u32 %v7361_v41, 16  ;;  %v1633_v49 = vor.u32 %v1631_v40, %v1629_v26  ;;  %3245 = vmatpush.bf16.msra.mxu1 %v5676_v45  ;;  %v1639_v40 = vshrl.u32 %v7361_v41, 16 }
 0x246   : > { %v1444_v60 = vpop.f32.mrf.mxu3  ;;  %v7379_v52 = vadd.f32 %v1743_v43, %v8865_v21 }
 0x247   : > { %v7374_v13 = vadd.f32 %v1444_v60, %v1259_v44  ;;  %v7383_v27 = vpop.f32.mrf.mxu1  ;;  %v7386_v4 = vpop.f32.mrf.mxu2  ;;  %v8873_v60 = vld [vmem:[#allocation92_spill] sm:$0xff] }
 0x248   : > { %v1261_v43 = vadd.f32 %v8873_v60, %v1018_v34  ;;  %v8876_v34 = vld [vmem:[#allocation76_spill] sm:$0xff] }
 0x24d   : > { %v1746_v28 = vpop.f32.mrf.mxu0 }
 0x24e   : > { %v1446_v29 = vpop.f32.mrf.mxu3  ;;  %v1810_v9 = vadd.f32 %v1746_v28, %v8869_v56 }
 0x24f   : > { %v7388_v58 = vadd.f32 %v1446_v29, %v1260_v59  ;;  %v1993_v22 = vpop.f32.mrf.mxu1  ;;  %v2191_v0 = vpop.f32.mrf.mxu2  ;;  %v1637_v59 = vrot.slane %v1635_v16, 1 }
 0x250   : > { %v2047_v47 = vadd.f32 %v7329_v12, %v1810_v9  ;;  %1785 = vmatmul.bf16.gmra.mxu0 %v1630_v53  ;;  %v8874_v12 = vld [vmem:[#allocation89_spill] sm:$0xff]  ;;  %v8875_v9 = vld [vmem:[#allocation32_spill] sm:$0xff] }
 0x251   : > { %v1638_v56 = vsel %vm575_vm0, %v1633_v49, %v1637_v59  ;;  %v1641_v49 = vor.u32 %v1639_v40, %v1637_v59 }
 0x252   : > { %v7397_v44 = vadd.f32 %v7337_v5, %v2047_v47  ;;  %2031 = vmatmul.bf16.gmra.mxu1 %v1877_v14  ;;  %v5668_v5 = vld [vmem:[#allocation7 + $0x20] sm:$0xff] }
 0x253   : > { %2398 = vmatmul.bf16.gmra.mxu3 %v8872_v6  ;;  %3366 = vmatpush.bf16.msra.mxu2 %v5668_v5 }
 0x255   : > { %v1748_v15 = vpop.f32.mrf.mxu0 }
 0x256   : > { %v1449_v57 = vpop.f32.mrf.mxu3  ;;  %v7405_v54 = vadd.f32 %v1748_v15, %v8874_v12 }
 0x257   : > { %v7400_v21 = vadd.f32 %v1449_v57, %v1261_v43  ;;  %v7407_v29 = vpop.f32.mrf.mxu1  ;;  %v7409_v28 = vpop.f32.mrf.mxu2  ;;  %v8877_v57 = vld [vmem:[#allocation64_spill] sm:$0xff] }
 0x25d   : > { %v1751_v14 = vpop.f32.mrf.mxu0 }
 0x25e   : > { %v1451_v53 = vpop.f32.mrf.mxu3  ;;  %v1812_v61 = vadd.f32 %v1751_v14, %v8875_v9 }
 0x25f   : > { %v1998_v26 = vpop.f32.mrf.mxu1  ;;  %v2196_v6 = vpop.f32.mrf.mxu2  ;;  %v8879_v53 = vld [vmem:[#allocation93_spill] sm:$0xff] }
 0x260   : > { %v2049_v30 = vadd.f32 %v1988_v8, %v1812_v61  ;;  %1790 = vmatmul.bf16.gmra.mxu0 %v1638_v56 }
 0x262   : > { %v7414_v47 = vadd.f32 %v2186_v50, %v2049_v30  ;;  %v8880_v50 = vld [vmem:[#allocation80_spill] sm:$0xff] }
 0x263   : > { %2403 = vmatmul.bf16.gmra.mxu3 %v8876_v34 }
 0x265   : > { %v1753_v43 = vpop.f32.mrf.mxu0 }
 0x266   : > { %v1453_v60 = vpop.f32.mrf.mxu3  ;;  %v7417_v15 = vadd.f32 %v1753_v43, %v8877_v57 }
 0x267   : > { %v7420_v16 = vpop.f32.mrf.mxu1  ;;  %v7422_v12 = vpop.f32.mrf.mxu2 }
 0x268   : > { %8878 = vst [vmem:[#allocation95_spill] sm:$0xff] %v7422_v12  ;;  %v8906_v12 = vld [vmem:[#allocation63_spill] sm:$0xff] }
 0x26d   : > { %v1756_v5 = vpop.f32.mrf.mxu0 }
 0x26e   : > { %v1454_v8 = vpop.f32.mrf.mxu3  ;;  %v1814_v14 = vadd.f32 %v1756_v5, %v8879_v53  ;;  %v8885_v53 = vld [vmem:[#allocation82_spill] sm:$0xff] }
 0x26f   : > { %v2003_v9 = vpop.f32.mrf.mxu1  ;;  %v2201_v45 = vpop.f32.mrf.mxu2  ;;  %v8883_v8 = vld [vmem:[#allocation94_spill] sm:$0xff] }
 0x270   : > { %v2051_v56 = vadd.f32 %v1993_v22, %v1814_v14  ;;  %1794 = vmatmul.bf16.gmra.mxu0 %v1641_v49  ;;  %v5675_v14 = vld [vmem:[#allocation7 + $0x58] sm:$0xff] }
 0x271   : > { %3246 = vmatpush.bf16.msra.mxu1 %v5675_v14 }
 0x272   : > { %v7426_v61 = vadd.f32 %v2191_v0, %v2051_v56  ;;  %v5667_v0 = vld [vmem:[#allocation7 + $0x18] sm:$0xff] }
 0x273   : > { %2408 = vmatmul.bf16.gmra.mxu3 %v8880_v50  ;;  %3367 = vmatpush.bf16.msra.mxu2 %v5667_v0 }
 0x275   : > { %v1758_v34 = vpop.f32.mrf.mxu0 }
 0x276   : > { %v2369_v30 = vpop.f32.mrf.mxu3  ;;  %v7432_v60 = vadd.f32 %v1758_v34, %v7218_v35 }
 0x277   : > { %v7429_v41 = vadd.f32 %v2369_v30, %v7225_v31  ;;  %v7434_v59 = vpop.f32.mrf.mxu1  ;;  %v7436_v43 = vpop.f32.mrf.mxu2  ;;  %v8884_v31 = vld [vmem:[#allocation36_spill] sm:$0xff] }
 0x278   : > { %8881 = vst [vmem:[#allocation47_spill] sm:$0xff] %v7434_v59 }
 0x279   : > { %8882 = vst [vmem:[#allocation71_spill] sm:$0xff] %v7436_v43 }
 0x27d   : > { %v1761_v40 = vpop.f32.mrf.mxu0 }
 0x27e   : > { %v2371_v22 = vpop.f32.mrf.mxu3  ;;  %v1816_v49 = vadd.f32 %v1761_v40, %v8883_v8 }
 0x27f   : > { %v7439_v57 = vadd.f32 %v2371_v22, %v7236_v23  ;;  %v2008_v35 = vpop.f32.mrf.mxu1  ;;  %v2206_v50 = vpop.f32.mrf.mxu2 }
 0x280   : > { %v2053_v5 = vadd.f32 %v1998_v26, %v1816_v49  ;;  %2565 = vmatmul.bf16.vlgmr.msra.gmra.mxu0 %v8884_v31  ;;  %v8888_v31 = vld [vmem:[#allocation40_spill] sm:$0xff] }
 0x282   : > { %v7444_v56 = vadd.f32 %v2196_v6, %v2053_v5 }
 0x283   : > { %2413 = vmatmul.bf16.gmra.mxu3 %v8885_v53 }
 0x285   : > { %v1763_v34 = vpop.f32.mrf.mxu0 }
 0x286   : > { %v2374_v30 = vpop.f32.mrf.mxu3  ;;  %v7450_v22 = vadd.f32 %v1763_v34, %v7239_v1 }
 0x287   : > { %v7447_v23 = vadd.f32 %v2374_v30, %v7246_v3  ;;  %v7452_v40 = vpop.f32.mrf.mxu1  ;;  %v7454_v26 = vpop.f32.mrf.mxu2  ;;  %v8889_v3 = vld [vmem:[#allocation86_spill] sm:$0xff] }
 0x288   : > { %8886 = vst [vmem:[#allocation78_spill] sm:$0xff] %v7452_v40 }
 0x289   : > { %8887 = vst [vmem:[#allocation99_spill] sm:$0xff] %v7454_v26 }
 0x28d   : > { %v1766_v6 = vpop.f32.mrf.mxu0 }
 0x28e   : > { %v2376_v0 = vpop.f32.mrf.mxu3  ;;  %v1818_v49 = vadd.f32 %v1766_v6, %v7250_v38 }
 0x28f   : > { %v7457_v8 = vadd.f32 %v2376_v0, %v7257_v36  ;;  %v2013_v53 = vpop.f32.mrf.mxu1  ;;  %v2211_v1 = vpop.f32.mrf.mxu2 }
 0x290   : > { %v2055_v5 = vadd.f32 %v2003_v9, %v1818_v49  ;;  %2570 = vmatmul.bf16.gmra.mxu0 %v8888_v31 }
 0x292   : > { %v7462_v14 = vadd.f32 %v2201_v45, %v2055_v5  ;;  %v5666_v5 = vld [vmem:[#allocation7 + $0x10] sm:$0xff] }
 0x293   : > { %2418 = vmatmul.bf16.gmra.mxu3 %v8889_v3  ;;  %v8893_v3 = vld [vmem:[#allocation45_spill] sm:$0xff]  ;;  %3368 = vmatpush.bf16.msra.mxu2 %v5666_v5 }
 0x295   : > { %v1768_v26 = vpop.f32.mrf.mxu0 }
 0x296   : > { %v2379_v30 = vpop.f32.mrf.mxu3  ;;  %v7468_v36 = vadd.f32 %v1768_v26, %v7260_v11 }
 0x297   : > { %v7465_v34 = vadd.f32 %v2379_v30, %v7267_v24  ;;  %v7470_v0 = vpop.f32.mrf.mxu1  ;;  %v7472_v38 = vpop.f32.mrf.mxu2  ;;  %v8894_v24 = vld [vmem:[#allocation91_spill] sm:$0xff]  ;;  %v5674_v30 = vld [vmem:[#allocation7 + $0x50] sm:$0xff] }
 0x298   : > { %8890 = vst [vmem:[#allocation98_spill] sm:$0xff] %v7468_v36  ;;  %3247 = vmatpush.bf16.msra.mxu1 %v5674_v30  ;;  %v8898_v30 = vld [vmem:[#allocation53_spill] sm:$0xff] }
 0x299   : > { %8891 = vst [vmem:[#allocation21_spill] sm:$0xff] %v7470_v0 }
 0x29a   : > { %8892 = vst [vmem:[#allocation35_spill] sm:$0xff] %v7472_v38 }
 0x29d   : > { %v1771_v49 = vpop.f32.mrf.mxu0 }
 0x29e   : > { %v2381_v9 = vpop.f32.mrf.mxu3  ;;  %v1820_v45 = vadd.f32 %v1771_v49, %v7273_v46 }
 0x29f   : > { %v7475_v6 = vadd.f32 %v2381_v9, %v7282_v39  ;;  %v2018_v11 = vpop.f32.mrf.mxu1  ;;  %v2216_v0 = vpop.f32.mrf.mxu2 }
 0x2a0   : > { %v2057_v31 = vadd.f32 %v2008_v35, %v1820_v45  ;;  %2575 = vmatmul.bf16.gmra.mxu0 %v8893_v3  ;;  %v5687_v3 = vld [vmem:[#allocation7 + $0xb8] sm:$0xff] }
 0x2a1   : > { %3526 = vmatpush.bf16.msra.mxu3 %v5687_v3 }
 0x2a2   : > { %v7480_v26 = vadd.f32 %v2206_v50, %v2057_v31 }
 0x2a3   : > { %2423 = vmatmul.bf16.gmra.mxu3 %v8894_v24 }
 0x2a5   : > { %v1773_v9 = vpop.f32.mrf.mxu0 }
 0x2a6   : > { %v2384_v38 = vpop.f32.mrf.mxu3  ;;  %v7486_v46 = vadd.f32 %v1773_v9, %v7287_v33 }
 0x2a7   : > { %v7483_v39 = vadd.f32 %v2384_v38, %v7296_v55  ;;  %v7488_v35 = vpop.f32.mrf.mxu1  ;;  %v7490_v49 = vpop.f32.mrf.mxu2  ;;  %v8899_v55 = vld [vmem:[#allocation96_spill] sm:$0xff] }
 0x2a8   : > { %8895 = vst [vmem:[#allocation100_spill] sm:$0xff] %v7486_v46 }
 0x2a9   : > { %8896 = vst [vmem:[#allocation26_spill] sm:$0xff] %v7488_v35 }
 0x2aa   : > { %8897 = vst [vmem:[#allocation39_spill] sm:$0xff] %v7490_v49 }
 0x2ad   : > { %v1776_v50 = vpop.f32.mrf.mxu0 }
 0x2ae   : > { %v2386_v45 = vpop.f32.mrf.mxu3  ;;  %v1822_v31 = vadd.f32 %v1776_v50, %v7302_v20  ;;  %v2285_v20 = vshll.u32 %v7321_v18, 16 }
 0x2af   : > { %v7493_v5 = vadd.f32 %v2386_v45, %v7311_v63  ;;  %v2023_v33 = vpop.f32.mrf.mxu1  ;;  %v2221_v9 = vpop.f32.mrf.mxu2 }
 0x2b0   : > { %v2059_v24 = vadd.f32 %v2013_v53, %v1822_v31  ;;  %2580 = vmatmul.bf16.gmra.mxu0 %v8898_v30  ;;  %v2287_v50 = vrot.slane %v2285_v20, 1  ;;  %v2242_v31 = vadd.f32 %v7285_v48, %v7347_v51 }
 0x2b2   : > { %v7498_v38 = vadd.f32 %v2211_v1, %v2059_v24 }
 0x2b3   : > { %2428 = vmatmul.bf16.gmra.mxu3 %v8899_v55  ;;  %v5875_v55 = vld [vmem:[%s6442_s25 + $0x98] sm:$0xff]   ;;  %s4881_s25 = scalar_lea.hbm %s9045_s5, %s5588_s18 }
 0x2b4   : > { %v5815_v48 = vunpack.c.l.bf16 %v5875_v55  ;;  %v5816_v51 = vunpack.c.h.bf16 %v5875_v55  ;;  %s4884_s8 = sshll.u32 %s4881_s25, 4  ;;  %s4885_s8 = int_to_ptr.hbm [resolvable:$true] %s4884_s8 }
 0x2b5   : > { %v1778_v63 = vpop.f32.mrf.mxu0  ;;  %s6136_s29 = sshra.s32 %s4885_s8, 4  ;;  %s6137_s29 = int_to_ptr.hbm [resolvable:$true] %s6136_s29 }
 0x2b6   : > { %v2389_v49 = vpop.f32.mrf.mxu3  ;;  %v7504_v45 = vadd.f32 %v1778_v63, %v7316_v10  ;;  %s6138_s16 = scalar_lea.hbm %s6137_s29, 64  ;;  %p6143_p0 = scmp.lt.s32.totalorder %s6137_s29, %s9045_s5 }
 0x2b7   : > { %v7501_v35 = vadd.f32 %v2389_v49, %v7333_v17  ;;  %v7507_v53 = vpop.f32.mrf.mxu1  ;;  %v7511_v1 = vpop.f32.mrf.mxu2  ;;  %v8903_v49 = vld [vmem:[#allocation97_spill] sm:$0xff]  ;;  %p6139_p1 = scmp.ne.s32.totalorder %s6137_s29, %s6138_s16  ;;  %p6144_p2 = scmp.lt.s32.totalorder %s6142_s11, %s6138_s16 }
 0x2b8   : > { %8900 = vst [vmem:[#allocation31_spill] sm:$0xff] %v7504_v45  ;;  %v2288_v10 = vsel %vm575_vm0, %v8903_v49, %v2287_v50  ;;  %v8904_v45 = vld [vmem:[#allocation58_spill] sm:$0xff]  ;;  %v5673_v49 = vld [vmem:[#allocation7 + $0x48] sm:$0xff] }
 0x2b9   : > { %8901 = vst [vmem:[#allocation44_spill] sm:$0xff] %v7507_v53  ;;  %v5665_v53 = vld [vmem:[#allocation7 + $0x8] sm:$0xff]  ;;  %3248 = vmatpush.bf16.msra.mxu1 %v5673_v49  ;;  %p6140_p4 = pnand %p6139_p1, %p6356_p6  ;;  %p6145_p3 = por %p6144_p2, %p6143_p0 }
 0x2ba   : > { %8902 = vst [vmem:[#allocation48_spill] sm:$0xff] %v7511_v1  ;;  %3369 = vmatpush.bf16.msra.mxu2 %v5665_v53 }
 0x2bb   : > { %p6141_p11 = pneg %p6140_p4 }
 0x2bd   : > { %v1781_v30 = vpop.f32.mrf.mxu0  ;;  %p6146_p5 = pnand %p6145_p3, %p6141_p11 }
 0x2be   : > { %v2391_v3 = vpop.f32.mrf.mxu3  ;;  %v1824_v17 = vadd.f32 %v1781_v30, %v7339_v32  ;;  %v2289_v30 = vshrl.u32 %v7321_v18, 16 }
 0x2bf   : > { %v7513_v24 = vadd.f32 %v2391_v3, %v2242_v31  ;;  %v2028_v20 = vpop.f32.mrf.mxu1  ;;  %v2226_v31 = vpop.f32.mrf.mxu2 }
 0x2c0   : > { %v2061_v63 = vadd.f32 %v2018_v11, %v1824_v17  ;;  %2585 = vmatmul.bf16.gmra.mxu0 %v8904_v45  ;;  %v2293_v45 = vshll.u32 %v7357_v19, 16  ;;  %v415_v17 = vmax.f32 %v5815_v48, 0.0  ;;  %v2291_v55 = vor.u32 %v2289_v30, %v2287_v50  ;;  %v5686_v48 = vld [vmem:[#allocation7 + $0xb0] sm:$0xff] }
 0x2c1   : > { %3527 = vmatpush.bf16.msra.mxu3 %v5686_v48 }
 0x2c2   : > { %v7520_v40 = vadd.f32 %v2216_v0, %v2061_v63  ;;  %v416_v0 = vmax.f32 %v5816_v51, 0.0  ;;  %v2295_v53 = vrot.slane %v2293_v45, 1  ;;  %v455_v63 = vpack.c.bf16 %v415_v17, %v415_v17 }
 0x2c3   : > { %2433 = vmatmul.bf16.gmra.mxu3 %v2288_v10 }
 0x2c4   : > { %v456_v46 = vpack.c.bf16 %v416_v0, %v416_v0  ;;  %v2296_v36 = vsel %vm575_vm0, %v2291_v55, %v2295_v53 }
 0x2c5   : > { %v1783_v32 = vpop.f32.mrf.mxu0 }
 0x2c6   : > { %v2394_v3 = vpop.f32.mrf.mxu3  ;;  %v7527_v11 = vadd.f32 %v1783_v32, %v7354_v42  ;;  %v2086_v42 = vunpack.c.l.b16 %v455_v63  ;;  %v2282_v32 = vunpack.c.l.b16 %v456_v46 }
 0x2c7   : > { %v7523_v1 = vadd.f32 %v2394_v3, %v7370_v7  ;;  %v2030_v10 = vpop.f32.mrf.mxu1  ;;  %v2228_v43 = vpop.f32.mrf.mxu2 }
 0x2c8   : > { %8905 = vst [vmem:[#allocation52_spill] sm:$0xff] %v7527_v11  ;;  %v7537_v30 = vpack.c.b16 %v2282_v32, %v2086_v42  ;;  %v8908_v10 = vld [vmem:[#allocation70_spill] sm:$0xff]  ;;  %v2089_v55 = vpack.c.b16 %v2086_v42, %v2086_v42  ;;  %v5664_v32 = vld [vmem:[#allocation7] sm:$0xff] }
 0x2c9   : > { %3370 = vmatpush.bf16.msra.mxu2 %v5664_v32 }
 0x2ca   : > { %2229 = vmatmul.bf16.gmra.mxu2 %v2089_v55  ;;  %v2305_v42 = vshrl.u32 %v7537_v30, 16  ;;  %v5681_v55 = vld [vmem:[#allocation7 + $0x88] sm:$0xff] }
 0x2cd   : > { %v1786_v3 = vpop.f32.mrf.mxu0 }
 0x2ce   : > { %v7530_v7 = vpop.f32.mrf.mxu3  ;;  %v1826_v59 = vadd.f32 %v1786_v3, %v7374_v13 }
 0x2cf   : > { %v2032_v51 = vpop.f32.mrf.mxu1 }
 0x2d0   : > { %v2063_v11 = vadd.f32 %v2023_v33, %v1826_v59  ;;  %2590 = vmatmul.bf16.gmra.mxu0 %v8906_v12  ;;  %v2297_v59 = vshrl.u32 %v7357_v19, 16  ;;  %v2301_v12 = vshll.u32 %v7537_v30, 16  ;;  %v5685_v51 = vld [vmem:[#allocation7 + $0xa8] sm:$0xff] }
 0x2d1   : > { %3528 = vmatpush.bf16.msra.mxu3 %v5685_v51 }
 0x2d2   : > { %v7535_v50 = vadd.f32 %v2221_v9, %v2063_v11  ;;  %v2303_v33 = vrot.slane %v2301_v12, 1 }
 0x2d3   : > { %2438 = vmatmul.bf16.gmra.mxu3 %v2296_v36  ;;  %v2299_v36 = vor.u32 %v2297_v59, %v2295_v53 }
 0x2d4   : > { %v2307_v12 = vor.u32 %v2305_v42, %v2303_v33 }
 0x2d5   : > { %v1788_v13 = vpop.f32.mrf.mxu0  ;;  %v2304_v0 = vsel %vm575_vm0, %v2299_v36, %v2303_v33  ;;  %v2745_v36 = vlaneseq }
 0x2d6   : > { %v2399_v43 = vpop.f32.mrf.mxu3  ;;  %v7543_v45 = vadd.f32 %v1788_v13, %v7388_v58 }
 0x2d7   : > { %v7540_v49 = vadd.f32 %v2399_v43, %v7397_v44  ;;  %v2033_v46 = vpop.f32.mrf.mxu1  ;;  %v5672_v43 = vld [vmem:[#allocation7 + $0x40] sm:$0xff] }
 0x2d8   : > { %8907 = vst [vmem:[#allocation65_spill] sm:$0xff] %v7543_v45  ;;  %3249 = vmatpush.bf16.msra.mxu1 %v5672_v43  ;;  %v5683_v46 = vld [vmem:[#allocation7 + $0x98] sm:$0xff] }
 0x2dd   : > { %v1791_v11 = vpop.f32.mrf.mxu0 }
 0x2de   : > { %v7547_v9 = vpop.f32.mrf.mxu3  ;;  %v1828_v17 = vadd.f32 %v1791_v11, %v7400_v21  ;;  %v5682_v11 = vld [vmem:[#allocation7 + $0x90] sm:$0xff] }
 0x2e0   : > { %v2065_v44 = vadd.f32 %v2028_v20, %v1828_v17  ;;  %2595 = vmatmul.bf16.gmra.mxu0 %v8908_v10  ;;  %v8909_v20 = vld [vmem:[#allocation77_spill] sm:$0xff]  ;;  %v7575_v10 = vshrl.u32 %v2745_v36, 7 }
 0x2e2   : > { %v7552_v58 = vadd.f32 %v2226_v31, %v2065_v44  ;;  %v5684_v31 = vld [vmem:[#allocation7 + $0xa0] sm:$0xff]  ;;  %v7572_v44 = vstv %s5295_s7  ;;  %8910 = vst [vmem:[#allocation57_spill] sm:$0xff] %v7575_v10  ;;  %vm2794_vm5 = vcmp.ge.s32.totalorder %v7575_v10, 1  ;;  %s4882_s7 = sshll.u32 %s8413_s12, 4  ;;  %s4883_s7 = int_to_ptr.vmem [resolvable:$true] %s4882_s7 }
 0x2e3   : > { %2443 = vmatmul.bf16.gmra.mxu3 %v2304_v0  ;;  %v7570_v0 = vld [vmem:[%s8563_s2] ss:$0 sm:$0xff]  ;;  %vm2761_vm2 = vcmp.ge.s32.totalorder %v7572_v44, 0  ;;  %vm2772_vm3 = vcmp.lt.s32.totalorder %v7572_v44, 16 }
 0x2e4   : > { %3529 = vmatpush.bf16.msra.mxu3 %v5684_v31  ;;  %vm7581_vm4 = vmand %vm2761_vm2, %vm2772_vm3 }
 0x2e5   : > { %v1793_v53 = vpop.f32.mrf.mxu0  ;;  %vm2797_vm6 = vmand %vm7581_vm4, %vm2794_vm5 }
 0x2e6   : > { %v2404_v63 = vpop.f32.mrf.mxu3  ;;  %v8911_v53 = vld [vmem:[#allocation81_spill] sm:$0xff] }
 0x2e7   : > { %v7555_v3 = vadd.f32 %v2404_v63, %v7414_v47 }
 0x2e8   : > { %3530 = vmatpush.bf16.msra.mxu3 %v5683_v46 }
 0x2ec   : > { %3531 = vmatpush.bf16.msra.mxu3 %v5682_v11 }
 0x2ed   : > { %v1795_v21 = vpop.f32.mrf.mxu0 }
 0x2ee   : > { %v7557_v48 = vpop.f32.mrf.mxu3  ;;  %v5680_v21 = vld [vmem:[#allocation7 + $0x80] sm:$0xff] }
 0x2f0   : > { %2600 = vmatmul.bf16.gmra.mxu0 %v8909_v20  ;;  %3532 = vmatpush.bf16.msra.mxu3 %v5681_v55  ;;  %v7601_v55 = vadd.s32 16, %v7575_v10 }
 0x2f2   : > { %vm2830_vm7 = vcmp.le.s32.totalorder %v7601_v55, 16 }
 0x2f3   : > { %2447 = vmatmul.bf16.gmra.mxu3 %v2307_v12  ;;  %vm2833_vm10 = vmand %vm7581_vm4, %vm2830_vm7 }
 0x2f4   : > { %3533 = vmatpush.bf16.msra.mxu3 %v5680_v21  ;;  %v5695_v21 = vld [vmem:[#allocation7 + $0xf8] sm:$0xff] }
 0x2f5   : > { %v1796_v59 = vpop.f32.mrf.mxu0  ;;  %3696 = vmatpush.bf16.msrb.mxu1 %v5695_v21 }
 0x2f6   : > { %v2409_v13 = vpop.f32.mrf.mxu3  ;;  %v5703_v59 = vld [vmem:[#allocation7 + $0x138] sm:$0xff] }
 0x2f7   : > { %v7562_v47 = vadd.f32 %v2409_v13, %v7426_v61  ;;  %3953 = vmatpush.bf16.msrb.mxu2 %v5703_v59 }
 0x2fd   : > { %v2566_v61 = vpop.f32.mrf.mxu0 }
 0x2fe   : > { %v7565_v17 = vpop.f32.mrf.mxu3  ;;  %v2648_v33 = vadd.f32 %v2566_v61, %v7429_v41 }
 0x300   : > { %v2683_v63 = vadd.f32 %v7570_v0, %v2648_v33  ;;  %2605 = vmatmul.bf16.gmra.mxu0 %v8911_v53  ;;  %v2751_v53 = vadd.s32 1, %v7572_v44 }
 0x302   : > { %v2714_v41 = vmax.f32 %v2683_v63, 0.0  ;;  %vm2762_vm8 = vcmp.ge.s32.totalorder %v2751_v53, 0  ;;  %vm2773_vm9 = vcmp.lt.s32.totalorder %v2751_v53, 16 }
 0x303   : > { %vm7615_vm11 = vmand %vm2762_vm8, %vm2773_vm9 }
 0x304   : > { %v2924_v42 = vsel %vm2797_vm6, %v2714_v41, 0.0  ;;  %vm2800_vm12 = vmand %vm7615_vm11, %vm2794_vm5 }
 0x305   : > { %v2568_v43 = vpop.f32.mrf.mxu0  ;;  %v2955_v46 = vpack.c.bf16 %v2924_v42, %v2924_v42  ;;  %vm2836_vm13 = vmand %vm7615_vm11, %vm2830_vm7 }
 0x306   : > { %v2414_v51 = vpop.f32.mrf.mxu3  ;;  %v2649_v31 = vadd.f32 %v2568_v43, %v7439_v57 }
 0x307   : > { %v7591_v20 = vadd.f32 %v2414_v51, %v7444_v56  ;;  %v3044_v57 = vunpack.c.l.b16 %v2955_v46  ;;  %v8914_v51 = vld [vmem:[#allocation83_spill] sm:$0xff] }
 0x308   : > { %v2684_v13 = vadd.f32 %v7570_v0, %v2649_v31 }
 0x30a   : > { %v2715_v12 = vmax.f32 %v2684_v13, 0.0 }
 0x30c   : > { %v2925_v36 = vsel %vm7581_vm4, %v2715_v12, 0.0 }
 0x30d   : > { %v2956_v61 = vpack.c.bf16 %v2925_v36, %v2925_v36  ;;  %v2571_v33 = vpop.f32.mrf.mxu0 }
 0x30e   : > { %v7597_v11 = vpop.f32.mrf.mxu3  ;;  %v2650_v56 = vadd.f32 %v2571_v33, %v7447_v23 }
 0x30f   : > { %v3045_v63 = vunpack.c.l.b16 %v2956_v61 }
 0x310   : > { %v2685_v41 = vadd.f32 %v7570_v0, %v2650_v56  ;;  %2610 = vmatmul.bf16.gmra.mxu0 %v8914_v51  ;;  %v8918_v51 = vld [vmem:[#allocation41_spill] sm:$0xff] }
 0x311   : > { %v3069_v43 = vpack.c.b16 %v3045_v63, %v3044_v57 }
 0x312   : > { %v2716_v23 = vmax.f32 %v2685_v41, 0.0 }
 0x313   : > { %3371 = vmatmul.bf16.vlgmr.msra.gmra.mxu2 %v3069_v43  ;;  %v3085_v56 = vshll.u32 %v3069_v43, 16 }
 0x314   : > { %v2926_v46 = vsel %vm2833_vm10, %v2716_v23, 0.0 }
 0x315   : > { %v2573_v13 = vpop.f32.mrf.mxu0  ;;  %v2957_v61 = vpack.c.bf16 %v2926_v46, %v2926_v46  ;;  %v3087_v23 = vrot.slane %v3085_v56, 1  ;;  %v3441_v46 = vrot.slane %v3069_v43, 1 }
 0x316   : > { %v2419_v31 = vpop.f32.mrf.mxu3  ;;  %v2651_v59 = vadd.f32 %v2573_v13, %v7457_v8  ;;  %v5702_v13 = vld [vmem:[#allocation7 + $0x130] sm:$0xff] }
 0x317   : > { %v7612_v42 = vadd.f32 %v2419_v31, %v7462_v14  ;;  %v3046_v53 = vunpack.c.l.b16 %v2957_v61  ;;  %3954 = vmatpush.bf16.msrb.mxu2 %v5702_v13 }
 0x318   : > { %v2686_v36 = vadd.f32 %v7570_v0, %v2651_v59 }
 0x31a   : > { %v2717_v32 = vmax.f32 %v2686_v36, 0.0  ;;  %v3083_v36 = vshrl.u32 %v3069_v43, 16 }
 0x31c   : > { %v2927_v33 = vsel %vm2800_vm12, %v2717_v32, 0.0 }
 0x31d   : > { %v2958_v57 = vpack.c.bf16 %v2927_v33, %v2927_v33  ;;  %v2576_v8 = vpop.f32.mrf.mxu0 }
 0x31e   : > { %v7624_v14 = vpop.f32.mrf.mxu3  ;;  %v2652_v63 = vadd.f32 %v2576_v8, %v7465_v34  ;;  %v3088_v34 = vor.u32 %v3087_v23, %v3083_v36 }
 0x31f   : > { %8917 = vst [vmem:[#allocation84_spill] sm:$0xff] %v7624_v14  ;;  %v3047_v21 = vunpack.c.l.b16 %v2958_v57 }
 0x320   : > { %v2687_v41 = vadd.f32 %v7570_v0, %v2652_v63  ;;  %2615 = vmatmul.bf16.gmra.mxu0 %v8918_v51  ;;  %v2752_v51 = vadd.s32 2, %v7572_v44 }
 0x321   : > { %v3070_v31 = vpack.c.b16 %v3047_v21, %v3046_v53 }
 0x322   : > { %v2718_v59 = vmax.f32 %v2687_v41, 0.0  ;;  %vm2763_vm14 = vcmp.ge.s32.totalorder %v2752_v51, 0  ;;  %vm2774_vm15 = vcmp.lt.s32.totalorder %v2752_v51, 16 }
 0x323   : > { %3376 = vmatmul.bf16.gmra.mxu2 %v3070_v31  ;;  %v3442_v32 = vrot.slane %v3070_v31, 1  ;;  %v3090_v45 = vshll.u32 %v3070_v31, 16  ;;  %vm7648_vm2 = vmand %vm2763_vm14, %vm2774_vm15 }
 0x324   : > { %v2928_v33 = vsel %vm7615_vm11, %v2718_v59, 0.0  ;;  %vm2803_vm3 = vmand %vm7648_vm2, %vm2794_vm5 }
 0x325   : > { %v2959_v61 = vpack.c.bf16 %v2928_v33, %v2928_v33  ;;  %v2578_v8 = vpop.f32.mrf.mxu0  ;;  %v3443_v56 = vsel %vm1041_vm1, %v3441_v46, %v3442_v32  ;;  %v3092_v63 = vrot.slane %v3090_v45, 1  ;;  %vm2839_vm4 = vmand %vm7648_vm2, %vm2830_vm7 }
 0x326   : > { %v2424_v14 = vpop.f32.mrf.mxu3  ;;  %v2653_v53 = vadd.f32 %v2578_v8, %v7475_v6  ;;  %3534 = vmatmul.bf16.vlgmr.msra.gmra.mxu3 %v3443_v56  ;;  %v3094_v56 = vshrl.u32 %v3070_v31, 16 }
 0x327   : > { %v7632_v57 = vadd.f32 %v2424_v14, %v7480_v26  ;;  %v3048_v43 = vunpack.c.l.b16 %v2959_v61  ;;  %v3093_v41 = vsel %vm575_vm0, %v3088_v34, %v3092_v63  ;;  %v5694_v26 = vld [vmem:[#allocation7 + $0xf0] sm:$0xff]  ;;  %v8922_v34 = vld [vmem:[#allocation46_spill] sm:$0xff] }
 0x328   : > { %v2688_v59 = vadd.f32 %v7570_v0, %v2653_v53  ;;  %3250 = vmatmul.bf16.vlgmr.msra.gmra.mxu1 %v3093_v41 }
 0x329   : > { %v7639_v23 = vpack.c.b16 %v3048_v43, %v3047_v21  ;;  %3697 = vmatpush.bf16.msrb.mxu1 %v5694_v26 }
 0x32a   : > { %v2719_v45 = vmax.f32 %v2688_v59, 0.0  ;;  %v3096_v59 = vor.u32 %v3094_v56, %v3092_v63 }
 0x32b   : > { %8919 = vst [vmem:[#allocation68_spill] sm:$0xff] %v7639_v23  ;;  %v3796_v26 = vshll.u32 %v7639_v23, 16 }
 0x32c   : > { %v2929_v6 = vsel %vm2836_vm13, %v2719_v45, 0.0 }
 0x32d   : > { %v2960_v13 = vpack.c.bf16 %v2929_v6, %v2929_v6  ;;  %v2581_v36 = vpop.f32.mrf.mxu0  ;;  %v3798_v56 = vrot.slane %v3796_v26, 1 }
 0x32e   : > { %v7645_v14 = vpop.f32.mrf.mxu3  ;;  %v2654_v46 = vadd.f32 %v2581_v36, %v7483_v39 }
 0x32f   : > { %v3049_v33 = vunpack.c.l.b16 %v2960_v13 }
 0x330   : > { %v2689_v12 = vadd.f32 %v7570_v0, %v2654_v46  ;;  %2620 = vmatmul.bf16.gmra.mxu0 %v8922_v34 }
 0x331   : > { %v3071_v61 = vpack.c.b16 %v3049_v33, %v3048_v43 }
 0x332   : > { %v2720_v8 = vmax.f32 %v2689_v12, 0.0 }
 0x333   : > { %3380 = vmatmul.bf16.gmra.mxu2 %v3071_v61  ;;  %v3444_v53 = vrot.slane %v3071_v61, 1  ;;  %v3098_v39 = vshll.u32 %v3071_v61, 16 }
 0x334   : > { %v2930_v41 = vsel %vm2803_vm3, %v2720_v8, 0.0  ;;  %v5701_v8 = vld [vmem:[#allocation7 + $0x128] sm:$0xff] }
 0x335   : > { %v2961_v45 = vpack.c.bf16 %v2930_v41, %v2930_v41  ;;  %v2583_v13 = vpop.f32.mrf.mxu0  ;;  %v3445_v36 = vsel %vm1041_vm1, %v3442_v32, %v3444_v53  ;;  %v3100_v46 = vrot.slane %v3098_v39, 1  ;;  %3955 = vmatpush.bf16.msrb.mxu2 %v5701_v8  ;;  %v4047_v39 = vrot.slane %v7639_v23, 1 }
 0x336   : > { %v2429_v51 = vpop.f32.mrf.mxu3  ;;  %v2655_v43 = vadd.f32 %v2583_v13, %v7493_v5  ;;  %3539 = vmatmul.bf16.gmra.mxu3 %v3445_v36 }
 0x337   : > { %v7660_v6 = vadd.f32 %v2429_v51, %v7498_v38  ;;  %v3050_v31 = vunpack.c.l.b16 %v2961_v45  ;;  %v3101_v12 = vsel %vm575_vm0, %v3096_v59, %v3100_v46  ;;  %v3794_v38 = vshrl.u32 %v7639_v23, 16 }
 0x338   : > { %v2690_v34 = vadd.f32 %v7570_v0, %v2655_v43  ;;  %3255 = vmatmul.bf16.gmra.mxu1 %v3101_v12 }
 0x339   : > { %v7666_v63 = vpack.c.b16 %v3050_v31, %v3049_v33  ;;  %v3799_v13 = vor.u32 %v3798_v56, %v3794_v38  ;;  %v5693_v56 = vld [vmem:[#allocation7 + $0xe8] sm:$0xff] }
 0x33a   : > { %v2721_v41 = vmax.f32 %v2690_v34, 0.0  ;;  %v2753_v34 = vadd.s32 3, %v7572_v44  ;;  %3698 = vmatpush.bf16.msrb.mxu1 %v5693_v56 }
 0x33b   : > { %8923 = vst [vmem:[#allocation85_spill] sm:$0xff] %v7666_v63  ;;  %v3801_v32 = vshll.u32 %v7666_v63, 16  ;;  %v4048_v5 = vrot.slane %v7666_v63, 1 }
 0x33c   : > { %v2931_v51 = vsel %vm7648_vm2, %v2721_v41, 0.0  ;;  %v8926_v41 = vld [vmem:[#allocation54_spill] sm:$0xff]  ;;  %vm2764_vm6 = vcmp.ge.s32.totalorder %v2753_v34, 0  ;;  %vm2775_vm8 = vcmp.lt.s32.totalorder %v2753_v34, 16 }
 0x33d   : > { %v2962_v45 = vpack.c.bf16 %v2931_v51, %v2931_v51  ;;  %v2586_v33 = vpop.f32.mrf.mxu0  ;;  %v3803_v36 = vrot.slane %v3801_v32, 1  ;;  %v7677_v26 = vsel %vm1041_vm1, %v4047_v39, %v4048_v5  ;;  %vm7700_vm9 = vmand %vm2764_vm6, %vm2775_vm8 }
 0x33e   : > { %v7674_v59 = vpop.f32.mrf.mxu3  ;;  %8925 = vst [vmem:[#allocation62_spill] sm:$0xff] %v7677_v26  ;;  %v2656_v43 = vadd.f32 %v2586_v33, %v7501_v35  ;;  %v3102_v35 = vshrl.u32 %v3071_v61, 16  ;;  %vm2806_vm10 = vmand %vm7700_vm9, %vm2794_vm5 }
 0x33f   : > { %8924 = vst [vmem:[#allocation72_spill] sm:$0xff] %v7674_v59  ;;  %v3051_v12 = vunpack.c.l.b16 %v2962_v45  ;;  %v7682_v8 = vsel %vm575_vm0, %v3799_v13, %v3803_v36  ;;  %vm2842_vm11 = vmand %vm7700_vm9, %vm2830_vm7 }
 0x340   : > { %v2691_v23 = vadd.f32 %v7570_v0, %v2656_v43  ;;  %2625 = vmatmul.bf16.gmra.mxu0 %v8926_v41  ;;  %v3104_v45 = vor.u32 %v3102_v35, %v3100_v46 }
 0x341   : > { %v7686_v59 = vpack.c.b16 %v3051_v12, %v3050_v31 }
 0x342   : > { %v2722_v38 = vmax.f32 %v2691_v23, 0.0 }
 0x343   : > { %3384 = vmatmul.bf16.gmra.mxu2 %v7686_v59  ;;  %v3446_v32 = vrot.slane %v7686_v59, 1  ;;  %v3106_v39 = vshll.u32 %v7686_v59, 16 }
 0x344   : > { %v2932_v51 = vsel %vm2839_vm4, %v2722_v38, 0.0 }
 0x345   : > { %v2963_v33 = vpack.c.bf16 %v2932_v51, %v2932_v51  ;;  %v2588_v21 = vpop.f32.mrf.mxu0  ;;  %v3447_v23 = vsel %vm1041_vm1, %v3444_v53, %v3446_v32  ;;  %v3108_v61 = vrot.slane %v3106_v39, 1  ;;  %v3805_v53 = vshrl.u32 %v7666_v63, 16 }
 0x346   : > { %v2434_v31 = vpop.f32.mrf.mxu3  ;;  %v2657_v43 = vadd.f32 %v2588_v21, %v7513_v24  ;;  %3543 = vmatmul.bf16.gmra.mxu3 %v3447_v23 }
 0x347   : > { %v7696_v13 = vadd.f32 %v2434_v31, %v7520_v40  ;;  %v3052_v41 = vunpack.c.l.b16 %v2963_v33  ;;  %v3109_v56 = vsel %vm575_vm0, %v3104_v45, %v3108_v61  ;;  %v2499_v40 = vrot.slane %v7321_v18, 1  ;;  %v8929_v45 = vld [vmem:[#allocation51_spill] sm:$0xff] }
 0x348   : > { %v2692_v46 = vadd.f32 %v7570_v0, %v2657_v43  ;;  %3259 = vmatmul.bf16.gmra.mxu1 %v3109_v56  ;;  %v3807_v23 = vor.u32 %v3805_v53, %v3803_v36  ;;  %v5700_v53 = vld [vmem:[#allocation7 + $0x120] sm:$0xff] }
 0x349   : > { %v7707_v38 = vpack.c.b16 %v3052_v41, %v3051_v12  ;;  %v2500_v12 = vsel %vm1041_vm1, %v8929_v45, %v2499_v40  ;;  %3956 = vmatpush.bf16.msrb.mxu2 %v5700_v53  ;;  %v2501_v53 = vrot.slane %v7357_v19, 1  ;;  %v2755_v19 = vadd.s32 5, %v7572_v44 }
 0x34a   : > { %v2723_v24 = vmax.f32 %v2692_v46, 0.0  ;;  %v2046_v46 = vadd.f32 %v7309_v2, %v7379_v52 }
 0x34b   : > { %v3809_v35 = vshll.u32 %v7707_v38, 16  ;;  %v8668_v39 = vrot.slane %v7707_v38, 1  ;;  %v2502_v34 = vsel %vm1041_vm1, %v2499_v40, %v2501_v53  ;;  %vm2766_vm3 = vcmp.ge.s32.totalorder %v2755_v19, 0 }
 0x34c   : > { %v2933_v51 = vsel %vm2806_vm10, %v2723_v24, 0.0  ;;  %vm2777_vm4 = vcmp.lt.s32.totalorder %v2755_v19, 16 }
 0x34d   : > { %v2964_v33 = vpack.c.bf16 %v2933_v51, %v2933_v51  ;;  %v2591_v21 = vpop.f32.mrf.mxu0  ;;  %v3811_v43 = vrot.slane %v3809_v35, 1  ;;  %v7725_v56 = vsel %vm1041_vm1, %v4048_v5, %v8668_v39  ;;  %v5719_v51 = vld [vmem:[#allocation7 + $0x1b8] sm:$0xff]  ;;  %v2244_v35 = vadd.f32 %v7314_v37, %v2046_v46  ;;  %vm7868_vm6 = vmand %vm2766_vm3, %vm2777_vm4 }
 0x34e   : > { %v7716_v31 = vpop.f32.mrf.mxu3  ;;  %v2658_v24 = vadd.f32 %v2591_v21, %v7523_v1  ;;  %v3110_v39 = vshrl.u32 %v7686_v59, 16  ;;  %4284 = vmatpush.bf16.msrb.mxu0 %v5719_v51  ;;  %v5718_v21 = vld [vmem:[#allocation7 + $0x1b0] sm:$0xff]  ;;  %vm2812_vm8 = vmand %vm7868_vm6, %vm2794_vm5 }
 0x34f   : > { %v3053_v63 = vunpack.c.l.b16 %v2964_v33  ;;  %v7731_v26 = vsel %vm575_vm0, %v3807_v23, %v3811_v43  ;;  %v2462_v1 = vadd.f32 %v7530_v7, %v2244_v35  ;;  %v2754_v7 = vadd.s32 4, %v7572_v44  ;;  %v5717_v35 = vld [vmem:[#allocation7 + $0x1a8] sm:$0xff] }
 0x350   : > { %v2693_v45 = vadd.f32 %v7570_v0, %v2658_v24  ;;  %2630 = vmatmul.bf16.gmra.mxu0 %v2500_v12  ;;  %v3112_v33 = vor.u32 %v3110_v39, %v3108_v61 }
 0x351   : > { %v7734_v36 = vpack.c.b16 %v3053_v63, %v3052_v41  ;;  %vm2765_vm12 = vcmp.ge.s32.totalorder %v2754_v7, 0  ;;  %vm2776_vm13 = vcmp.lt.s32.totalorder %v2754_v7, 16 }
 0x352   : > { %v2724_v5 = vmax.f32 %v2693_v45, 0.0  ;;  %4285 = vmatpush.bf16.msrb.mxu0 %v5718_v21  ;;  %v5716_v21 = vld [vmem:[#allocation7 + $0x1a0] sm:$0xff]  ;;  %vm7788_vm14 = vmand %vm2765_vm12, %vm2776_vm13 }
 0x353   : > { %3389 = vmatmul.bf16.gmra.mxu2 %v7734_v36  ;;  %v8669_v2 = vrot.slane %v7734_v36, 1  ;;  %v3114_v52 = vshll.u32 %v7734_v36, 16  ;;  %vm2809_vm15 = vmand %vm7788_vm14, %vm2794_vm5 }
 0x354   : > { %v2934_v12 = vsel %vm7700_vm9, %v2724_v5, 0.0  ;;  %v5692_v5 = vld [vmem:[#allocation7 + $0xe0] sm:$0xff]  ;;  %vm2845_vm2 = vmand %vm7788_vm14, %vm2830_vm7 }
 0x355   : > { %v2965_v37 = vpack.c.bf16 %v2934_v12, %v2934_v12  ;;  %v2593_v46 = vpop.f32.mrf.mxu0  ;;  %v7750_v24 = vsel %vm1041_vm1, %v3446_v32, %v8669_v2  ;;  %v3116_v45 = vrot.slane %v3114_v52, 1  ;;  %3699 = vmatpush.bf16.msrb.mxu1 %v5692_v5  ;;  %vm2848_vm9 = vmand %vm7868_vm6, %vm2830_vm7 }
 0x356   : > { %v2439_v41 = vpop.f32.mrf.mxu3  ;;  %8930 = vst [vmem:[#allocation87_spill] sm:$0xff] %v7750_v24  ;;  %v2659_v51 = vadd.f32 %v2593_v46, %v2462_v1  ;;  %3547 = vmatmul.bf16.gmra.mxu3 %v7750_v24  ;;  %4286 = vmatpush.bf16.msrb.mxu0 %v5717_v35  ;;  %v3813_v1 = vshrl.u32 %v7707_v38, 16  ;;  %v8932_v35 = vrot.slane %v7707_v38, 1 }
 0x357   : > { %v7745_v23 = vadd.f32 %v2439_v41, %v7535_v50  ;;  %v3054_v61 = vunpack.c.l.b16 %v2965_v37  ;;  %v7755_v39 = vsel %vm575_vm0, %v3112_v33, %v3116_v45 }
 0x358   : > { %8931 = vst [vmem:[#allocation27_spill] sm:$0xff] %v7755_v39  ;;  %v2694_v50 = vadd.f32 %v7570_v0, %v2659_v51  ;;  %3263 = vmatmul.bf16.gmra.mxu1 %v7755_v39  ;;  %v3815_v51 = vor.u32 %v3813_v1, %v3811_v43  ;;  %v5696_v39 = vld [vmem:[#allocation7 + $0x100] sm:$0xff] }
 0x359   : > { %v7760_v32 = vpack.c.b16 %v3054_v61, %v3053_v63 }
 0x35a   : > { %v2725_v52 = vmax.f32 %v2694_v50, 0.0  ;;  %4287 = vmatpush.bf16.msrb.mxu0 %v5716_v21 }
 0x35b   : > { %v3817_v12 = vshll.u32 %v7760_v32, 16  ;;  %v8670_v41 = vrot.slane %v7760_v32, 1 }
 0x35c   : > { %v2935_v33 = vsel %vm2842_vm11, %v2725_v52, 0.0  ;;  %v2048_v52 = vadd.f32 %v7349_v62, %v7405_v54 }
 0x35d   : > { %v2966_v37 = vpack.c.bf16 %v2935_v33, %v2935_v33  ;;  %v2596_v46 = vpop.f32.mrf.mxu0  ;;  %v3819_v50 = vrot.slane %v3817_v12, 1  ;;  %v7781_v5 = vsel %vm1041_vm1, %v8932_v35, %v8670_v41  ;;  %v5715_v12 = vld [vmem:[#allocation7 + $0x198] sm:$0xff] }
 0x35e   : > { %v7769_v63 = vpop.f32.mrf.mxu3  ;;  %v2660_v2 = vadd.f32 %v2596_v46, %v7540_v49  ;;  %v2246_v62 = vadd.f32 %v7352_v25, %v2048_v52  ;;  %v3118_v49 = vshrl.u32 %v7734_v36, 16  ;;  %4288 = vmatpush.bf16.msrb.mxu0 %v5715_v12  ;;  %v5714_v46 = vld [vmem:[#allocation7 + $0x190] sm:$0xff]  ;;  %v8935_v52 = vrot.slane %v7734_v36, 1 }
 0x35f   : > { %v3055_v40 = vunpack.c.l.b16 %v2966_v37  ;;  %v7793_v43 = vsel %vm575_vm0, %v3815_v51, %v3819_v50 }
 0x360   : > { %v2695_v1 = vadd.f32 %v7570_v0, %v2660_v2  ;;  %2635 = vmatmul.bf16.gmra.mxu0 %v2502_v34  ;;  %v3120_v37 = vor.u32 %v3118_v49, %v3116_v45  ;;  %v5713_v49 = vld [vmem:[#allocation7 + $0x188] sm:$0xff] }
 0x361   : > { %v7796_v33 = vpack.c.b16 %v3055_v40, %v3054_v61  ;;  %v2464_v61 = vadd.f32 %v7547_v9, %v2246_v62  ;;  %v2230_v62 = vpop.f32.mrf.mxu2 }
 0x362   : > { %v2726_v54 = vmax.f32 %v2695_v1, 0.0  ;;  %4289 = vmatpush.bf16.msrb.mxu0 %v5714_v46 }
 0x363   : > { %3393 = vmatmul.bf16.gmra.mxu2 %v7796_v33  ;;  %v8671_v7 = vrot.slane %v7796_v33, 1  ;;  %v3122_v2 = vshll.u32 %v7796_v33, 16 }
 0x364   : > { %v2936_v34 = vsel %vm2809_vm15, %v2726_v54, 0.0  ;;  %v8673_v54 = vrot.slane %v7537_v30, 1 }
 0x365   : > { %v2967_v51 = vpack.c.bf16 %v2936_v34, %v2936_v34  ;;  %v2598_v25 = vpop.f32.mrf.mxu0  ;;  %v7816_v1 = vsel %vm1041_vm1, %v8935_v52, %v8671_v7  ;;  %v3124_v12 = vrot.slane %v3122_v2, 1 }
 0x366   : > { %v2444_v21 = vpop.f32.mrf.mxu3  ;;  %8936 = vst [vmem:[#allocation88_spill] sm:$0xff] %v7816_v1  ;;  %v2661_v41 = vadd.f32 %v2598_v25, %v2464_v61  ;;  %3552 = vmatmul.bf16.gmra.mxu3 %v7816_v1  ;;  %4290 = vmatpush.bf16.msrb.mxu0 %v5713_v49  ;;  %v3821_v61 = vshrl.u32 %v7760_v32, 16 }
 0x367   : > { %v7809_v35 = vadd.f32 %v2444_v21, %v7552_v58  ;;  %v3056_v9 = vunpack.c.l.b16 %v2967_v51  ;;  %v7820_v45 = vsel %vm575_vm0, %v3120_v37, %v3124_v12  ;;  %v5699_v21 = vld [vmem:[#allocation7 + $0x118] sm:$0xff]  ;;  %v5712_v51 = vld [vmem:[#allocation7 + $0x180] sm:$0xff] }
 0x368   : > { %8937 = vst [vmem:[#allocation75_spill] sm:$0xff] %v7820_v45  ;;  %v2696_v58 = vadd.f32 %v7570_v0, %v2661_v41  ;;  %3268 = vmatmul.bf16.gmra.mxu1 %v7820_v45  ;;  %3957 = vmatpush.bf16.msrb.mxu2 %v5699_v21  ;;  %v8938_v21 = vrot.slane %v7760_v32, 1 }
 0x369   : > { %v7825_v34 = vpack.c.b16 %v3056_v9, %v3055_v40  ;;  %v2504_v40 = vsel %vm1041_vm1, %v2501_v53, %v8673_v54  ;;  %v2231_v54 = vpop.f32.mrf.mxu2 }
 0x36a   : > { %v2727_v2 = vmax.f32 %v2696_v58, 0.0  ;;  %v3823_v58 = vor.u32 %v3821_v61, %v3819_v50  ;;  %4291 = vmatpush.bf16.msrb.mxu0 %v5712_v51 }
 0x36b   : > { %v3825_v46 = vshll.u32 %v7825_v34, 16  ;;  %v4054_v37 = vrot.slane %v7825_v34, 1 }
 0x36c   : > { %v2937_v41 = vsel %vm7788_vm14, %v2727_v2, 0.0  ;;  %v2050_v2 = vadd.f32 %v7383_v27, %v7417_v15  ;;  %v5691_v27 = vld [vmem:[#allocation7 + $0xd8] sm:$0xff] }
 0x36d   : > { %v2968_v52 = vpack.c.bf16 %v2937_v41, %v2937_v41  ;;  %v2601_v62 = vpop.f32.mrf.mxu0  ;;  %v3827_v49 = vrot.slane %v3825_v46, 1  ;;  %v7840_v7 = vsel %vm1041_vm1, %v8938_v21, %v4054_v37  ;;  %3700 = vmatpush.bf16.msrb.mxu1 %v5691_v27  ;;  %v2054_v21 = vadd.f32 %v7420_v16, %v7450_v22  ;;  %v8949_v16 = vld [vmem:[#allocation95_spill] sm:$0xff] }
 0x36e   : > { %v2446_v25 = vpop.f32.mrf.mxu3  ;;  %v2662_v45 = vadd.f32 %v2601_v62, %v7555_v3  ;;  %v2248_v15 = vadd.f32 %v7386_v4, %v2050_v2 }
 0x36f   : > { %v3057_v53 = vunpack.c.l.b16 %v2968_v52  ;;  %v7847_v41 = vsel %vm575_vm0, %v3823_v58, %v3827_v49  ;;  %v8939_v25 = vrot.slane %v7796_v33, 1  ;;  %v2252_v22 = vadd.f32 %v8949_v16, %v2054_v21 }
 0x370   : > { %v2697_v50 = vadd.f32 %v7570_v0, %v2662_v45  ;;  %2640 = vmatmul.bf16.gmra.mxu0 %v2504_v40  ;;  %v3126_v45 = vshrl.u32 %v7796_v33, 16  ;;  %v2466_v46 = vadd.f32 %v7557_v48, %v2248_v15  ;;  %v3829_v15 = vshrl.u32 %v7825_v34, 16 }
 0x371   : > { %v7850_v61 = vpack.c.b16 %v3057_v53, %v3056_v9 }
 0x372   : > { %v2728_v3 = vmax.f32 %v2697_v50, 0.0  ;;  %v3128_v52 = vor.u32 %v3126_v45, %v3124_v12 }
 0x373   : > { %3397 = vmatmul.bf16.gmra.mxu2 %v7850_v61  ;;  %v3452_v54 = vrot.slane %v7850_v61, 1  ;;  %v3130_v9 = vshll.u32 %v7850_v61, 16 }
 0x374   : > { %v2938_v40 = vsel %vm2845_vm2, %v2728_v3, 0.0 }
 0x375   : > { %v2969_v18 = vpack.c.bf16 %v2938_v40, %v2938_v40  ;;  %v2603_v51 = vpop.f32.mrf.mxu0  ;;  %v7865_v4 = vsel %vm1041_vm1, %v8939_v25, %v3452_v54  ;;  %v3132_v62 = vrot.slane %v3130_v9, 1  ;;  %v2052_v25 = vadd.f32 %v7407_v29, %v7432_v60 }
 0x376   : > { %8940 = vst [vmem:[#allocation90_spill] sm:$0xff] %v7865_v4  ;;  %v2663_v58 = vadd.f32 %v2603_v51, %v2466_v46  ;;  %3556 = vmatmul.bf16.gmra.mxu3 %v7865_v4  ;;  %v2448_v19 = vpop.f32.mrf.mxu3  ;;  %v3134_v60 = vshrl.u32 %v7850_v61, 16 }
 0x377   : > { %v3058_v2 = vunpack.c.l.b16 %v2969_v18  ;;  %v7874_v48 = vsel %vm575_vm0, %v3128_v52, %v3132_v62  ;;  %v3831_v18 = vor.u32 %v3829_v15, %v3827_v49  ;;  %v5698_v49 = vld [vmem:[#allocation7 + $0x110] sm:$0xff] }
 0x378   : > { %8943 = vst [vmem:[#allocation59_spill] sm:$0xff] %v7874_v48  ;;  %v2698_v50 = vadd.f32 %v7570_v0, %v2663_v58  ;;  %3272 = vmatmul.bf16.gmra.mxu1 %v7874_v48  ;;  %3958 = vmatpush.bf16.msrb.mxu2 %v5698_v49 }
 0x379   : > { %v7878_v27 = vpack.c.b16 %v3058_v2, %v3057_v53 }
 0x37a   : > { %v2729_v12 = vmax.f32 %v2698_v50, 0.0 }
 0x37b   : > { %v3833_v3 = vshll.u32 %v7878_v27, 16  ;;  %v4056_v45 = vrot.slane %v7878_v27, 1 }
 0x37c   : > { %v2939_v9 = vsel %vm2812_vm8, %v2729_v12, 0.0  ;;  %v8944_v12 = vrot.slane %v7537_v30, 1 }
 0x37d   : > { %v2970_v46 = vpack.c.bf16 %v2939_v9, %v2939_v9  ;;  %v2606_v40 = vpop.f32.mrf.mxu0  ;;  %v3835_v51 = vrot.slane %v3833_v3, 1  ;;  %v7888_v53 = vsel %vm1041_vm1, %v4054_v37, %v4056_v45  ;;  %v2250_v37 = vadd.f32 %v7409_v28, %v2052_v25 }
 0x37e   : > { %v2664_v52 = vadd.f32 %v2606_v40, %v7562_v47  ;;  %v2449_v3 = vpop.f32.mrf.mxu3 }
 0x37f   : > { %v3059_v58 = vunpack.c.l.b16 %v2970_v46  ;;  %v7894_v50 = vsel %vm575_vm0, %v3831_v18, %v3835_v51  ;;  %v2468_v46 = vadd.f32 %v7565_v17, %v2250_v37  ;;  %v3136_v18 = vor.u32 %v3134_v60, %v3132_v62 }
 0x380   : > { %v2699_v19 = vadd.f32 %v7570_v0, %v2664_v52  ;;  %2644 = vmatmul.bf16.gmra.mxu0 %v8944_v12  ;;  %v3837_v37 = vshrl.u32 %v7878_v27, 16 }
 0x381   : > { %v7899_v9 = vpack.c.b16 %v3059_v58, %v3058_v2 }
 0x382   : > { %v2730_v15 = vmax.f32 %v2699_v19, 0.0  ;;  %v2756_v19 = vadd.s32 6, %v7572_v44 }
 0x383   : > { %3402 = vmatmul.bf16.gmra.mxu2 %v7899_v9  ;;  %v3454_v29 = vrot.slane %v7899_v9, 1  ;;  %v3138_v47 = vshll.u32 %v7899_v9, 16 }
 0x384   : > { %v2940_v30 = vsel %vm7868_vm6, %v2730_v15, 0.0  ;;  %vm2767_vm10 = vcmp.ge.s32.totalorder %v2756_v19, 0  ;;  %vm2778_vm11 = vcmp.lt.s32.totalorder %v2756_v19, 16 }
 0x385   : > { %v2971_v2 = vpack.c.bf16 %v2940_v30, %v2940_v30  ;;  %v2608_v40 = vpop.f32.mrf.mxu0  ;;  %v7910_v28 = vsel %vm1041_vm1, %v3452_v54, %v3454_v29  ;;  %v3140_v25 = vrot.slane %v3138_v47, 1  ;;  %v5690_v54 = vld [vmem:[#allocation7 + $0xd0] sm:$0xff]  ;;  %v3839_v30 = vor.u32 %v3837_v37, %v3835_v51  ;;  %vm7934_vm12 = vmand %vm2767_vm10, %vm2778_vm11 }
 0x386   : > { %8945 = vst [vmem:[#allocation28_spill] sm:$0xff] %v7910_v28  ;;  %v2665_v52 = vadd.f32 %v2608_v40, %v2468_v46  ;;  %3560 = vmatmul.bf16.gmra.mxu3 %v7910_v28  ;;  %3701 = vmatpush.bf16.msrb.mxu1 %v5690_v54  ;;  %vm2815_vm13 = vmand %vm7934_vm12, %vm2794_vm5 }
 0x387   : > { %v3060_v12 = vunpack.c.l.b16 %v2971_v2  ;;  %v7915_v3 = vsel %vm575_vm0, %v3136_v18, %v3140_v25  ;;  %vm2851_vm14 = vmand %vm7934_vm12, %vm2830_vm7 }
 0x388   : > { %8946 = vst [vmem:[#allocation79_spill] sm:$0xff] %v7915_v3  ;;  %v2700_v17 = vadd.f32 %v7570_v0, %v2665_v52  ;;  %3276 = vmatmul.bf16.gmra.mxu1 %v7915_v3 }
 0x389   : > { %v7919_v49 = vpack.c.b16 %v3060_v12, %v3059_v58 }
 0x38a   : > { %v2731_v62 = vmax.f32 %v2700_v17, 0.0 }
 0x38b   : > { %v3841_v15 = vshll.u32 %v7919_v49, 16  ;;  %v4058_v60 = vrot.slane %v7919_v49, 1 }
 0x38c   : > { %v2941_v47 = vsel %vm2848_vm9, %v2731_v62, 0.0  ;;  %v3142_v62 = vshrl.u32 %v7899_v9, 16 }
 0x38d   : > { %v2972_v46 = vpack.c.bf16 %v2941_v47, %v2941_v47  ;;  %v2611_v58 = vpop.f32.mrf.mxu0  ;;  %v3843_v2 = vrot.slane %v3841_v15, 1  ;;  %v7929_v40 = vsel %vm1041_vm1, %v4056_v45, %v4058_v60 }
 0x38e   : > { %v2666_v18 = vadd.f32 %v2611_v58, %v7591_v20  ;;  %v3144_v58 = vor.u32 %v3142_v62, %v3140_v25 }
 0x38f   : > { %v3061_v19 = vunpack.c.l.b16 %v2972_v46  ;;  %v7939_v17 = vsel %vm575_vm0, %v3839_v30, %v3843_v2 }
 0x390   : > { %v2701_v54 = vadd.f32 %v7570_v0, %v2666_v18  ;;  %4292 = vmatmul.bf16.vlgmr.msrb.gmra.mxu0 %v7686_v59  ;;  %v2470_v59 = vadd.f32 %v7597_v11, %v2252_v22  ;;  %v5697_v22 = vld [vmem:[#allocation7 + $0x108] sm:$0xff] }
 0x391   : > { %v7943_v51 = vpack.c.b16 %v3061_v19, %v3060_v12  ;;  %3959 = vmatpush.bf16.msrb.mxu2 %v5697_v22 }
 0x392   : > { %v2732_v20 = vmax.f32 %v2701_v54, 0.0 }
 0x393   : > { %3406 = vmatmul.bf16.gmra.mxu2 %v7943_v51  ;;  %v3456_v45 = vrot.slane %v7943_v51, 1  ;;  %v3146_v37 = vshll.u32 %v7943_v51, 16 }
 0x394   : > { %v2942_v12 = vsel %vm2815_vm13, %v2732_v20, 0.0 }
 0x395   : > { %v2973_v15 = vpack.c.bf16 %v2942_v12, %v2942_v12  ;;  %v2613_v47 = vpop.f32.mrf.mxu0  ;;  %v7956_v46 = vsel %vm1041_vm1, %v3454_v29, %v3456_v45  ;;  %v3148_v30 = vrot.slane %v3146_v37, 1  ;;  %v3845_v29 = vshrl.u32 %v7919_v49, 16  ;;  %3960 = vmatpush.bf16.msrb.mxu2 %v5696_v39 }
 0x396   : > { %8950 = vst [vmem:[#allocation69_spill] sm:$0xff] %v7956_v46  ;;  %v2667_v21 = vadd.f32 %v2613_v47, %v2470_v59  ;;  %v3372_v18 = vpop.f32.mrf.mxu2  ;;  %3565 = vmatmul.bf16.gmra.mxu3 %v7956_v46  ;;  %v2757_v46 = vadd.s32 7, %v7572_v44 }
 0x397   : > { %v3062_v54 = vunpack.c.l.b16 %v2973_v15  ;;  %v7960_v16 = vsel %vm575_vm0, %v3144_v58, %v3148_v30  ;;  %v3847_v15 = vor.u32 %v3845_v29, %v3843_v2  ;;  %v8953_v58 = vld [vmem:[#allocation47_spill] sm:$0xff] }
 0x398   : > { %8951 = vst [vmem:[#allocation92_spill] sm:$0xff] %v7960_v16  ;;  %v2702_v3 = vadd.f32 %v7570_v0, %v2667_v21  ;;  %3281 = vmatmul.bf16.gmra.mxu1 %v7960_v16  ;;  %vm2768_vm15 = vcmp.ge.s32.totalorder %v2757_v46, 0  ;;  %vm2779_vm2 = vcmp.lt.s32.totalorder %v2757_v46, 16 }
 0x399   : > { %v7964_v11 = vpack.c.b16 %v3062_v54, %v3061_v19  ;;  %vm8003_vm3 = vmand %vm2768_vm15, %vm2779_vm2 }
 0x39a   : > { %v2733_v20 = vmax.f32 %v2702_v3, 0.0  ;;  %v8952_v3 = vld [vmem:[#allocation98_spill] sm:$0xff]  ;;  %vm2818_vm4 = vmand %vm8003_vm3, %vm2794_vm5 }
 0x39b   : > { %v3849_v25 = vshll.u32 %v7964_v11, 16  ;;  %v8678_v62 = vrot.slane %v7964_v11, 1  ;;  %v2056_v21 = vadd.f32 %v8953_v58, %v8952_v3  ;;  %vm2854_vm6 = vmand %vm8003_vm3, %vm2830_vm7 }
 0x39c   : > { %v2943_v37 = vsel %vm7934_vm12, %v2733_v20, 0.0 }
 0x39d   : > { %v2974_v59 = vpack.c.bf16 %v2943_v37, %v2943_v37  ;;  %v2616_v12 = vpop.f32.mrf.mxu0  ;;  %v3851_v47 = vrot.slane %v3849_v25, 1  ;;  %v7974_v19 = vsel %vm1041_vm1, %v4058_v60, %v8678_v62  ;;  %v5689_v60 = vld [vmem:[#allocation7 + $0xc8] sm:$0xff] }
 0x39e   : > { %v2668_v22 = vadd.f32 %v2616_v12, %v7612_v42  ;;  %v3374_v16 = vpop.f32.mrf.mxu2  ;;  %v8954_v42 = vld [vmem:[#allocation71_spill] sm:$0xff]  ;;  %v3150_v12 = vshrl.u32 %v7943_v51, 16  ;;  %3702 = vmatpush.bf16.msrb.mxu1 %v5689_v60 }
 0x39f   : > { %v3063_v48 = vunpack.c.l.b16 %v2974_v59  ;;  %v7981_v20 = vsel %vm575_vm0, %v3847_v15, %v3851_v47  ;;  %v2254_v25 = vadd.f32 %v8954_v42, %v2056_v21 }
 0x3a0   : > { %v2703_v2 = vadd.f32 %v7570_v0, %v2668_v22  ;;  %4297 = vmatmul.bf16.gmra.mxu0 %v7734_v36 }
 0x3a1   : > { %v7985_v29 = vpack.c.b16 %v3063_v48, %v3062_v54  ;;  %v8955_v54 = vld [vmem:[#allocation84_spill] sm:$0xff] }
 0x3a2   : > { %v2734_v37 = vmax.f32 %v2703_v2, 0.0  ;;  %v2472_v15 = vadd.f32 %v8955_v54, %v2254_v25  ;;  %v3152_v2 = vor.u32 %v3150_v12, %v3148_v30  ;;  %v5711_v25 = vld [vmem:[#allocation7 + $0x178] sm:$0xff]  ;;  %v5710_v12 = vld [vmem:[#allocation7 + $0x170] sm:$0xff] }
 0x3a3   : > { %3410 = vmatmul.bf16.gmra.mxu2 %v7985_v29  ;;  %v8681_v59 = vrot.slane %v7985_v29, 1  ;;  %v3154_v36 = vshll.u32 %v7985_v29, 16  ;;  %4132 = vmatpush.bf16.msrb.mxu3 %v5711_v25  ;;  %v8962_v25 = vrot.slane %v7964_v11, 1 }
 0x3a4   : > { %v2944_v3 = vsel %vm2851_vm14, %v2734_v37, 0.0 }
 0x3a5   : > { %v2975_v52 = vpack.c.bf16 %v2944_v3, %v2944_v3  ;;  %v2618_v58 = vpop.f32.mrf.mxu0  ;;  %v3251_v22 = vpop.f32.mrf.mxu1  ;;  %v8000_v21 = vsel %vm1041_vm1, %v3456_v45, %v8681_v59  ;;  %v3156_v42 = vrot.slane %v3154_v36, 1  ;;  %v3853_v36 = vshrl.u32 %v7964_v11, 16 }
 0x3a6   : > { %8956 = vst [vmem:[#allocation89_spill] sm:$0xff] %v8000_v21  ;;  %v2669_v62 = vadd.f32 %v2618_v58, %v2472_v15  ;;  %v3373_v60 = vadd.f32 %v3372_v18, %v3251_v22  ;;  %v3377_v4 = vpop.f32.mrf.mxu2  ;;  %3569 = vmatmul.bf16.gmra.mxu3 %v8000_v21 }
 0x3a7   : > { %v3064_v37 = vunpack.c.l.b16 %v2975_v52  ;;  %v8009_v54 = vsel %vm575_vm0, %v3152_v2, %v3156_v42  ;;  %4133 = vmatpush.bf16.msrb.mxu3 %v5710_v12  ;;  %v3855_v22 = vor.u32 %v3853_v36, %v3851_v47  ;;  %v5709_v12 = vld [vmem:[#allocation7 + $0x168] sm:$0xff] }
 0x3a8   : > { %8959 = vst [vmem:[#allocation32_spill] sm:$0xff] %v8009_v54  ;;  %v2704_v45 = vadd.f32 %v7570_v0, %v2669_v62  ;;  %3285 = vmatmul.bf16.gmra.mxu1 %v8009_v54 }
 0x3a9   : > { %v8013_v30 = vpack.c.b16 %v3064_v37, %v3063_v48  ;;  %v3535_v4 = vpop.f32.mrf.mxu3 }
 0x3aa   : > { %v2735_v46 = vmax.f32 %v2704_v45, 0.0  ;;  %v8019_v18 = vadd.f32 %v3535_v4, %v3373_v60  ;;  %v8963_v45 = vld [vmem:[#allocation100_spill] sm:$0xff]  ;;  %v8964_v4 = vld [vmem:[#allocation78_spill] sm:$0xff] }
 0x3ab   : > { %8960 = vst [vmem:[#allocation76_spill] sm:$0xff] %v8013_v30  ;;  %v3857_v15 = vshll.u32 %v8013_v30, 16  ;;  %v8686_v62 = vrot.slane %v8013_v30, 1  ;;  %v2058_v59 = vadd.f32 %v8964_v4, %v8963_v45  ;;  %4134 = vmatpush.bf16.msrb.mxu3 %v5709_v12  ;;  %v8965_v45 = vld [vmem:[#allocation99_spill] sm:$0xff] }
 0x3ac   : > { %8961 = vst [vmem:[#allocation64_spill] sm:$0xff] %v8019_v18  ;;  %v2945_v3 = vsel %vm2818_vm4, %v2735_v46, 0.0 }
 0x3ad   : > { %v2976_v48 = vpack.c.bf16 %v2945_v3, %v2945_v3  ;;  %v2621_v52 = vpop.f32.mrf.mxu0  ;;  %v3253_v58 = vpop.f32.mrf.mxu1  ;;  %v3859_v2 = vrot.slane %v3857_v15, 1  ;;  %v8029_v60 = vsel %vm1041_vm1, %v8962_v25, %v8686_v62  ;;  %v2256_v4 = vadd.f32 %v8965_v45, %v2058_v59 }
 0x3ae   : > { %v2670_v54 = vadd.f32 %v2621_v52, %v7632_v57  ;;  %v3375_v21 = vadd.f32 %v3374_v16, %v3253_v58  ;;  %v3378_v46 = vpop.f32.mrf.mxu2  ;;  %v5708_v52 = vld [vmem:[#allocation7 + $0x160] sm:$0xff]  ;;  %v3158_v58 = vshrl.u32 %v7985_v29, 16 }
 0x3af   : > { %v3065_v3 = vunpack.c.l.b16 %v2976_v48  ;;  %v8035_v47 = vsel %vm575_vm0, %v3855_v22, %v3859_v2  ;;  %4135 = vmatpush.bf16.msrb.mxu3 %v5708_v52 }
 0x3b0   : > { %v2705_v36 = vadd.f32 %v7570_v0, %v2670_v54  ;;  %4301 = vmatmul.bf16.gmra.mxu0 %v7796_v33  ;;  %v2474_v33 = vadd.f32 %v7645_v14, %v2256_v4  ;;  %v3160_v12 = vor.u32 %v3158_v58, %v3156_v42  ;;  %v2758_v14 = vadd.s32 8, %v7572_v44  ;;  %v5707_v4 = vld [vmem:[#allocation7 + $0x158] sm:$0xff] }
 0x3b1   : > { %v8039_v15 = vpack.c.b16 %v3065_v3, %v3064_v37  ;;  %v3537_v25 = vpop.f32.mrf.mxu3 }
 0x3b2   : > { %v2736_v57 = vmax.f32 %v2705_v36, 0.0  ;;  %v8042_v16 = vadd.f32 %v3537_v25, %v3375_v21  ;;  %v8967_v21 = vrot.slane %v7985_v29, 1  ;;  %vm2769_vm8 = vcmp.ge.s32.totalorder %v2758_v14, 0 }
 0x3b3   : > { %3415 = vmatmul.bf16.gmra.mxu2 %v8039_v15  ;;  %v8685_v48 = vrot.slane %v8039_v15, 1  ;;  %v3162_v0 = vshll.u32 %v8039_v15, 16  ;;  %4136 = vmatpush.bf16.msrb.mxu3 %v5707_v4  ;;  %vm2780_vm9 = vcmp.lt.s32.totalorder %v2758_v14, 16 }
 0x3b4   : > { %8966 = vst [vmem:[#allocation93_spill] sm:$0xff] %v8042_v16  ;;  %v2946_v37 = vsel %vm8003_vm3, %v2736_v57, 0.0  ;;  %vm8091_vm10 = vmand %vm2769_vm8, %vm2780_vm9  ;;  %vm4761_vm9 = vcmask 1045504  }
 0x3b5   : > { %v2977_v39 = vpack.c.bf16 %v2946_v37, %v2946_v37  ;;  %v2623_v59 = vpop.f32.mrf.mxu0  ;;  %v3256_v54 = vpop.f32.mrf.mxu1  ;;  %v8056_v22 = vsel %vm1041_vm1, %v8967_v21, %v8685_v48  ;;  %v3164_v36 = vrot.slane %v3162_v0, 1  ;;  %v8066_v37 = vld [vmem:[%s8563_s2] ss:$0 sm:$0xff]  ;;  %v5688_v0 = vld [vmem:[#allocation7 + $0xc0] sm:$0xff]  ;;  %vm2821_vm11 = vmand %vm8091_vm10, %vm2794_vm5 }
 0x3b6   : > { %8968 = vst [vmem:[#allocation80_spill] sm:$0xff] %v8056_v22  ;;  %v2671_v25 = vadd.f32 %v2623_v59, %v2474_v33  ;;  %v3381_v45 = vpop.f32.mrf.mxu2  ;;  %3573 = vmatmul.bf16.gmra.mxu3 %v8056_v22  ;;  %3703 = vmatpush.bf16.msrb.mxu1 %v5688_v0  ;;  %v3861_v59 = vshrl.u32 %v8013_v30, 16  ;;  %v8972_v0 = vld [vmem:[#allocation31_spill] sm:$0xff]  ;;  %vm2857_vm12 = vmand %vm8091_vm10, %vm2830_vm7 }
 0x3b7   : > { %v3066_v57 = vunpack.c.l.b16 %v2977_v39  ;;  %v8061_v52 = vsel %vm575_vm0, %v3160_v12, %v3164_v36  ;;  %v5706_v39 = vld [vmem:[#allocation7 + $0x150] sm:$0xff] }
 0x3b8   : > { %8969 = vst [vmem:[#allocation94_spill] sm:$0xff] %v8061_v52  ;;  %v2706_v54 = vadd.f32 %v8066_v37, %v2671_v25  ;;  %3289 = vmatmul.bf16.gmra.mxu1 %v8061_v52  ;;  %4137 = vmatpush.bf16.msrb.mxu3 %v5706_v39  ;;  %v3863_v28 = vor.u32 %v3861_v59, %v3859_v2  ;;  %v8973_v52 = vld [vmem:[#allocation21_spill] sm:$0xff]  ;;  %v5705_v59 = vld [vmem:[#allocation7 + $0x148] sm:$0xff] }
 0x3b9   : > { %v8070_v42 = vpack.c.b16 %v3066_v57, %v3065_v3  ;;  %v3540_v58 = vpop.f32.mrf.mxu3  ;;  %v2060_v22 = vadd.f32 %v8973_v52, %v8972_v0 }
 0x3ba   : > { %v2737_v33 = vmax.f32 %v2706_v54, 0.0  ;;  %v8970_v54 = vrot.slane %v8013_v30, 1 }
 0x3bb   : > { %v3865_v21 = vshll.u32 %v8070_v42, 16  ;;  %v8690_v12 = vrot.slane %v8070_v42, 1 }
 0x3bc   : > { %v2947_v3 = vsel %vm2854_vm6, %v2737_v33, 0.0  ;;  %4138 = vmatpush.bf16.msrb.mxu3 %v5705_v59 }
 0x3bd   : > { %v2978_v25 = vpack.c.bf16 %v2947_v3, %v2947_v3  ;;  %v2626_v4 = vpop.f32.mrf.mxu0  ;;  %v3257_v48 = vpop.f32.mrf.mxu1  ;;  %v3867_v62 = vrot.slane %v3865_v21, 1  ;;  %v8084_v58 = vsel %vm1041_vm1, %v8970_v54, %v8690_v12 }
 0x3be   : > { %8971 = vst [vmem:[#allocation36_spill] sm:$0xff] %v8084_v58  ;;  %v2672_v1 = vadd.f32 %v2626_v4, %v7660_v6  ;;  %v3379_v2 = vadd.f32 %v3378_v46, %v3257_v48  ;;  %v3383_v39 = vpop.f32.mrf.mxu2  ;;  %v8976_v46 = vld [vmem:[#allocation35_spill] sm:$0xff] }
 0x3bf   : > { %v3067_v21 = vunpack.c.l.b16 %v2978_v25  ;;  %v8096_v3 = vsel %vm575_vm0, %v3863_v28, %v3867_v62  ;;  %v2258_v48 = vadd.f32 %v8976_v46, %v2060_v22  ;;  %v5704_v4 = vld [vmem:[#allocation7 + $0x140] sm:$0xff]  ;;  %v8978_v28 = vld [vmem:[#allocation72_spill] sm:$0xff] }
 0x3c0   : > { %v2707_v54 = vadd.f32 %v8066_v37, %v2672_v1  ;;  %4305 = vmatmul.bf16.gmra.mxu0 %v7850_v61  ;;  %v3166_v61 = vshrl.u32 %v8039_v15, 16  ;;  %4139 = vmatpush.bf16.msrb.mxu3 %v5704_v4 }
 0x3c1   : > { %v8100_v52 = vpack.c.b16 %v3067_v21, %v3066_v57  ;;  %v3541_v6 = vpop.f32.mrf.mxu3  ;;  %v2476_v0 = vadd.f32 %v8978_v28, %v2258_v48 }
 0x3c2   : > { %v2738_v14 = vmax.f32 %v2707_v54, 0.0  ;;  %v8107_v25 = vadd.f32 %v3541_v6, %v3379_v2  ;;  %v8979_v2 = vrot.slane %v8039_v15, 1  ;;  %v3168_v6 = vor.u32 %v3166_v61, %v3164_v36 }
 0x3c3   : > { %3419 = vmatmul.bf16.gmra.mxu2 %v8100_v52  ;;  %v8111_v1 = vrot.slane %v8100_v52, 1  ;;  %v3170_v57 = vshll.u32 %v8100_v52, 16 }
 0x3c4   : > { %8977 = vst [vmem:[#allocation82_spill] sm:$0xff] %v8107_v25  ;;  %v2948_v39 = vsel %vm2821_vm11, %v2738_v14, 0.0  ;;  %v5735_v14 = vld [vmem:[#allocation7 + $0x238] sm:$0xff] }
 0x3c5   : > { %v2979_v59 = vpack.c.bf16 %v2948_v39, %v2948_v39  ;;  %v2628_v12 = vpop.f32.mrf.mxu0  ;;  %v3260_v22 = vpop.f32.mrf.mxu1  ;;  %v8120_v54 = vsel %vm1041_vm1, %v8979_v2, %v8111_v1  ;;  %v3172_v46 = vrot.slane %v3170_v57, 1  ;;  %4616 = vmatpush.bf16.msra.mxu2 %v5735_v14  ;;  %v8984_v14 = vld [vmem:[#allocation26_spill] sm:$0xff] }
 0x3c6   : > { %8980 = vst [vmem:[#allocation40_spill] sm:$0xff] %v8120_v54  ;;  %v2673_v24 = vadd.f32 %v2628_v12, %v2476_v0  ;;  %v3382_v25 = vadd.f32 %v3381_v45, %v3260_v22  ;;  %v3385_v16 = vpop.f32.mrf.mxu2  ;;  %3578 = vmatmul.bf16.gmra.mxu3 %v8120_v54  ;;  %v3869_v12 = vshrl.u32 %v8070_v42, 16  ;;  %v8985_v54 = vrot.slane %v8070_v42, 1 }
 0x3c7   : > { %v3068_v30 = vunpack.c.l.b16 %v2979_v59  ;;  %v8124_v48 = vsel %vm575_vm0, %v3168_v6, %v3172_v46 }
 0x3c8   : > { %8981 = vst [vmem:[#allocation86_spill] sm:$0xff] %v8124_v48  ;;  %v2708_v4 = vadd.f32 %v8066_v37, %v2673_v24  ;;  %3294 = vmatmul.bf16.gmra.mxu1 %v8124_v48  ;;  %v8983_v48 = vld [vmem:[#allocation52_spill] sm:$0xff] }
 0x3c9   : > { %v8128_v28 = vpack.c.b16 %v3068_v30, %v3067_v21  ;;  %v3544_v39 = vpop.f32.mrf.mxu3  ;;  %v3081_v45 = vpack.c.b16 %v3068_v30, %v3068_v30  ;;  %v3871_v21 = vor.u32 %v3869_v12, %v3867_v62  ;;  %v8986_v12 = vld [vmem:[#allocation39_spill] sm:$0xff] }
 0x3ca   : > { %v2739_v36 = vmax.f32 %v2708_v4, 0.0  ;;  %v8130_v61 = vadd.f32 %v3544_v39, %v3382_v25  ;;  %v2062_v4 = vadd.f32 %v8984_v14, %v8983_v48 }
 0x3cb   : > { %v3873_v57 = vshll.u32 %v8128_v28, 16  ;;  %v4066_v59 = vrot.slane %v8128_v28, 1  ;;  %v3178_v18 = vshll.u32 %v3081_v45, 16 }
 0x3cc   : > { %8982 = vst [vmem:[#allocation45_spill] sm:$0xff] %v8130_v61  ;;  %v2949_v0 = vsel %vm8091_vm10, %v2739_v36, 0.0  ;;  %v2759_v36 = vadd.s32 9, %v7572_v44 }
 0x3cd   : > { %v2980_v24 = vpack.c.bf16 %v2949_v0, %v2949_v0  ;;  %v2631_v22 = vpop.f32.mrf.mxu0  ;;  %v3262_v2 = vpop.f32.mrf.mxu1  ;;  %v3875_v6 = vrot.slane %v3873_v57, 1  ;;  %v8143_v61 = vsel %vm1041_vm1, %v8985_v54, %v4066_v59  ;;  %v5727_v0 = vld [vmem:[#allocation7 + $0x1f8] sm:$0xff]  ;;  %v3464_v54 = vrot.slane %v3081_v45, 1 }
 0x3ce   : > { %v2674_v25 = vadd.f32 %v2631_v22, %v7696_v13  ;;  %v3387_v39 = vpop.f32.mrf.mxu2  ;;  %4462 = vmatpush.bf16.msra.mxu1 %v5727_v0  ;;  %v2260_v57 = vadd.f32 %v8986_v12, %v2062_v4  ;;  %vm2770_vm13 = vcmp.ge.s32.totalorder %v2759_v36, 0  ;;  %vm2781_vm14 = vcmp.lt.s32.totalorder %v2759_v36, 16 }
 0x3cf   : > { %v3622_v58 = vunpack.c.l.b16 %v2980_v24  ;;  %v8147_v2 = vsel %vm575_vm0, %v3871_v21, %v3875_v6  ;;  %v3174_v22 = vshrl.u32 %v8100_v52, 16  ;;  %vm8165_vm15 = vmand %vm2770_vm13, %vm2781_vm14 }
 0x3d0   : > { %v2709_v62 = vadd.f32 %v8066_v37, %v2674_v25  ;;  %4310 = vmatmul.bf16.gmra.mxu0 %v7899_v9  ;;  %v3180_v9 = vrot.slane %v3178_v18, 1  ;;  %v2478_v21 = vadd.f32 %v7716_v31, %v2260_v57  ;;  %vm2824_vm2 = vmand %vm8165_vm15, %vm2794_vm5 }
 0x3d1   : > { %v3546_v13 = vpop.f32.mrf.mxu3  ;;  %v8155_v48 = vpack.c.b16 %v3622_v58, %v3068_v30  ;;  %v3465_v30 = vsel %vm1041_vm1, %v8111_v1, %v3464_v54  ;;  %v8163_v45 = vor.u32 %v3174_v22, %v3172_v46  ;;  %vm2860_vm3 = vmand %vm8165_vm15, %vm2830_vm7 }
 0x3d2   : > { %v2740_v24 = vmax.f32 %v2709_v62, 0.0 }
 0x3d3   : > { %3961 = vmatmul.bf16.vlgmr.msrb.gmra.mxu2 %v7682_v8  ;;  %8987 = vst [vmem:[#allocation91_spill] sm:$0xff] %v8163_v45  ;;  %v3181_v31 = vsel %vm575_vm0, %v8163_v45, %v3180_v9 }
 0x3d4   : > { %v2950_v14 = vsel %vm2857_vm12, %v2740_v24, 0.0  ;;  %v3877_v24 = vshrl.u32 %v8128_v28, 16 }
 0x3d5   : > { %v2981_v33 = vpack.c.bf16 %v2950_v14, %v2950_v14  ;;  %v2633_v25 = vpop.f32.mrf.mxu0  ;;  %v3264_v13 = vpop.f32.mrf.mxu1 }
 0x3d6   : > { %v2675_v4 = vadd.f32 %v2633_v25, %v2478_v21  ;;  %v3386_v8 = vadd.f32 %v3385_v16, %v3264_v13  ;;  %v3390_v36 = vpop.f32.mrf.mxu2  ;;  %3582 = vmatmul.bf16.gmra.mxu3 %v3465_v30  ;;  %v5734_v16 = vld [vmem:[#allocation7 + $0x230] sm:$0xff]  ;;  %v3879_v25 = vor.u32 %v3877_v24, %v3875_v6 }
 0x3d7   : > { %v3623_v18 = vunpack.c.l.b16 %v2981_v33  ;;  %4617 = vmatpush.bf16.msra.mxu2 %v5734_v16  ;;  %v5726_v6 = vld [vmem:[#allocation7 + $0x1f0] sm:$0xff] }
 0x3d8   : > { %v2710_v62 = vadd.f32 %v8066_v37, %v2675_v4  ;;  %3298 = vmatmul.bf16.gmra.mxu1 %v3181_v31  ;;  %v8990_v4 = vld [vmem:[#allocation65_spill] sm:$0xff] }
 0x3d9   : > { %v8172_v12 = vpack.c.b16 %v3623_v18, %v3622_v58  ;;  %v3548_v46 = vpop.f32.mrf.mxu3  ;;  %4463 = vmatpush.bf16.msra.mxu1 %v5726_v6 }
 0x3da   : > { %v2741_v54 = vmax.f32 %v2710_v62, 0.0  ;;  %v8178_v57 = vadd.f32 %v3548_v46, %v3386_v8  ;;  %v8991_v8 = vld [vmem:[#allocation44_spill] sm:$0xff] }
 0x3db   : > { %v3881_v22 = vshll.u32 %v8172_v12, 16  ;;  %v4068_v9 = vrot.slane %v8172_v12, 1  ;;  %v2064_v36 = vadd.f32 %v8991_v8, %v8990_v4 }
 0x3dc   : > { %v2951_v21 = vsel %vm2824_vm2, %v2741_v54, 0.0 }
 0x3dd   : > { %v2982_v58 = vpack.c.bf16 %v2951_v21, %v2951_v21  ;;  %v2636_v14 = vpop.f32.mrf.mxu0  ;;  %v3266_v33 = vpop.f32.mrf.mxu1  ;;  %v3883_v13 = vrot.slane %v3881_v22, 1  ;;  %v8184_v30 = vsel %vm1041_vm1, %v4066_v59, %v4068_v9  ;;  %v8992_v22 = vld [vmem:[#allocation48_spill] sm:$0xff] }
 0x3de   : > { %v2676_v31 = vadd.f32 %v2636_v14, %v7745_v23  ;;  %v3388_v62 = vadd.f32 %v3387_v39, %v3266_v33  ;;  %v3391_v46 = vpop.f32.mrf.mxu2  ;;  %v2262_v21 = vadd.f32 %v8992_v22, %v2064_v36  ;;  %v3885_v23 = vshrl.u32 %v8172_v12, 16 }
 0x3df   : > { %v3791_v10 = vunpack.c.l.b16 %v2982_v58  ;;  %v8190_v45 = vsel %vm575_vm0, %v3879_v25, %v3883_v13 }
 0x3e0   : > { %v2711_v54 = vadd.f32 %v8066_v37, %v2676_v31  ;;  %4314 = vmatmul.bf16.gmra.mxu0 %v7943_v51  ;;  %v2480_v14 = vadd.f32 %v7769_v63, %v2262_v21  ;;  %v3887_v8 = vor.u32 %v3885_v23, %v3883_v13 }
 0x3e1   : > { %v3550_v16 = vpop.f32.mrf.mxu3  ;;  %v8194_v24 = vpack.c.b16 %v3791_v10, %v3623_v18  ;;  %v3792_v59 = vpack.c.b16 %v3791_v10, %v3791_v10 }
 0x3e2   : > { %v8197_v4 = vadd.f32 %v3550_v16, %v3388_v62  ;;  %v2742_v33 = vmax.f32 %v2711_v54, 0.0  ;;  %v8993_v62 = vld [vmem:[#allocation62_spill] sm:$0xff]  ;;  %v8994_v54 = vld [vmem:[#allocation68_spill] sm:$0xff] }
 0x3e3   : > { %3966 = vmatmul.bf16.gmra.mxu2 %v7731_v26  ;;  %v3889_v39 = vshll.u32 %v3792_v59, 16  ;;  %v4070_v58 = vrot.slane %v3792_v59, 1 }
 0x3e4   : > { %v2952_v6 = vsel %vm8165_vm15, %v2742_v33, 0.0 }
 0x3e5   : > { %v2638_v51 = vpop.f32.mrf.mxu0  ;;  %v3269_v25 = vpop.f32.mrf.mxu1  ;;  %v3891_v18 = vrot.slane %v3889_v39, 1  ;;  %v8203_v10 = vsel %vm1041_vm1, %v4068_v9, %v4070_v58  ;;  %v2983_v16 = vpack.c.bf16 %v2952_v6, %v2952_v6  ;;  %v5725_v6 = vld [vmem:[#allocation7 + $0x1e8] sm:$0xff] }
 0x3e6   : > { %v2677_v36 = vadd.f32 %v2638_v51, %v2480_v14  ;;  %v3394_v31 = vpop.f32.mrf.mxu2  ;;  %4140 = vmatmul.bf16.vlgmr.msrb.gmra.mxu3 %v8993_v62  ;;  %4464 = vmatpush.bf16.msra.mxu1 %v5725_v6 }
 0x3e7   : > { %v8207_v26 = vsel %vm575_vm0, %v3887_v8, %v3891_v18  ;;  %v4228_v33 = vunpack.c.l.b16 %v2983_v16  ;;  %v5733_v8 = vld [vmem:[#allocation7 + $0x228] sm:$0xff] }
 0x3e8   : > { %v2712_v63 = vadd.f32 %v8066_v37, %v2677_v36  ;;  %3704 = vmatmul.bf16.vlgmr.msrb.gmra.mxu1 %v8994_v54  ;;  %4618 = vmatpush.bf16.msra.mxu2 %v5733_v8 }
 0x3e9   : > { %v3553_v9 = vpop.f32.mrf.mxu3 }
 0x3ea   : > { %v2743_v13 = vmax.f32 %v2712_v63, 0.0 }
 0x3ec   : > { %v2953_v59 = vsel %vm2860_vm3, %v2743_v13, 0.0 }
 0x3ed   : > { %v2984_v22 = vpack.c.bf16 %v2953_v59, %v2953_v59  ;;  %v2641_v21 = vpop.f32.mrf.mxu0  ;;  %v3270_v23 = vpop.f32.mrf.mxu1 }
 0x3ee   : > { %v8218_v39 = vadd.f32 %v2641_v21, %v7809_v35  ;;  %v3392_v58 = vadd.f32 %v3391_v46, %v3270_v23  ;;  %v3396_v14 = vpop.f32.mrf.mxu2  ;;  %v8995_v46 = vld [vmem:[#allocation85_spill] sm:$0xff]  ;;  %v5732_v23 = vld [vmem:[#allocation7 + $0x220] sm:$0xff] }
 0x3ef   : > { %v4229_v51 = vunpack.c.l.b16 %v2984_v22  ;;  %4619 = vmatpush.bf16.msra.mxu2 %v5732_v23 }
 0x3f0   : > { %4318 = vmatmul.bf16.gmra.mxu0 %v7985_v29 }
 0x3f1   : > { %v3554_v55 = vpop.f32.mrf.mxu3  ;;  %v8221_v25 = vpack.c.b16 %v4229_v51, %v4228_v33 }
 0x3f2   : > { %v8223_v0 = vadd.f32 %v3554_v55, %v3392_v58 }
 0x3f3   : > { %3970 = vmatmul.bf16.gmra.mxu2 %v7793_v43 }
 0x3f5   : > { %v2643_v18 = vpop.f32.mrf.mxu0  ;;  %v3273_v36 = vpop.f32.mrf.mxu1 }
 0x3f6   : > { %v3395_v62 = vadd.f32 %v3394_v31, %v3273_v36  ;;  %v3398_v35 = vpop.f32.mrf.mxu2  ;;  %4145 = vmatmul.bf16.gmra.mxu3 %v7725_v56 }
 0x3f8   : > { %3709 = vmatmul.bf16.gmra.mxu1 %v8995_v46 }
 0x3f9   : > { %v3557_v63 = vpop.f32.mrf.mxu3 }
 0x3fa   : > { %v8228_v29 = vadd.f32 %v3557_v63, %v3395_v62 }
 0x3fd   : > { %v2645_v54 = vpop.f32.mrf.mxu0  ;;  %v3275_v9 = vpop.f32.mrf.mxu1 }
 0x3fe   : > { %v3400_v13 = vpop.f32.mrf.mxu2 }
 0x400   : > { %4323 = vmatmul.bf16.gmra.mxu0 %v8039_v15 }
 0x401   : > { %v3559_v43 = vpop.f32.mrf.mxu3 }
 0x403   : > { %3974 = vmatmul.bf16.gmra.mxu2 %v7847_v41  ;;  %v5724_v41 = vld [vmem:[#allocation7 + $0x1e0] sm:$0xff] }
 0x404   : > { %4465 = vmatpush.bf16.msra.mxu1 %v5724_v41 }
 0x405   : > { %v2646_v16 = vpop.f32.mrf.mxu0  ;;  %v3277_v31 = vpop.f32.mrf.mxu1 }
 0x406   : > { %v3399_v59 = vadd.f32 %v3398_v35, %v3277_v31  ;;  %v3403_v22 = vpop.f32.mrf.mxu2  ;;  %4149 = vmatmul.bf16.gmra.mxu3 %v7781_v5 }
 0x408   : > { %3713 = vmatmul.bf16.gmra.mxu1 %v7707_v38 }
 0x409   : > { %v3561_v56 = vpop.f32.mrf.mxu3 }
 0x40a   : > { %v8234_v21 = vadd.f32 %v3561_v56, %v3399_v59 }
 0x40d   : > { %v3279_v58 = vpop.f32.mrf.mxu1  ;;  %v8236_v14 = vpop.f32.mrf.mxu0 }
 0x40e   : > { %v3401_v15 = vadd.f32 %v3400_v13, %v3279_v58  ;;  %v3404_v33 = vpop.f32.mrf.mxu2 }
 0x410   : > { %4327 = vmatmul.bf16.gmra.mxu0 %v8100_v52 }
 0x411   : > { %v3563_v51 = vpop.f32.mrf.mxu3 }
 0x412   : > { %v8239_v55 = vadd.f32 %v3563_v51, %v3401_v15  ;;  %v5730_v15 = vld [vmem:[#allocation7 + $0x210] sm:$0xff] }
 0x413   : > { %3979 = vmatmul.bf16.gmra.mxu2 %v7894_v50  ;;  %v5731_v50 = vld [vmem:[#allocation7 + $0x218] sm:$0xff] }
 0x414   : > { %4620 = vmatpush.bf16.msra.mxu2 %v5731_v50 }
 0x415   : > { %v3282_v38 = vpop.f32.mrf.mxu1  ;;  %v8242_v5 = vpop.f32.mrf.mxu0 }
 0x416   : > { %v3407_v8 = vpop.f32.mrf.mxu2  ;;  %4153 = vmatmul.bf16.gmra.mxu3 %v7840_v7 }
 0x418   : > { %3717 = vmatmul.bf16.gmra.mxu1 %v7760_v32  ;;  %v5723_v32 = vld [vmem:[#allocation7 + $0x1d8] sm:$0xff]  ;;  %4621 = vmatpush.bf16.msra.mxu2 %v5730_v15 }
 0x419   : > { %v3566_v18 = vpop.f32.mrf.mxu3  ;;  %4466 = vmatpush.bf16.msra.mxu1 %v5723_v32 }
 0x41d   : > { %v3283_v36 = vpop.f32.mrf.mxu1  ;;  %v4298_v62 = vpop.f32.mrf.mxu0 }
 0x41e   : > { %v3405_v35 = vadd.f32 %v3404_v33, %v3283_v36  ;;  %v3409_v52 = vpop.f32.mrf.mxu2 }
 0x420   : > { %4331 = vmatmul.bf16.gmra.mxu0 %v8155_v48 }
 0x421   : > { %v3567_v46 = vpop.f32.mrf.mxu3 }
 0x422   : > { %v8247_v6 = vadd.f32 %v3567_v46, %v3405_v35 }
 0x423   : > { %3983 = vmatmul.bf16.gmra.mxu2 %v7939_v17 }
 0x425   : > { %v3286_v63 = vpop.f32.mrf.mxu1  ;;  %v8250_v54 = vpop.f32.mrf.mxu0 }
 0x426   : > { %v3408_v7 = vadd.f32 %v3407_v8, %v3286_v63  ;;  %v3411_v9 = vpop.f32.mrf.mxu2  ;;  %4158 = vmatmul.bf16.gmra.mxu3 %v7888_v53  ;;  %v5722_v8 = vld [vmem:[#allocation7 + $0x1d0] sm:$0xff] }
 0x427   : > { %4467 = vmatpush.bf16.msra.mxu1 %v5722_v8 }
 0x428   : > { %3722 = vmatmul.bf16.gmra.mxu1 %v7825_v34 }
 0x429   : > { %v3570_v13 = vpop.f32.mrf.mxu3 }
 0x42a   : > { %v8254_v43 = vadd.f32 %v3570_v13, %v3408_v7 }
 0x42d   : > { %v3288_v16 = vpop.f32.mrf.mxu1  ;;  %v8256_v31 = vpop.f32.mrf.mxu0 }
 0x42e   : > { %v3413_v17 = vpop.f32.mrf.mxu2 }
 0x430   : > { %4336 = vmatmul.bf16.gmra.mxu0 %v8194_v24 }
 0x431   : > { %v3572_v59 = vpop.f32.mrf.mxu3 }
 0x433   : > { %3987 = vmatmul.bf16.gmra.mxu2 %v7981_v20 }
 0x435   : > { %v3290_v22 = vpop.f32.mrf.mxu1  ;;  %v4304_v56 = vpop.f32.mrf.mxu0 }
 0x436   : > { %v3412_v23 = vadd.f32 %v3411_v9, %v3290_v22  ;;  %v3416_v53 = vpop.f32.mrf.mxu2  ;;  %4162 = vmatmul.bf16.gmra.mxu3 %v7929_v40  ;;  %v5729_v9 = vld [vmem:[#allocation7 + $0x208] sm:$0xff] }
 0x437   : > { %4622 = vmatpush.bf16.msra.mxu2 %v5729_v9 }
 0x438   : > { %3726 = vmatmul.bf16.gmra.mxu1 %v7878_v27 }
 0x439   : > { %v3574_v34 = vpop.f32.mrf.mxu3 }
 0x43a   : > { %v8262_v58 = vadd.f32 %v3574_v34, %v3412_v23  ;;  %v8996_v34 = vld [vmem:[#allocation64_spill] sm:$0xff] }
 0x43d   : > { %v3292_v33 = vpop.f32.mrf.mxu1  ;;  %v8264_v41 = vpop.f32.mrf.mxu0 }
 0x43e   : > { %v3414_v51 = vadd.f32 %v3413_v17, %v3292_v33  ;;  %v3417_v38 = vpop.f32.mrf.mxu2 }
 0x440   : > { %4340 = vmatmul.bf16.gmra.mxu0 %v8221_v25 }
 0x441   : > { %v3576_v20 = vpop.f32.mrf.mxu3 }
 0x442   : > { %v8267_v18 = vadd.f32 %v3576_v20, %v3414_v51  ;;  %v5728_v20 = vld [vmem:[#allocation7 + $0x200] sm:$0xff] }
 0x443   : > { %3992 = vmatmul.bf16.gmra.mxu2 %v8035_v47 }
 0x444   : > { %4623 = vmatpush.bf16.msra.mxu2 %v5728_v20 }
 0x445   : > { %v3295_v27 = vpop.f32.mrf.mxu1  ;;  %v8270_v40 = vpop.f32.mrf.mxu0 }
 0x446   : > { %v3420_v36 = vpop.f32.mrf.mxu2  ;;  %4166 = vmatmul.bf16.gmra.mxu3 %v7974_v19 }
 0x448   : > { %3730 = vmatmul.bf16.gmra.mxu1 %v7919_v49  ;;  %v5721_v49 = vld [vmem:[#allocation7 + $0x1c8] sm:$0xff] }
 0x449   : > { %v3579_v62 = vpop.f32.mrf.mxu3  ;;  %4468 = vmatpush.bf16.msra.mxu1 %v5721_v49 }
 0x44a   : > { %v8999_v62 = vld [vmem:[#allocation93_spill] sm:$0xff] }
 0x44d   : > { %v3296_v35 = vpop.f32.mrf.mxu1  ;;  %v4311_v52 = vpop.f32.mrf.mxu0 }
 0x44e   : > { %v3418_v46 = vadd.f32 %v3417_v38, %v3296_v35  ;;  %v3422_v50 = vpop.f32.mrf.mxu2  ;;  %v5720_v52 = vld [vmem:[#allocation7 + $0x1c0] sm:$0xff] }
 0x44f   : > { %4469 = vmatpush.bf16.msra.mxu1 %v5720_v52 }
 0x451   : > { %v3580_v63 = vpop.f32.mrf.mxu3 }
 0x452   : > { %v8274_v7 = vadd.f32 %v3580_v63, %v3418_v46 }
 0x453   : > { %3996 = vmatmul.bf16.gmra.mxu2 %v8096_v3 }
 0x455   : > { %v3299_v47 = vpop.f32.mrf.mxu1  ;;  %v8277_v32 = vpop.f32.mrf.mxu0 }
 0x456   : > { %v3421_v13 = vadd.f32 %v3420_v36, %v3299_v47  ;;  %v3962_v16 = vpop.f32.mrf.mxu2  ;;  %4171 = vmatmul.bf16.gmra.mxu3 %v8029_v60  ;;  %v8997_v60 = vld [vmem:[#allocation36_spill] sm:$0xff] }
 0x458   : > { %3735 = vmatmul.bf16.gmra.mxu1 %v7964_v11  ;;  %v8998_v11 = vld [vmem:[#allocation76_spill] sm:$0xff] }
 0x459   : > { %v3583_v19 = vpop.f32.mrf.mxu3 }
 0x45a   : > { %v8281_v17 = vadd.f32 %v3583_v19, %v3421_v13 }
 0x45d   : > { %v3301_v59 = vpop.f32.mrf.mxu1  ;;  %v8283_v22 = vpop.f32.mrf.mxu0 }
 0x45e   : > { %v3964_v3 = vpop.f32.mrf.mxu2  ;;  %v9000_v59 = vld [vmem:[#allocation82_spill] sm:$0xff] }
 0x461   : > { %v3585_v56 = vpop.f32.mrf.mxu3 }
 0x463   : > { %4000 = vmatmul.bf16.gmra.mxu2 %v8147_v2 }
 0x465   : > { %v3705_v23 = vpop.f32.mrf.mxu1  ;;  %v4317_v53 = vpop.f32.mrf.mxu0 }
 0x466   : > { %v3757_v15 = vadd.f32 %v3705_v23, %v8996_v34  ;;  %v3967_v33 = vpop.f32.mrf.mxu2  ;;  %4175 = vmatmul.bf16.gmra.mxu3 %v8997_v60 }
 0x467   : > { %v9001_v33 = vld [vmem:[#allocation45_spill] sm:$0xff] }
 0x468   : > { %3739 = vmatmul.bf16.gmra.mxu1 %v8998_v11  ;;  %v4014_v51 = vadd.f32 %v3962_v16, %v3757_v15 }
 0x469   : > { %v4141_v38 = vpop.f32.mrf.mxu3 }
 0x46a   : > { %v8289_v8 = vadd.f32 %v4141_v38, %v4014_v51 }
 0x46d   : > { %v3707_v27 = vpop.f32.mrf.mxu1  ;;  %v8291_v36 = vpop.f32.mrf.mxu0 }
 0x46e   : > { %v3758_v2 = vadd.f32 %v3707_v27, %v8999_v62  ;;  %v3968_v35 = vpop.f32.mrf.mxu2 }
 0x470   : > { %v4015_v46 = vadd.f32 %v3964_v3, %v3758_v2 }
 0x471   : > { %v4143_v50 = vpop.f32.mrf.mxu3 }
 0x472   : > { %v8294_v63 = vadd.f32 %v4143_v50, %v4015_v46 }
 0x473   : > { %4005 = vmatmul.bf16.gmra.mxu2 %v8190_v45 }
 0x475   : > { %v3710_v9 = vpop.f32.mrf.mxu1  ;;  %v8297_v47 = vpop.f32.mrf.mxu0 }
 0x476   : > { %v3971_v13 = vpop.f32.mrf.mxu2  ;;  %4179 = vmatmul.bf16.gmra.mxu3 %v8143_v61 }
 0x478   : > { %3743 = vmatmul.bf16.gmra.mxu1 %v8070_v42 }
 0x479   : > { %v4146_v16 = vpop.f32.mrf.mxu3 }
 0x47d   : > { %v3711_v49 = vpop.f32.mrf.mxu1  ;;  %v4324_v19 = vpop.f32.mrf.mxu0 }
 0x47e   : > { %v3759_v56 = vadd.f32 %v3711_v49, %v9000_v59  ;;  %v3973_v3 = vpop.f32.mrf.mxu2 }
 0x480   : > { %v4016_v23 = vadd.f32 %v3968_v35, %v3759_v56 }
 0x481   : > { %v4147_v53 = vpop.f32.mrf.mxu3 }
 0x482   : > { %v8302_v34 = vadd.f32 %v4147_v53, %v4016_v23  ;;  %v9004_v23 = vld [vmem:[#allocation27_spill] sm:$0xff] }
 0x483   : > { %4009 = vmatmul.bf16.gmra.mxu2 %v8207_v26  ;;  %v9002_v26 = vld [vmem:[#allocation87_spill] sm:$0xff] }
 0x485   : > { %v3714_v45 = vpop.f32.mrf.mxu1  ;;  %v8305_v15 = vpop.f32.mrf.mxu0 }
 0x486   : > { %v3760_v60 = vadd.f32 %v3714_v45, %v9001_v33  ;;  %v3975_v61 = vpop.f32.mrf.mxu2  ;;  %4184 = vmatmul.bf16.gmra.mxu3 %v8184_v30 }
 0x488   : > { %3748 = vmatmul.bf16.gmra.mxu1 %v8128_v28  ;;  %v4017_v42 = vadd.f32 %v3971_v13, %v3760_v60 }
 0x489   : > { %v4150_v11 = vpop.f32.mrf.mxu3 }
 0x48a   : > { %v8310_v51 = vadd.f32 %v4150_v11, %v4017_v42 }
 0x48d   : > { %v3716_v38 = vpop.f32.mrf.mxu1  ;;  %v8312_v20 = vpop.f32.mrf.mxu0 }
 0x48e   : > { %v3977_v27 = vpop.f32.mrf.mxu2  ;;  %v9005_v38 = vld [vmem:[#allocation90_spill] sm:$0xff] }
 0x491   : > { %v4152_v62 = vpop.f32.mrf.mxu3 }
 0x493   : > { %4624 = vmatmul.bf16.vlgmr.msra.gmra.mxu2 %v9002_v26 }
 0x495   : > { %v3718_v2 = vpop.f32.mrf.mxu1  ;;  %v4330_v35 = vpop.f32.mrf.mxu0 }
 0x496   : > { %v3761_v52 = vadd.f32 %v3718_v2, %v8178_v57  ;;  %v3980_v46 = vpop.f32.mrf.mxu2  ;;  %4188 = vmatmul.bf16.gmra.mxu3 %v8203_v10  ;;  %v9003_v57 = vld [vmem:[#allocation88_spill] sm:$0xff]  ;;  %v9006_v35 = vld [vmem:[#allocation75_spill] sm:$0xff] }
 0x498   : > { %3752 = vmatmul.bf16.gmra.mxu1 %v8172_v12  ;;  %v4018_v28 = vadd.f32 %v3975_v61, %v3761_v52 }
 0x499   : > { %v4154_v30 = vpop.f32.mrf.mxu3 }
 0x49a   : > { %v8318_v50 = vadd.f32 %v4154_v30, %v4018_v28 }
 0x49d   : > { %v3720_v9 = vpop.f32.mrf.mxu1  ;;  %v8320_v13 = vpop.f32.mrf.mxu0 }
 0x49e   : > { %v3762_v16 = vadd.f32 %v3720_v9, %v8197_v4  ;;  %v3981_v49 = vpop.f32.mrf.mxu2 }
 0x4a0   : > { %v4019_v19 = vadd.f32 %v3977_v27, %v3762_v16 }
 0x4a1   : > { %v4156_v59 = vpop.f32.mrf.mxu3 }
 0x4a2   : > { %v8323_v56 = vadd.f32 %v4156_v59, %v4019_v19 }
 0x4a3   : > { %4629 = vmatmul.bf16.gmra.mxu2 %v9003_v57 }
 0x4a5   : > { %v3723_v3 = vpop.f32.mrf.mxu1  ;;  %v8326_v10 = vpop.f32.mrf.mxu0 }
 0x4a6   : > { %v3984_v12 = vpop.f32.mrf.mxu2 }
 0x4a8   : > { %4470 = vmatmul.bf16.vlgmr.msra.gmra.mxu1 %v9004_v23 }
 0x4a9   : > { %v4159_v53 = vpop.f32.mrf.mxu3 }
 0x4ad   : > { %v3724_v45 = vpop.f32.mrf.mxu1  ;;  %v4337_v33 = vpop.f32.mrf.mxu0 }
 0x4ae   : > { %v3763_v60 = vadd.f32 %v3724_v45, %v8223_v0  ;;  %v3986_v61 = vpop.f32.mrf.mxu2 }
 0x4b0   : > { %v4020_v4 = vadd.f32 %v3981_v49, %v3763_v60  ;;  %v9007_v49 = vld [vmem:[#allocation28_spill] sm:$0xff] }
 0x4b1   : > { %v4160_v42 = vpop.f32.mrf.mxu3 }
 0x4b2   : > { %v8330_v11 = vadd.f32 %v4160_v42, %v4020_v4 }
 0x4b3   : > { %4633 = vmatmul.bf16.gmra.mxu2 %v9005_v38  ;;  %v9009_v38 = vld [vmem:[#allocation69_spill] sm:$0xff] }
 0x4b5   : > { %v3727_v27 = vpop.f32.mrf.mxu1  ;;  %v8333_v62 = vpop.f32.mrf.mxu0 }
 0x4b6   : > { %v3764_v26 = vadd.f32 %v3727_v27, %v8228_v29  ;;  %v3988_v2 = vpop.f32.mrf.mxu2  ;;  %v9008_v29 = vld [vmem:[#allocation59_spill] sm:$0xff] }
 0x4b8   : > { %4475 = vmatmul.bf16.gmra.mxu1 %v9006_v35  ;;  %v4021_v52 = vadd.f32 %v3984_v12, %v3764_v26 }
 0x4b9   : > { %v4163_v46 = vpop.f32.mrf.mxu3 }
 0x4ba   : > { %v8337_v28 = vadd.f32 %v4163_v46, %v4021_v52 }
 0x4bd   : > { %v3729_v0 = vpop.f32.mrf.mxu1  ;;  %v8339_v30 = vpop.f32.mrf.mxu0 }
 0x4be   : > { %v3990_v9 = vpop.f32.mrf.mxu2 }
 0x4c1   : > { %v4165_v16 = vpop.f32.mrf.mxu3 }
 0x4c3   : > { %4637 = vmatmul.bf16.gmra.mxu2 %v9007_v49 }
 0x4c5   : > { %v3731_v19 = vpop.f32.mrf.mxu1  ;;  %v4343_v59 = vpop.f32.mrf.mxu0 }
 0x4c6   : > { %v3765_v57 = vadd.f32 %v3731_v19, %v8234_v21  ;;  %v3993_v3 = vpop.f32.mrf.mxu2  ;;  %v9010_v21 = vld [vmem:[#allocation79_spill] sm:$0xff] }
 0x4c8   : > { %4479 = vmatmul.bf16.gmra.mxu1 %v9008_v29  ;;  %v4022_v23 = vadd.f32 %v3988_v2, %v3765_v57  ;;  %v9012_v57 = vld [vmem:[#allocation92_spill] sm:$0xff] }
 0x4c9   : > { %v4167_v53 = vpop.f32.mrf.mxu3 }
 0x4ca   : > { %v8344_v12 = vadd.f32 %v4167_v53, %v4022_v23 }
 0x4cd   : > { %v3733_v45 = vpop.f32.mrf.mxu1 }
 0x4ce   : > { %v3766_v33 = vadd.f32 %v3733_v45, %v8239_v55  ;;  %v3994_v60 = vpop.f32.mrf.mxu2  ;;  %v9011_v55 = vld [vmem:[#allocation89_spill] sm:$0xff] }
 0x4d0   : > { %v4023_v61 = vadd.f32 %v3990_v9, %v3766_v33  ;;  %v9013_v33 = vld [vmem:[#allocation80_spill] sm:$0xff] }
 0x4d1   : > { %v4169_v4 = vpop.f32.mrf.mxu3 }
 0x4d2   : > { %v8347_v42 = vadd.f32 %v4169_v4, %v4023_v61 }
 0x4d3   : > { %4642 = vmatmul.bf16.gmra.mxu2 %v9009_v38  ;;  %v9014_v38 = vld [vmem:[#allocation32_spill] sm:$0xff] }
 0x4d5   : > { %v3736_v27 = vpop.f32.mrf.mxu1 }
 0x4d6   : > { %v3997_v26 = vpop.f32.mrf.mxu2 }
 0x4d8   : > { %4483 = vmatmul.bf16.gmra.mxu1 %v9010_v21 }
 0x4d9   : > { %v4172_v35 = vpop.f32.mrf.mxu3 }
 0x4dd   : > { %v3737_v52 = vpop.f32.mrf.mxu1 }
 0x4de   : > { %v3767_v2 = vadd.f32 %v3737_v52, %v8247_v6  ;;  %v3999_v46 = vpop.f32.mrf.mxu2 }
 0x4e0   : > { %v4024_v0 = vadd.f32 %v3994_v60, %v3767_v2 }
 0x4e1   : > { %v4173_v16 = vpop.f32.mrf.mxu3 }
 0x4e2   : > { %v8352_v49 = vadd.f32 %v4173_v16, %v4024_v0  ;;  %v9015_v16 = vld [vmem:[#allocation40_spill] sm:$0xff] }
 0x4e3   : > { %4646 = vmatmul.bf16.gmra.mxu2 %v9011_v55 }
 0x4e5   : > { %v3740_v9 = vpop.f32.mrf.mxu1 }
 0x4e6   : > { %v3768_v19 = vadd.f32 %v3740_v9, %v8254_v43  ;;  %v4001_v59 = vpop.f32.mrf.mxu2 }
 0x4e8   : > { %4488 = vmatmul.bf16.gmra.mxu1 %v9012_v57  ;;  %v4025_v3 = vadd.f32 %v3997_v26, %v3768_v19 }
 0x4e9   : > { %v4176_v29 = vpop.f32.mrf.mxu3 }
 0x4ea   : > { %v8357_v23 = vadd.f32 %v4176_v29, %v4025_v3  ;;  %v4556_v29 = vrot.slane %v8155_v48, 1 }
 0x4ed   : > { %v3742_v53 = vpop.f32.mrf.mxu1 }
 0x4ee   : > { %v4003_v45 = vpop.f32.mrf.mxu2 }
 0x4f1   : > { %v4178_v6 = vpop.f32.mrf.mxu3 }
 0x4f3   : > { %4650 = vmatmul.bf16.gmra.mxu2 %v9013_v33 }
 0x4f5   : > { %v3744_v60 = vpop.f32.mrf.mxu1 }
 0x4f6   : > { %v3769_v61 = vadd.f32 %v3744_v60, %v8262_v58  ;;  %v4006_v4 = vpop.f32.mrf.mxu2  ;;  %v9016_v58 = vld [vmem:[#allocation94_spill] sm:$0xff] }
 0x4f7   : > { %v9017_v4 = vld [vmem:[#allocation86_spill] sm:$0xff] }
 0x4f8   : > { %4492 = vmatmul.bf16.gmra.mxu1 %v9014_v38  ;;  %v4026_v27 = vadd.f32 %v4001_v59, %v3769_v61 }
 0x4f9   : > { %v4180_v43 = vpop.f32.mrf.mxu3 }
 0x4fa   : > { %v8362_v21 = vadd.f32 %v4180_v43, %v4026_v27 }
 0x4fd   : > { %v3746_v35 = vpop.f32.mrf.mxu1 }
 0x4fe   : > { %v3770_v26 = vadd.f32 %v3746_v35, %v8267_v18  ;;  %v4007_v52 = vpop.f32.mrf.mxu2 }
 0x500   : > { %v4027_v2 = vadd.f32 %v4003_v45, %v3770_v26  ;;  %v4557_v45 = vsel %vm1041_vm1, %v8111_v1, %v4556_v29  ;;  %v4558_v26 = vrot.slane %v8194_v24, 1  ;;  %v2760_v1 = vadd.s32 10, %v7572_v44  ;;  %v9019_v44 = vld [vmem:[#allocation24_spill] sm:$0xff] }
 0x501   : > { %v4182_v46 = vpop.f32.mrf.mxu3 }
 0x502   : > { %v8365_v0 = vadd.f32 %v4182_v46, %v4027_v2  ;;  %v4559_v46 = vsel %vm1041_vm1, %v4556_v29, %v4558_v26  ;;  %vm2771_vm7 = vcmp.ge.s32.totalorder %v2760_v1, 0  ;;  %vm2782_vm4 = vcmp.lt.s32.totalorder %v2760_v1, 16  ;;  %v9020_v29 = vld [vmem:[#allocation25_spill] sm:$0xff] }
 0x503   : > { %4655 = vmatmul.bf16.gmra.mxu2 %v9015_v16  ;;  %vm2793_vm6 = vmand %vm2771_vm7, %vm2782_vm4 }
 0x504   : > { %vm2827_vm8 = vmand %vm2793_vm6, %vm2794_vm5 }
 0x505   : > { %v3749_v55 = vpop.f32.mrf.mxu1 }
 0x506   : > { %v4010_v9 = vpop.f32.mrf.mxu2  ;;  %v4345_v55 = vadd.f32 %v8236_v14, %v8289_v8 }
 0x508   : > { %4496 = vmatmul.bf16.gmra.mxu1 %v9016_v58  ;;  %v2713_v58 = vadd.f32 %v8066_v37, %v8218_v39  ;;  %v8397_v37 = vld [vmem:[%s8565_s4] ss:$0 sm:$0xff]  ;;  %v4346_v39 = vadd.f32 %v8242_v5, %v8294_v63 }
 0x509   : > { %v4185_v19 = vpop.f32.mrf.mxu3 }
 0x50a   : > { %v9018_v19 = vld [vmem:[#allocation91_spill] sm:$0xff] }
 0x50d   : > { %v3750_v57 = vpop.f32.mrf.mxu1 }
 0x50e   : > { %v3771_v59 = vadd.f32 %v3750_v57, %v8274_v7  ;;  %v4012_v3 = vpop.f32.mrf.mxu2 }
 0x50f   : > { %v4693_v3 = vunpack.c.l.bf16 %v9019_v44 }
 0x510   : > { %v4028_v53 = vadd.f32 %v4007_v52, %v3771_v59  ;;  %v4382_v52 = vshll.u32 %v8155_v48, 16 }
 0x511   : > { %v4186_v18 = vpop.f32.mrf.mxu3  ;;  %v4762_v8 = vrot.slane %v4693_v3, 2 }
 0x512   : > { %v8371_v6 = vadd.f32 %v4186_v18, %v4028_v53  ;;  %v4694_v53 = vunpack.c.l.bf16 %v9020_v29  ;;  %v9021_v18 = vld [vmem:[#allocation29_spill] sm:$0xff] }
 0x513   : > { %4659 = vmatmul.bf16.gmra.mxu2 %v4557_v45  ;;  %v4695_v45 = vunpack.c.l.bf16 %v9021_v18 }
 0x515   : > { %v3753_v33 = vpop.f32.mrf.mxu1 }
 0x516   : > { %v3772_v60 = vadd.f32 %v3753_v33, %v8281_v17  ;;  %v4625_v61 = vpop.f32.mrf.mxu2  ;;  %v4384_v17 = vrot.slane %v4382_v52, 1  ;;  %v2744_v33 = vmax.f32 %v2713_v58, 0.0 }
 0x518   : > { %4501 = vmatmul.bf16.gmra.mxu1 %v9017_v4  ;;  %v4029_v38 = vadd.f32 %v4010_v9, %v3772_v60  ;;  %v4385_v57 = vsel %vm575_vm0, %v9018_v19, %v4384_v17  ;;  %v4763_v4 = vrot.slane %v4694_v53, 2  ;;  %v2954_v1 = vsel %vm2827_vm8, %v2744_v33, 0.0 }
 0x519   : > { %v4189_v27 = vpop.f32.mrf.mxu3  ;;  %v2985_v63 = vpack.c.bf16 %v2954_v1, %v2954_v1  ;;  %v4386_v19 = vshrl.u32 %v8155_v48, 16  ;;  %v4347_v48 = vadd.f32 %v8250_v54, %v8302_v34  ;;  %v4348_v54 = vadd.f32 %v8256_v31, %v8310_v51 }
 0x51a   : > { %v8377_v7 = vadd.f32 %v4189_v27, %v4029_v38  ;;  %v4765_v27 = vrot.slane %v4695_v45, 2 }
 0x51b   : > { %v4388_v29 = vor.u32 %v4386_v19, %v4384_v17 }
 0x51c   : > { %v4766_v5 = vsel %vm4761_vm9, %v4763_v4, %v4765_v27 }
 0x51d   : > { %v3755_v43 = vpop.f32.mrf.mxu1 }
 0x51e   : > { %v4627_v35 = vpop.f32.mrf.mxu2 }
 0x521   : > { %v4191_v2 = vpop.f32.mrf.mxu3 }
 0x522   : > { %v4560_v2 = vrot.slane %v8221_v25, 1 }
 0x523   : > { %4663 = vmatmul.bf16.gmra.mxu2 %v4559_v46 }
 0x524   : > { %v4561_v58 = vsel %vm1041_vm1, %v4558_v26, %v4560_v2 }
 0x525   : > { %v4471_v16 = vpop.f32.mrf.mxu1 }
 0x526   : > { %v4630_v9 = vpop.f32.mrf.mxu2  ;;  %v4523_v59 = vadd.f32 %v4471_v16, %v4345_v55  ;;  %v4764_v55 = vsel %vm4761_vm9, %v4762_v8, %v4763_v4  ;;  %v9023_v8 = vld [vmem:[#allocation30_spill] sm:$0xff] }
 0x527   : > { %v4696_v4 = vunpack.c.l.bf16 %v9023_v8 }
 0x528   : > { %4505 = vmatmul.bf16.gmra.mxu1 %v4385_v57  ;;  %v4677_v14 = vadd.f32 %v4625_v61, %v4523_v59  ;;  %v4390_v61 = vshll.u32 %v8194_v24, 16 }
 0x529   : > { %v4767_v34 = vrot.slane %v4696_v4, 2  ;;  %v9026_v4 = vld [vmem:[#allocation37_spill] sm:$0xff] }
 0x52a   : > { %v4721_v46 = vadd.f32 %v8397_v37, %v4677_v14  ;;  %v4392_v57 = vrot.slane %v4390_v61, 1 }
 0x52c   : > { %v4818_v59 = vadd.f32 %v4764_v55, %v4721_v46  ;;  %v4393_v45 = vsel %vm575_vm0, %v4388_v29, %v4392_v57  ;;  %v4394_v46 = vshrl.u32 %v8194_v24, 16 }
 0x52d   : > { %v4473_v38 = vpop.f32.mrf.mxu1 }
 0x52e   : > { %v4524_v43 = vadd.f32 %v4473_v38, %v4346_v39  ;;  %v4631_v52 = vpop.f32.mrf.mxu2  ;;  %v4398_v39 = vshll.u32 %v8221_v25, 16  ;;  %v9024_v38 = vld [vmem:[#allocation33_spill] sm:$0xff] }
 0x52f   : > { %v4697_v27 = vunpack.c.l.bf16 %v9024_v38  ;;  %v4699_v38 = vunpack.c.l.bf16 %v9026_v4 }
 0x530   : > { %v4678_v16 = vadd.f32 %v4627_v35, %v4524_v43  ;;  %v4379_v35 = vunpack.c.l.b16 %v2985_v63  ;;  %v9025_v43 = vld [vmem:[#allocation34_spill] sm:$0xff] }
 0x531   : > { %v4698_v1 = vunpack.c.l.bf16 %v9025_v43 }
 0x532   : > { %v4722_v9 = vadd.f32 %v8397_v37, %v4678_v16  ;;  %v4380_v33 = vpack.c.b16 %v4379_v35, %v4379_v35  ;;  %v4400_v16 = vrot.slane %v4398_v39, 1 }
 0x533   : > { %4668 = vmatmul.bf16.gmra.mxu2 %v4561_v58  ;;  %v4396_v58 = vor.u32 %v4394_v46, %v4392_v57  ;;  %v4772_v46 = vrot.slane %v4699_v38, 2 }
 0x534   : > { %v4819_v44 = vadd.f32 %v4766_v5, %v4722_v9  ;;  %v4562_v14 = vrot.slane %v4380_v33, 1  ;;  %v4768_v5 = vrot.slane %v4697_v27, 2  ;;  %v4770_v9 = vrot.slane %v4698_v1, 2  ;;  %v9027_v27 = vld [vmem:[#allocation38_spill] sm:$0xff] }
 0x535   : > { %v4476_v3 = vpop.f32.mrf.mxu1  ;;  %v4700_v43 = vunpack.c.l.bf16 %v9027_v27  ;;  %v9028_v1 = vld [vmem:[#allocation42_spill] sm:$0xff] }
 0x536   : > { %v5820_v53 = vpack.c.bf16 %v4819_v44, %v4818_v59  ;;  %v4634_v18 = vpop.f32.mrf.mxu2  ;;  %v4563_v61 = vsel %vm1041_vm1, %v4560_v2, %v4562_v14  ;;  %v4401_v44 = vsel %vm575_vm0, %v4396_v58, %v4400_v16  ;;  %v4769_v24 = vsel %vm4761_vm9, %v4767_v34, %v4768_v5 }
 0x538   : > { %5821 = vst [vmem:[%s8413_s12] sm:$0xff] %v5820_v53   ;;  %4509 = vmatmul.bf16.gmra.mxu1 %v4393_v45  ;;  %v4406_v45 = vshll.u32 %v4380_v33, 16  ;;  %v4701_v33 = vunpack.c.l.bf16 %v9028_v1 }
 0x53d   : > { %v4477_v26 = vpop.f32.mrf.mxu1 }
 0x53e   : > { %v4636_v60 = vpop.f32.mrf.mxu2  ;;  %v4525_v17 = vadd.f32 %v4477_v26, %v4347_v48  ;;  %v4402_v26 = vshrl.u32 %v8221_v25, 16  ;;  %v4408_v48 = vrot.slane %v4406_v45, 1  ;;  %v4350_v25 = vadd.f32 %v8270_v40, %v8323_v56 }
 0x540   : > { %v4679_v55 = vadd.f32 %v4631_v52, %v4525_v17  ;;  %v4771_v52 = vsel %vm4761_vm9, %v4768_v5, %v4770_v9  ;;  %v4404_v14 = vor.u32 %v4402_v26, %v4400_v16  ;;  %v4773_v16 = vrot.slane %v4700_v43, 2 }
 0x541   : > { %v4352_v26 = vadd.f32 %v8283_v22, %v8337_v28 }
 0x542   : > { %v4723_v2 = vadd.f32 %v8397_v37, %v4679_v55  ;;  %v4409_v17 = vsel %vm575_vm0, %v4404_v14, %v4408_v48 }
 0x543   : > { %4672 = vmatmul.bf16.gmra.mxu2 %v4563_v61 }
 0x544   : > { %v4820_v51 = vadd.f32 %v4769_v24, %v4723_v2 }
 0x545   : > { %v4480_v63 = vpop.f32.mrf.mxu1 }
 0x546   : > { %v4526_v19 = vadd.f32 %v4480_v63, %v4348_v54  ;;  %v4638_v59 = vpop.f32.mrf.mxu2  ;;  %v4774_v63 = vsel %vm4761_vm9, %v4772_v46, %v4773_v16 }
 0x548   : > { %v4680_v3 = vadd.f32 %v4634_v18, %v4526_v19  ;;  %4514 = vmatmul.bf16.gmra.mxu1 %v4401_v44  ;;  %v4349_v18 = vadd.f32 %v8264_v41, %v8318_v50  ;;  %v4775_v41 = vrot.slane %v4701_v33, 2 }
 0x54a   : > { %v4724_v31 = vadd.f32 %v8397_v37, %v4680_v3  ;;  %v4776_v9 = vsel %vm4761_vm9, %v4773_v16, %v4775_v41  ;;  %v4351_v3 = vadd.f32 %v8277_v32, %v8330_v11  ;;  %v9032_v16 = vld [vmem:[#allocation55_spill] sm:$0xff]  ;;  %v9033_v41 = vld [vmem:[#allocation56_spill] sm:$0xff] }
 0x54c   : > { %v4821_v29 = vadd.f32 %v4771_v52, %v4724_v31  ;;  %v9029_v31 = vld [vmem:[#allocation43_spill] sm:$0xff] }
 0x54d   : > { %v4482_v35 = vpop.f32.mrf.mxu1 }
 0x54e   : > { %v5825_v53 = vpack.c.bf16 %v4821_v29, %v4820_v51  ;;  %v4640_v57 = vpop.f32.mrf.mxu2  ;;  %v4702_v51 = vunpack.c.l.bf16 %v9029_v31  ;;  %v9030_v29 = vld [vmem:[#allocation49_spill] sm:$0xff] }
 0x54f   : > { %v4703_v35 = vunpack.c.l.bf16 %v9030_v29  ;;  %v4355_v29 = vadd.f32 %v8305_v15, %v8352_v49 }
 0x550   : > { %5876 = vst [vmem:[%s8413_s12 + $0x8] sm:$0xff] %v5825_v53   ;;  %v9031_v53 = vld [vmem:[#allocation50_spill] sm:$0xff]  ;;  %v4777_v48 = vrot.slane %v4702_v51, 2 }
 0x555   : > { %v4484_v60 = vpop.f32.mrf.mxu1 }
 0x556   : > { %v4643_v39 = vpop.f32.mrf.mxu2  ;;  %v4527_v8 = vadd.f32 %v4484_v60, %v4349_v18  ;;  %v4778_v60 = vrot.slane %v4703_v35, 2 }
 0x558   : > { %4518 = vmatmul.bf16.gmra.mxu1 %v4409_v17  ;;  %v4681_v61 = vadd.f32 %v4638_v59, %v4527_v8  ;;  %v4779_v8 = vsel %vm4761_vm9, %v4777_v48, %v4778_v60 }
 0x55a   : > { %v4725_v34 = vadd.f32 %v8397_v37, %v4681_v61  ;;  %v4353_v61 = vadd.f32 %v8291_v36, %v8344_v12 }
 0x55c   : > { %v4822_v19 = vadd.f32 %v4774_v63, %v4725_v34  ;;  %v4354_v63 = vadd.f32 %v8297_v47, %v8347_v42 }
 0x55d   : > { %v4486_v55 = vpop.f32.mrf.mxu1 }
 0x55e   : > { %v4528_v50 = vadd.f32 %v4486_v55, %v4350_v25  ;;  %v4644_v54 = vpop.f32.mrf.mxu2  ;;  %v4705_v55 = vunpack.c.l.bf16 %v9032_v16 }
 0x560   : > { %v4682_v5 = vadd.f32 %v4640_v57, %v4528_v50  ;;  %v4704_v57 = vunpack.c.l.bf16 %v9031_v53  ;;  %v4706_v50 = vunpack.c.l.bf16 %v9033_v41 }
 0x562   : > { %v4726_v58 = vadd.f32 %v8397_v37, %v4682_v5  ;;  %v4780_v18 = vrot.slane %v4704_v57, 2  ;;  %v9035_v57 = vld [vmem:[#allocation61_spill] sm:$0xff] }
 0x564   : > { %v4823_v59 = vadd.f32 %v4776_v9, %v4726_v58  ;;  %v4781_v4 = vsel %vm4761_vm9, %v4778_v60, %v4780_v18  ;;  %v4782_v9 = vrot.slane %v4705_v55, 2  ;;  %v4783_v58 = vrot.slane %v4706_v50, 2  ;;  %v9037_v60 = vld [vmem:[#allocation67_spill] sm:$0xff]  ;;  %v9038_v55 = vld [vmem:[#allocation73_spill] sm:$0xff]  ;;  %v9039_v50 = vld [vmem:[#allocation74_spill] sm:$0xff] }
 0x565   : > { %v4489_v44 = vpop.f32.mrf.mxu1  ;;  %v4711_v41 = vunpack.c.l.bf16 %v9038_v55 }
 0x566   : > { %v5830_v40 = vpack.c.bf16 %v4823_v59, %v4822_v19  ;;  %v4647_v56 = vpop.f32.mrf.mxu2 }
 0x568   : > { %5877 = vst [vmem:[%s8413_s12 + $0x10] sm:$0xff] %v5830_v40  }
 0x56d   : > { %v4490_v2 = vpop.f32.mrf.mxu1 }
 0x56e   : > { %v4649_v24 = vpop.f32.mrf.mxu2  ;;  %v4529_v52 = vadd.f32 %v4490_v2, %v4351_v3 }
 0x570   : > { %v4683_v45 = vadd.f32 %v4644_v54, %v4529_v52  ;;  %v9034_v54 = vld [vmem:[#allocation60_spill] sm:$0xff] }
 0x571   : > { %v4707_v34 = vunpack.c.l.bf16 %v9034_v54  ;;  %v4712_v54 = vunpack.c.l.bf16 %v9039_v50 }
 0x572   : > { %v4727_v32 = vadd.f32 %v8397_v37, %v4683_v45  ;;  %v4708_v45 = vunpack.c.l.bf16 %v9035_v57 }
 0x573   : > { %v4785_v59 = vrot.slane %v4707_v34, 2  ;;  %v9040_v34 = vld [vmem:[#allocation19_spill] sm:$0xff] }
 0x574   : > { %v4824_v27 = vadd.f32 %v4779_v8, %v4727_v32 }
 0x575   : > { %v4493_v14 = vpop.f32.mrf.mxu1  ;;  %v4786_v2 = vsel %vm4761_vm9, %v4783_v58, %v4785_v59 }
 0x576   : > { %v4530_v39 = vadd.f32 %v4493_v14, %v4352_v26  ;;  %v4651_v17 = vpop.f32.mrf.mxu2  ;;  %v9036_v26 = vld [vmem:[#allocation66_spill] sm:$0xff]  ;;  %v4710_v14 = vunpack.c.l.bf16 %v9037_v60  ;;  %v4360_v60 = vadd.f32 %v8339_v30, %v8377_v7 }
 0x577   : > { %v4709_v48 = vunpack.c.l.bf16 %v9036_v26 }
 0x578   : > { %v4684_v11 = vadd.f32 %v4647_v56, %v4530_v39  ;;  %v4784_v56 = vsel %vm4761_vm9, %v4782_v9, %v4783_v58  ;;  %v4356_v39 = vadd.f32 %v8312_v20, %v8357_v23  ;;  %v4790_v8 = vrot.slane %v4710_v14, 2 }
 0x579   : > { %v4788_v32 = vrot.slane %v4709_v48, 2  ;;  %v4358_v9 = vadd.f32 %v8326_v10, %v8365_v0  ;;  %v4792_v58 = vrot.slane %v4711_v41, 2 }
 0x57a   : > { %v4728_v38 = vadd.f32 %v8397_v37, %v4684_v11 }
 0x57c   : > { %v4825_v43 = vadd.f32 %v4781_v4, %v4728_v38 }
 0x57d   : > { %v4495_v1 = vpop.f32.mrf.mxu1 }
 0x57e   : > { %v5835_v22 = vpack.c.bf16 %v4825_v43, %v4824_v27  ;;  %v4653_v28 = vpop.f32.mrf.mxu2  ;;  %v4791_v43 = vsel %vm4761_vm9, %v4788_v32, %v4790_v8 }
 0x580   : > { %5878 = vst [vmem:[%s8413_s12 + $0x18] sm:$0xff] %v5835_v22  }
 0x585   : > { %v4497_v33 = vpop.f32.mrf.mxu1 }
 0x586   : > { %v4656_v25 = vpop.f32.mrf.mxu2  ;;  %v4531_v46 = vadd.f32 %v4497_v33, %v4353_v61 }
 0x587   : > { %v4357_v25 = vadd.f32 %v8320_v13, %v8362_v21 }
 0x588   : > { %v4685_v5 = vadd.f32 %v4651_v17, %v4531_v46  ;;  %v4787_v17 = vrot.slane %v4708_v45, 2  ;;  %v9044_v45 = vld [vmem:[#allocation23_spill] sm:$0xff] }
 0x589   : > { %v4716_v26 = vunpack.c.l.bf16 %v9044_v45 }
 0x58a   : > { %v4729_v36 = vadd.f32 %v8397_v37, %v4685_v5  ;;  %v4789_v27 = vsel %vm4761_vm9, %v4787_v17, %v4788_v32  ;;  %v4713_v5 = vunpack.c.l.bf16 %v9040_v34 }
 0x58c   : > { %v4826_v24 = vadd.f32 %v4784_v56, %v4729_v36 }
 0x58d   : > { %v4499_v19 = vpop.f32.mrf.mxu1 }
 0x58e   : > { %v4532_v44 = vadd.f32 %v4499_v19, %v4354_v63  ;;  %v4657_v40 = vpop.f32.mrf.mxu2  ;;  %v4793_v19 = vrot.slane %v4712_v54, 2 }
 0x590   : > { %v4686_v12 = vadd.f32 %v4653_v28, %v4532_v44  ;;  %v4795_v44 = vrot.slane %v4713_v5, 2 }
 0x592   : > { %v4730_v3 = vadd.f32 %v8397_v37, %v4686_v12  ;;  %v4794_v12 = vsel %vm4761_vm9, %v4792_v58, %v4793_v19  ;;  %v4796_v56 = vsel %vm4761_vm9, %v4793_v19, %v4795_v44 }
 0x594   : > { %v4827_v52 = vadd.f32 %v4786_v2, %v4730_v3 }
 0x595   : > { %v4502_v31 = vpop.f32.mrf.mxu1 }
 0x596   : > { %v5840_v47 = vpack.c.bf16 %v4827_v52, %v4826_v24  ;;  %v4660_v42 = vpop.f32.mrf.mxu2 }
 0x598   : > { %5879 = vst [vmem:[%s8413_s12 + $0x20] sm:$0xff] %v5840_v47   ;;  %v4359_v47 = vadd.f32 %v8333_v62, %v8371_v6  ;;  %v4800_v6 = vrot.slane %v4716_v26, 2 }
 0x59d   : > { %v4503_v51 = vpop.f32.mrf.mxu1 }
 0x59e   : > { %v4662_v35 = vpop.f32.mrf.mxu2  ;;  %v4533_v53 = vadd.f32 %v4503_v51, %v4355_v29  ;;  %v9042_v29 = vld [vmem:[#allocation20_spill] sm:$0xff] }
 0x59f   : > { %v4714_v35 = vunpack.c.l.bf16 %v9042_v29 }
 0x5a0   : > { %v4687_v18 = vadd.f32 %v4657_v40, %v4533_v53  ;;  %v9043_v53 = vld [vmem:[#allocation22_spill] sm:$0xff] }
 0x5a1   : > { %v4715_v57 = vunpack.c.l.bf16 %v9043_v53  ;;  %v4797_v14 = vrot.slane %v4714_v35, 2 }
 0x5a2   : > { %v4731_v15 = vadd.f32 %v8397_v37, %v4687_v18 }
 0x5a3   : > { %v4798_v18 = vrot.slane %v4715_v57, 2 }
 0x5a4   : > { %v4828_v22 = vadd.f32 %v4789_v27, %v4731_v15 }
 0x5a5   : > { %v4506_v11 = vpop.f32.mrf.mxu1  ;;  %v4801_v8 = vsel %vm4761_vm9, %v4798_v18, %v4800_v6 }
 0x5a6   : > { %v4534_v4 = vadd.f32 %v4506_v11, %v4356_v39  ;;  %v4664_v38 = vpop.f32.mrf.mxu2  ;;  %v4799_v11 = vsel %vm4761_vm9, %v4797_v14, %v4798_v18 }
 0x5a8   : > { %v4688_v49 = vadd.f32 %v4660_v42, %v4534_v4 }
 0x5aa   : > { %v4732_v1 = vadd.f32 %v8397_v37, %v4688_v49 }
 0x5ac   : > { %v4829_v28 = vadd.f32 %v4791_v43, %v4732_v1 }
 0x5ad   : > { %v4508_v33 = vpop.f32.mrf.mxu1 }
 0x5ae   : > { %v5845_v20 = vpack.c.bf16 %v4829_v28, %v4828_v22  ;;  %v4666_v23 = vpop.f32.mrf.mxu2 }
 0x5b0   : > { %5880 = vst [vmem:[%s8413_s12 + $0x28] sm:$0xff] %v5845_v20  }
 0x5b5   : > { %v4510_v61 = vpop.f32.mrf.mxu1 }
 0x5b6   : > { %v4669_v46 = vpop.f32.mrf.mxu2  ;;  %v4535_v16 = vadd.f32 %v4510_v61, %v4357_v25 }
 0x5b8   : > { %v4689_v63 = vadd.f32 %v4664_v38, %v4535_v16 }
 0x5ba   : > { %v4733_v21 = vadd.f32 %v8397_v37, %v4689_v63 }
 0x5bc   : > { %v4830_v3 = vadd.f32 %v4794_v12, %v4733_v21 }
 0x5bd   : > { %v4512_v59 = vpop.f32.mrf.mxu1 }
 0x5be   : > { %v4536_v40 = vadd.f32 %v4512_v59, %v4358_v9  ;;  %v4670_v13 = vpop.f32.mrf.mxu2 }
 0x5c0   : > { %v4690_v36 = vadd.f32 %v4666_v23, %v4536_v40 }
 0x5c2   : > { %v4734_v2 = vadd.f32 %v8397_v37, %v4690_v36 }
 0x5c4   : > { %v4831_v10 = vadd.f32 %v4796_v56, %v4734_v2 }
 0x5c5   : > { %v4515_v0 = vpop.f32.mrf.mxu1 }
 0x5c6   : > { %v5850_v24 = vpack.c.bf16 %v4831_v10, %v4830_v3  ;;  %v4673_v52 = vpop.f32.mrf.mxu2 }
 0x5c8   : > { %5881 = vst [vmem:[%s8413_s12 + $0x30] sm:$0xff] %v5850_v24  }
 0x5cd   : > { %v4516_v31 = vpop.f32.mrf.mxu1 }
 0x5ce   : > { %v4675_v42 = vpop.f32.mrf.mxu2  ;;  %v4537_v51 = vadd.f32 %v4516_v31, %v4359_v47 }
 0x5d0   : > { %v4691_v48 = vadd.f32 %v4670_v13, %v4537_v51 }
 0x5d2   : > { %v4735_v17 = vadd.f32 %v8397_v37, %v4691_v48 }
 0x5d4   : > { %v4832_v7 = vadd.f32 %v4799_v11, %v4735_v17 }
 0x5d5   : > { %v4519_v62 = vpop.f32.mrf.mxu1 }
 0x5d6   : > { %v4538_v39 = vadd.f32 %v4519_v62, %v4360_v60 }
 0x5d8   : > { %v4692_v32 = vadd.f32 %v4673_v52, %v4538_v39 }
 0x5da   : > { %v4736_v30 = vadd.f32 %v8397_v37, %v4692_v32 }
 0x5dc   : > { %v4833_v4 = vadd.f32 %v4801_v8, %v4736_v30 }
 0x5dd   : > { %v4521_v38 = vpop.f32.mrf.mxu1 }
 0x5de   : > { %v5855_v15 = vpack.c.bf16 %v4833_v4, %v4832_v7 }
 0x5e0   : > { %5882 = vst [vmem:[%s8413_s12 + $0x38] sm:$0xff] %v5855_v15  }
 0x5e1   : > { %6149 = shalt.err (!%p6146_p5)
}
 0x5e2   : > { %s6254_s21 = smov 64   ;;  %s6255_s12 = smov 4  }
 0x5e3   : > { %5912 = dma.vmem_to_hbm [thread:$0]  (%p6356_p6), %s4883_s7, 1024, %s4885_s8, %s4867_s10, %s6254_s21, %s6254_s21, %s6255_s12  }
 0x5e4 PF: > { %s9047_s26 = sld [smem:[#allocation12_spill]]  ;;  %p5934_p7 = scmp.ge.s32.totalorder %s6248_s28, 2 }
 0x5e6   : > { %p5926_p8 = pnand %p5934_p7, %p6362_p10 }
 0x5e8   : > { %p5927_p9 = pneg %p5926_p8 }
 0x5ea   : > { %s4899_s18 = sand.u32 1, %s9047_s26  }
 0x5eb   : > { %s4900_s24 = scalar_lea.sflag [#allocation4], %s4899_s18 }
 0x5ec   : > { %6203 = dma.done.wait (%p5927_p9), %s4900_s24, 1024  }
 0x5ed   : > { %6205 = vsyncadd (%p5927_p9), %s4900_s24, 4294966272  ;;  %s22_s28 = sadd.s32 1, %s6248_s28   ;;  %s9049_s24 = sld [smem:[#allocation14_spill]] }
 0x5ee   : > { %p19_p12 = scmp.ge.s32.totalorder %s22_s28, 6   ;;  %s9050_s26 = sld [smem:[#allocation17_spill]] }
 0x5ef   : > { %s9051_s1 = sld [smem:[#allocation18_spill]]  ;;  %s9052_s18 = smov %s6212_s19 }
 0x5f0   : > { %s9053_s19 = smov %s6216_s20  ;;  %s9054_s20 = smov %s6413_s14 }
 0x5f1   : > { %s9055_s21 = smov %s6224_s22  ;;  %s9056_s22 = smov %s6228_s23 }
 0x5f2   : > { %s9057_s23 = smov %s6410_s3  ;;  %s9058_s25 = smov %s6244_s27 }
 0x5f3   :  { %21 = sbr.rel (!%p19_p12) target bundleno = 14 (0xe), region = 110 }
 0x5f5   : > { %s9059_s27 = smov %s9051_s1 }
 0x5f8   :  { %4906 = vsyncpa [#allocation3], 1 }
 0x5f9   :  { %4908 = vsyncpa [#allocation3 + $0x1], 1 }
 0x5fa   :  { %4909 = vsyncpa [#allocation6], 1 }
 0x5fb   :  { %4910 = vsyncpa [#allocation4], 1 }
 0x5fc   :  { %4912 = vsyncpa [#allocation4 + $0x1], 1 }

</bundles_post_ra>
